<compile_context>
chip_gen: v7x
topology: tpu7x:2x2x1
jax: 0.10.0
libtpu: 0.0.40
codegen_flags: <defaults>
</compile_context>

<pallas_src>
import functools
import math

import jax
import jax.numpy as jnp
from jax.experimental import pallas as pl
from jax.experimental.pallas import tpu as pltpu


def _round_up(x, m):
    return ((x + m - 1) // m) * m


def _cdiv(a, b):
    return -(-a // b)


VMEM_LIMIT_BYTES = 48 * 1024 * 1024


# ----------------------------------------------------------------------------
# Fused ConvTranspose2d (+ bias + optional ReLU) Pallas kernel
# ----------------------------------------------------------------------------
def _convt_kernel(*args, s, k, h_real, w_read, wb, hout, wout, cw, c_store,
                  apply_relu, tmax):
    """One grid step = one batch element x one group of `s` output rows.

    args = (x_ref_0 .. x_ref_{tmax-1}, w_ref, b_ref, o_ref, acc_ref)
      x_ref_j : (1, 1, w_read, cin)   bf16, input row (bh - j) (clamped, masked)
      w_ref   : (k*k, cin, cw)        bf16, all taps, VMEM resident
      b_ref   : (1, cw)               f32 bias
      o_ref   : (1, s, wb, s*c_store) phase-interleaved output block
      acc_ref : (wb, cw)              f32 scratch accumulator
    """
    x_refs = args[:tmax]
    w_ref = args[tmax]
    b_ref = args[tmax + 1]
    o_ref = args[tmax + 2]
    acc_ref = args[tmax + 3]

    bh = pl.program_id(1)
    bias = b_ref[...]                                        # (1, cw) f32

    # Load the tmax candidate input rows; rows outside [0, h_real) contribute 0.
    xs = []
    for j in range(tmax):
        ih = bh - j
        ok = jnp.logical_and(ih >= 0, ih < h_real)
        xv = x_refs[j][0, 0]                                 # (w_read, cin) bf16
        xs.append(jnp.where(ok, xv, jnp.zeros_like(xv)))

    col_ids = jax.lax.broadcasted_iota(jnp.int32, (wb, 1), 0)

    for ph in range(s):                                      # output-row phase
        row_ok = (bh * s + ph) < hout
        th = _cdiv(k - ph, s)                                # taps along H
        for pw in range(s):                                  # output-col phase
            tw = _cdiv(k - pw, s)                            # taps along W
            acc_ref[...] = jnp.broadcast_to(bias, (wb, cw))
            for j in range(th):
                kh = ph + j * s
                for i in range(tw):
                    kw = pw + i * s
                    contrib = jnp.dot(xs[j], w_ref[kh * k + kw],
                                      preferred_element_type=jnp.float32)
                    acc_ref[i:i + w_read, :] += contrib      # sub-pixel shift
            val = acc_ref[...]
            if apply_relu:
                val = jnp.maximum(val, 0.0)
            # zero the (small) padded region so the next layer can read it as-is
            n_cols = _cdiv(wout - pw, s)                     # static
            keep = jnp.logical_and(col_ids < n_cols, row_ok)
            val = jnp.where(keep, val, 0.0)
            o_ref[0, ph, :, pw * c_store:(pw + 1) * c_store] = (
                val[:, :c_store].astype(o_ref.dtype))


def _x_index_map(n, bh, *, j, h_real):
    return (n, jnp.clip(bh - j, 0, h_real - 1), 0, 0)


def conv_transpose_layer(x, h_real, w_real, w_taps, bias, *, k, s, cout,
                         apply_relu, out_dtype):
    """x: (N, Harr, Warr, Cin) with real data in [0:h_real, 0:w_real) and zeros
    in the padded tail.  Returns (out, hout, wout) with out in the same
    zero-padded convention, shape (N, Hpad, Wpad, cout)."""
    n, h_arr, w_arr, cin = x.shape
    tmax = _cdiv(k, s)
    w_read = min(w_arr, _round_up(w_real, 8))   # legal block width, >= w_real
    wb = w_read + tmax - 1
    hb = h_real + tmax - 1
    hout = (h_real - 1) * s + k
    wout = (w_real - 1) * s + k
    cw = w_taps.shape[-1]

    kernel = functools.partial(
        _convt_kernel, s=s, k=k, h_real=h_real, w_read=w_read, wb=wb,
        hout=hout, wout=wout, cw=cw, c_store=cout, apply_relu=apply_relu,
        tmax=tmax)

    in_specs = [
        pl.BlockSpec((1, 1, w_read, cin),
                     functools.partial(_x_index_map, j=j, h_real=h_real))
        for j in range(tmax)
    ]
    in_specs.append(pl.BlockSpec((k * k, cin, cw), lambda n_, bh_: (0, 0, 0)))
    in_specs.append(pl.BlockSpec((1, cw), lambda n_, bh_: (0, 0)))
    out_spec = pl.BlockSpec((1, s, wb, s * cout),
                            lambda n_, bh_: (n_, bh_, 0, 0))

    out = pl.pallas_call(
        kernel,
        out_shape=jax.ShapeDtypeStruct((n, hb * s, wb, s * cout), out_dtype),
        grid_spec=pltpu.PrefetchScalarGridSpec(
            num_scalar_prefetch=0,
            grid=(n, hb),
            in_specs=in_specs,
            out_specs=out_spec,
            scratch_shapes=[pltpu.VMEM((wb, cw), jnp.float32)],
        ),
        compiler_params=pltpu.CompilerParams(
            dimension_semantics=("parallel", "parallel"),
            vmem_limit_bytes=VMEM_LIMIT_BYTES),
    )(*([x] * tmax + [w_taps, bias]))

    # free reshape: (N, Hpad, WB, s*cout) -> (N, Hpad, WB*s, cout)
    out = out.reshape(n, hb * s, wb * s, cout)
    return out, hout, wout


# ----------------------------------------------------------------------------
# Generator: config, params, forward
# ----------------------------------------------------------------------------
def make_layer_defs(noisedim, first_ch, channels, filters, strides):
    defs = [(noisedim, first_ch, 4, 1)]           # self.first
    pv = first_ch
    for c, f, s in zip(channels, filters, strides):
        defs.append((pv, c, f, s))                # conv_layer{i}
        pv = c
    return tuple(defs)


# Full CelebA-HQ generator (hp.image.size = 1024) -- architecture reference.
FULL_LAYERS = make_layer_defs(256, 1024, [512, 512, 256, 256, 128, 3],
                              [3, 5, 3, 3, 5, 3], [2, 4, 2, 2, 4, 2])
FULL_CROP, FULL_IMAGE_SIZE = 100, 1024


def init_params(key, layer_defs):
    """Mimics Generator.weight_init(): std = gain('relu') / sqrt(2 * fan_in),
    fan_in of a ConvTranspose2d weight (cin, cout, k, k) is cout*k*k."""
    raw = []
    for cin, cout, k, _ in layer_defs:
        key, kw_, kb_ = jax.random.split(key, 3)
        std = math.sqrt(2.0) / math.sqrt(2.0 * cout * k * k)
        w = std * jax.random.normal(kw_, (cin, cout, k, k), jnp.float32)
        b = std * jax.random.normal(kb_, (cout,), jnp.float32)
        raw.append((w, b))
    return raw


def prepare_layer_params(w, b):
    """PyTorch-layout weight (cin, cout, k, k) -> tap-major bf16 (k*k, cin, cw)
    with cout padded to a lane multiple; bias -> f32 (1, cw)."""
    cin, cout, k, _ = w.shape
    cw = _round_up(cout, 128)
    taps = jnp.transpose(w, (2, 3, 0, 1)).reshape(k * k, cin, cout)
    taps = jnp.pad(taps, ((0, 0), (0, 0), (0, cw - cout))).astype(jnp.bfloat16)
    bias = jnp.pad(b, (0, cw - cout)).reshape(1, cw).astype(jnp.float32)
    return taps, bias


def generator_forward(params, noise_nchw, *, layer_defs, crop, image_size):
    """noise: (N, noisedim, 1, 1) -> image (N, C_last, image_size, image_size)."""
    x = jnp.transpose(noise_nchw, (0, 2, 3, 1)).astype(jnp.bfloat16)  # NCHW->NHWC
    h_real = w_real = 1
    n_layers = len(layer_defs)
    for li, ((taps, bias), (_, cout, k, s)) in enumerate(zip(params, layer_defs)):
        last = li == n_layers - 1
        x, h_real, w_real = conv_transpose_layer(
            x, h_real, w_real, taps, bias, k=k, s=s, cout=cout,
            apply_relu=not last,
            out_dtype=jnp.float32 if last else jnp.bfloat16)
    # final crop + NHWC->NCHW (pure data movement, left to XLA)
    img = x[:, crop:crop + image_size, crop:crop + image_size, :]
    return jnp.transpose(img, (0, 3, 1, 2))


# ----------------------------------------------------------------------------
# Pure-JAX reference (mirrors the kernel's bf16 dataflow) for validation
# ----------------------------------------------------------------------------
def reference_forward(raw_params, noise_nchw, *, layer_defs, crop, image_size):
    x = jnp.transpose(noise_nchw, (0, 2, 3, 1)).astype(jnp.bfloat16).astype(jnp.float32)
    n_layers = len(layer_defs)
    for li, ((w, b), (_, cout, k, s)) in enumerate(zip(raw_params, layer_defs)):
        last = li == n_layers - 1
        nb, H, W, _ = x.shape
        ho, wo = (H - 1) * s + k, (W - 1) * s + k
        wq = w.astype(jnp.bfloat16).astype(jnp.float32)
        y = jnp.einsum('nhwc,coij->nhwijo', x, wq)
        out = jnp.zeros((nb, ho, wo, cout), jnp.float32)
        for kh in range(k):
            for kw in range(k):
                out = out.at[:, kh:kh + (H - 1) * s + 1:s,
                                kw:kw + (W - 1) * s + 1:s, :].add(y[:, :, :, kh, kw, :])
        out = out + b
        if not last:
            out = jnp.maximum(out, 0.0).astype(jnp.bfloat16).astype(jnp.float32)
        x = out
    img = x[:, crop:crop + image_size, crop:crop + image_size, :]
    return jnp.transpose(img, (0, 3, 1, 2))


if __name__ == "__main__":
    # Small demo instantiation of the same architecture (fast on HW and in
    # interpret mode): noise 32 -> 4x4 -> 9x9 -> 19x19 -> 39x39, crop to 32x32.
    demo_layers = make_layer_defs(32, 64, [32, 16, 3], [3, 3, 3], [2, 2, 2])
    demo_crop, demo_size = 2, 32
    batch = 2

    key = jax.random.PRNGKey(0)
    pkey, nkey = jax.random.split(key)
    raw_params = init_params(pkey, demo_layers)
    params = [prepare_layer_params(w, b) for (w, b) in raw_params]
    noise = jax.random.normal(nkey, (batch, demo_layers[0][0], 1, 1), jnp.float32)

    fwd = jax.jit(functools.partial(generator_forward, layer_defs=demo_layers,
                                    crop=demo_crop, image_size=demo_size))
    out = jax.block_until_ready(fwd(params, noise))

    ref = jax.block_until_ready(
        reference_forward(raw_params, noise, layer_defs=demo_layers,
                          crop=demo_crop, image_size=demo_size))

    assert out.shape == (batch, 3, demo_size, demo_size), out.shape
    assert out.dtype == jnp.float32
    assert bool(jnp.isfinite(out).all())
    err = float(jnp.max(jnp.abs(out - ref)))
    scale = float(jnp.max(jnp.abs(ref)))
    assert err <= 5e-2 * scale + 1e-5, (err, scale)
    print("KERNEL_OK")
</pallas_src>

<mosaic_0001>
module attributes {stable_mosaic.version = 11 : i64} {
  func.func @_convt_kernel(%arg0: i32, %arg1: i32, %arg2: memref<1x1x1x32xbf16, #tpu.memory_space<vmem>>, %arg3: memref<1x1x1x32xbf16, #tpu.memory_space<vmem>>, %arg4: memref<1x1x1x32xbf16, #tpu.memory_space<vmem>>, %arg5: memref<1x1x1x32xbf16, #tpu.memory_space<vmem>>, %arg6: memref<16x32x128xbf16, #tpu.memory_space<vmem>>, %arg7: memref<1x128xf32, #tpu.memory_space<vmem>>, %arg8: memref<1x1x4x64xbf16, #tpu.memory_space<vmem>>, %arg9: memref<4x128xf32, #tpu.memory_space<vmem>>) attributes {dimension_semantics = [#tpu.dimension_semantics<parallel>, #tpu.dimension_semantics<parallel>], iteration_bounds = array<i64: 2, 4>, scalar_prefetch = 0 : i64, scratch_operands = 1 : i64, tpu.core_type = #tpu.core_type<tc>, window_params = [{transform_indices = @transform_0, window_bounds = array<i64: 1, 1, 1, 32>}, {transform_indices = @transform_1, window_bounds = array<i64: 1, 1, 1, 32>}, {transform_indices = @transform_2, window_bounds = array<i64: 1, 1, 1, 32>}, {transform_indices = @transform_3, window_bounds = array<i64: 1, 1, 1, 32>}, {pipeline_mode = #tpu.pipeline_mode<synchronous>, transform_indices = @transform_4, window_bounds = array<i64: 16, 32, 128>}, {pipeline_mode = #tpu.pipeline_mode<synchronous>, transform_indices = @transform_5, window_bounds = array<i64: 1, 128>}, {transform_indices = @transform_6, window_bounds = array<i64: 1, 1, 4, 64>}]} {
    %c0 = arith.constant 0 : index
    %c0_0 = arith.constant 0 : index
    %0 = vector.load %arg7[%c0, %c0_0] : memref<1x128xf32, #tpu.memory_space<vmem>>, vector<1x128xf32>
    %c0_i32 = arith.constant 0 : i32
    %1 = arith.subi %arg1, %c0_i32 : i32
    %c0_i32_1 = arith.constant 0 : i32
    %2 = arith.cmpi sge, %1, %c0_i32_1 : i32
    %c1_i32 = arith.constant 1 : i32
    %3 = arith.cmpi slt, %1, %c1_i32 : i32
    %4 = arith.andi %2, %3 : i1
    %c0_2 = arith.constant 0 : index
    %c0_3 = arith.constant 0 : index
    %c0_4 = arith.constant 0 : index
    %c0_5 = arith.constant 0 : index
    %5 = vector.load %arg2[%c0_2, %c0_3, %c0_4, %c0_5] : memref<1x1x1x32xbf16, #tpu.memory_space<vmem>>, vector<1x1x1x32xbf16>
    %6 = vector.shape_cast %5 : vector<1x1x1x32xbf16> to vector<1x32xbf16>
    %cst = arith.constant 0.000000e+00 : bf16
    %7 = vector.broadcast %cst : bf16 to vector<1x32xbf16>
    %8 = arith.select %4, %6, %7 : vector<1x32xbf16>
    %c1_i32_6 = arith.constant 1 : i32
    %9 = arith.subi %arg1, %c1_i32_6 : i32
    %c0_i32_7 = arith.constant 0 : i32
    %10 = arith.cmpi sge, %9, %c0_i32_7 : i32
    %c1_i32_8 = arith.constant 1 : i32
    %11 = arith.cmpi slt, %9, %c1_i32_8 : i32
    %12 = arith.andi %10, %11 : i1
    %c0_9 = arith.constant 0 : index
    %c0_10 = arith.constant 0 : index
    %c0_11 = arith.constant 0 : index
    %c0_12 = arith.constant 0 : index
    %13 = vector.load %arg3[%c0_9, %c0_10, %c0_11, %c0_12] : memref<1x1x1x32xbf16, #tpu.memory_space<vmem>>, vector<1x1x1x32xbf16>
    %14 = vector.shape_cast %13 : vector<1x1x1x32xbf16> to vector<1x32xbf16>
    %cst_13 = arith.constant 0.000000e+00 : bf16
    %15 = vector.broadcast %cst_13 : bf16 to vector<1x32xbf16>
    %16 = arith.select %12, %14, %15 : vector<1x32xbf16>
    %c2_i32 = arith.constant 2 : i32
    %17 = arith.subi %arg1, %c2_i32 : i32
    %c0_i32_14 = arith.constant 0 : i32
    %18 = arith.cmpi sge, %17, %c0_i32_14 : i32
    %c1_i32_15 = arith.constant 1 : i32
    %19 = arith.cmpi slt, %17, %c1_i32_15 : i32
    %20 = arith.andi %18, %19 : i1
    %c0_16 = arith.constant 0 : index
    %c0_17 = arith.constant 0 : index
    %c0_18 = arith.constant 0 : index
    %c0_19 = arith.constant 0 : index
    %21 = vector.load %arg4[%c0_16, %c0_17, %c0_18, %c0_19] : memref<1x1x1x32xbf16, #tpu.memory_space<vmem>>, vector<1x1x1x32xbf16>
    %22 = vector.shape_cast %21 : vector<1x1x1x32xbf16> to vector<1x32xbf16>
    %cst_20 = arith.constant 0.000000e+00 : bf16
    %23 = vector.broadcast %cst_20 : bf16 to vector<1x32xbf16>
    %24 = arith.select %20, %22, %23 : vector<1x32xbf16>
    %c3_i32 = arith.constant 3 : i32
    %25 = arith.subi %arg1, %c3_i32 : i32
    %c0_i32_21 = arith.constant 0 : i32
    %26 = arith.cmpi sge, %25, %c0_i32_21 : i32
    %c1_i32_22 = arith.constant 1 : i32
    %27 = arith.cmpi slt, %25, %c1_i32_22 : i32
    %28 = arith.andi %26, %27 : i1
    %c0_23 = arith.constant 0 : index
    %c0_24 = arith.constant 0 : index
    %c0_25 = arith.constant 0 : index
    %c0_26 = arith.constant 0 : index
    %29 = vector.load %arg5[%c0_23, %c0_24, %c0_25, %c0_26] : memref<1x1x1x32xbf16, #tpu.memory_space<vmem>>, vector<1x1x1x32xbf16>
    %30 = vector.shape_cast %29 : vector<1x1x1x32xbf16> to vector<1x32xbf16>
    %cst_27 = arith.constant 0.000000e+00 : bf16
    %31 = vector.broadcast %cst_27 : bf16 to vector<1x32xbf16>
    %32 = arith.select %28, %30, %31 : vector<1x32xbf16>
    %33 = tpu.iota {dimensions = array<i32: 0>} : vector<4x1xi32>
    %c1_i32_28 = arith.constant 1 : i32
    %34 = arith.muli %arg1, %c1_i32_28 : i32
    %c0_i32_29 = arith.constant 0 : i32
    %35 = arith.addi %34, %c0_i32_29 : i32
    %c4_i32 = arith.constant 4 : i32
    %36 = arith.cmpi slt, %35, %c4_i32 : i32
    %37 = vector.shape_cast %0 : vector<1x128xf32> to vector<1x128xf32>
    %38 = vector.broadcast %37 : vector<1x128xf32> to vector<4x128xf32>
    %c0_30 = arith.constant 0 : index
    %c0_31 = arith.constant 0 : index
    %39 = vector.load %arg9[%c0_30, %c0_31] : memref<4x128xf32, #tpu.memory_space<vmem>>, vector<4x128xf32>
    tpu.vector_store %arg9[%c0_30, %c0_31], %38 {strides = array<i32>} : memref<4x128xf32, #tpu.memory_space<vmem>>, vector<4x128xf32>,
    %c0_32 = arith.constant 0 : index
    %c0_33 = arith.constant 0 : index
    %c0_34 = arith.constant 0 : index
    %40 = vector.load %arg6[%c0_32, %c0_33, %c0_34] : memref<16x32x128xbf16, #tpu.memory_space<vmem>>, vector<1x32x128xbf16>
    %41 = vector.shape_cast %40 : vector<1x32x128xbf16> to vector<32x128xbf16>
    %cst_35 = arith.constant dense<0.000000e+00> : vector<1x128xf32>
    %42 = tpu.matmul %8, %41, %cst_35 {dimension_numbers = #tpu.dot_dimension_numbers<[1], [0], [0], [1], [0, 0, 1, 1], [], []>} : vector<1x32xbf16>, vector<32x128xbf16>, vector<1x128xf32> -> vector<1x128xf32>
    %c0_36 = arith.constant 0 : index
    %c0_37 = arith.constant 0 : index
    %43 = vector.load %arg9[%c0_36, %c0_37] : memref<4x128xf32, #tpu.memory_space<vmem>>, vector<1x128xf32>
    %44 = arith.addf %43, %42 : vector<1x128xf32>
    %c0_38 = arith.constant 0 : index
    %c0_39 = arith.constant 0 : index
    %45 = vector.load %arg9[%c0_38, %c0_39] : memref<4x128xf32, #tpu.memory_space<vmem>>, vector<1x128xf32>
    tpu.vector_store %arg9[%c0_38, %c0_39], %44 {strides = array<i32>} : memref<4x128xf32, #tpu.memory_space<vmem>>, vector<1x128xf32>,
    %c1 = arith.constant 1 : index
    %c0_40 = arith.constant 0 : index
    %c0_41 = arith.constant 0 : index
    %46 = vector.load %arg6[%c1, %c0_40, %c0_41] : memref<16x32x128xbf16, #tpu.memory_space<vmem>>, vector<1x32x128xbf16>
    %47 = vector.shape_cast %46 : vector<1x32x128xbf16> to vector<32x128xbf16>
    %cst_42 = arith.constant dense<0.000000e+00> : vector<1x128xf32>
    %48 = tpu.matmul %8, %47, %cst_42 {dimension_numbers = #tpu.dot_dimension_numbers<[1], [0], [0], [1], [0, 0, 1, 1], [], []>} : vector<1x32xbf16>, vector<32x128xbf16>, vector<1x128xf32> -> vector<1x128xf32>
    %c1_43 = arith.constant 1 : index
    %c0_44 = arith.constant 0 : index
    %49 = vector.load %arg9[%c1_43, %c0_44] : memref<4x128xf32, #tpu.memory_space<vmem>>, vector<1x128xf32>
    %50 = arith.addf %49, %48 : vector<1x128xf32>
    %c1_45 = arith.constant 1 : index
    %c0_46 = arith.constant 0 : index
    %51 = vector.load %arg9[%c1_45, %c0_46] : memref<4x128xf32, #tpu.memory_space<vmem>>, vector<1x128xf32>
    tpu.vector_store %arg9[%c1_45, %c0_46], %50 {strides = array<i32>} : memref<4x128xf32, #tpu.memory_space<vmem>>, vector<1x128xf32>,
    %c2 = arith.constant 2 : index
    %c0_47 = arith.constant 0 : index
    %c0_48 = arith.constant 0 : index
    %52 = vector.load %arg6[%c2, %c0_47, %c0_48] : memref<16x32x128xbf16, #tpu.memory_space<vmem>>, vector<1x32x128xbf16>
    %53 = vector.shape_cast %52 : vector<1x32x128xbf16> to vector<32x128xbf16>
    %cst_49 = arith.constant dense<0.000000e+00> : vector<1x128xf32>
    %54 = tpu.matmul %8, %53, %cst_49 {dimension_numbers = #tpu.dot_dimension_numbers<[1], [0], [0], [1], [0, 0, 1, 1], [], []>} : vector<1x32xbf16>, vector<32x128xbf16>, vector<1x128xf32> -> vector<1x128xf32>
    %c2_50 = arith.constant 2 : index
    %c0_51 = arith.constant 0 : index
    %55 = vector.load %arg9[%c2_50, %c0_51] : memref<4x128xf32, #tpu.memory_space<vmem>>, vector<1x128xf32>
    %56 = arith.addf %55, %54 : vector<1x128xf32>
    %c2_52 = arith.constant 2 : index
    %c0_53 = arith.constant 0 : index
    %57 = vector.load %arg9[%c2_52, %c0_53] : memref<4x128xf32, #tpu.memory_space<vmem>>, vector<1x128xf32>
    tpu.vector_store %arg9[%c2_52, %c0_53], %56 {strides = array<i32>} : memref<4x128xf32, #tpu.memory_space<vmem>>, vector<1x128xf32>,
    %c3 = arith.constant 3 : index
    %c0_54 = arith.constant 0 : index
    %c0_55 = arith.constant 0 : index
    %58 = vector.load %arg6[%c3, %c0_54, %c0_55] : memref<16x32x128xbf16, #tpu.memory_space<vmem>>, vector<1x32x128xbf16>
    %59 = vector.shape_cast %58 : vector<1x32x128xbf16> to vector<32x128xbf16>
    %cst_56 = arith.constant dense<0.000000e+00> : vector<1x128xf32>
    %60 = tpu.matmul %8, %59, %cst_56 {dimension_numbers = #tpu.dot_dimension_numbers<[1], [0], [0], [1], [0, 0, 1, 1], [], []>} : vector<1x32xbf16>, vector<32x128xbf16>, vector<1x128xf32> -> vector<1x128xf32>
    %c3_57 = arith.constant 3 : index
    %c0_58 = arith.constant 0 : index
    %61 = vector.load %arg9[%c3_57, %c0_58] : memref<4x128xf32, #tpu.memory_space<vmem>>, vector<1x128xf32>
    %62 = arith.addf %61, %60 : vector<1x128xf32>
    %c3_59 = arith.constant 3 : index
    %c0_60 = arith.constant 0 : index
    %63 = vector.load %arg9[%c3_59, %c0_60] : memref<4x128xf32, #tpu.memory_space<vmem>>, vector<1x128xf32>
    tpu.vector_store %arg9[%c3_59, %c0_60], %62 {strides = array<i32>} : memref<4x128xf32, #tpu.memory_space<vmem>>, vector<1x128xf32>,
    %c4 = arith.constant 4 : index
    %c0_61 = arith.constant 0 : index
    %c0_62 = arith.constant 0 : index
    %64 = vector.load %arg6[%c4, %c0_61, %c0_62] : memref<16x32x128xbf16, #tpu.memory_space<vmem>>, vector<1x32x128xbf16>
    %65 = vector.shape_cast %64 : vector<1x32x128xbf16> to vector<32x128xbf16>
    %cst_63 = arith.constant dense<0.000000e+00> : vector<1x128xf32>
    %66 = tpu.matmul %16, %65, %cst_63 {dimension_numbers = #tpu.dot_dimension_numbers<[1], [0], [0], [1], [0, 0, 1, 1], [], []>} : vector<1x32xbf16>, vector<32x128xbf16>, vector<1x128xf32> -> vector<1x128xf32>
    %c0_64 = arith.constant 0 : index
    %c0_65 = arith.constant 0 : index
    %67 = vector.load %arg9[%c0_64, %c0_65] : memref<4x128xf32, #tpu.memory_space<vmem>>, vector<1x128xf32>
    %68 = arith.addf %67, %66 : vector<1x128xf32>
    %c0_66 = arith.constant 0 : index
    %c0_67 = arith.constant 0 : index
    %69 = vector.load %arg9[%c0_66, %c0_67] : memref<4x128xf32, #tpu.memory_space<vmem>>, vector<1x128xf32>
    tpu.vector_store %arg9[%c0_66, %c0_67], %68 {strides = array<i32>} : memref<4x128xf32, #tpu.memory_space<vmem>>, vector<1x128xf32>,
    %c5 = arith.constant 5 : index
    %c0_68 = arith.constant 0 : index
    %c0_69 = arith.constant 0 : index
    %70 = vector.load %arg6[%c5, %c0_68, %c0_69] : memref<16x32x128xbf16, #tpu.memory_space<vmem>>, vector<1x32x128xbf16>
    %71 = vector.shape_cast %70 : vector<1x32x128xbf16> to vector<32x128xbf16>
    %cst_70 = arith.constant dense<0.000000e+00> : vector<1x128xf32>
    %72 = tpu.matmul %16, %71, %cst_70 {dimension_numbers = #tpu.dot_dimension_numbers<[1], [0], [0], [1], [0, 0, 1, 1], [], []>} : vector<1x32xbf16>, vector<32x128xbf16>, vector<1x128xf32> -> vector<1x128xf32>
    %c1_71 = arith.constant 1 : index
    %c0_72 = arith.constant 0 : index
    %73 = vector.load %arg9[%c1_71, %c0_72] : memref<4x128xf32, #tpu.memory_space<vmem>>, vector<1x128xf32>
    %74 = arith.addf %73, %72 : vector<1x128xf32>
    %c1_73 = arith.constant 1 : index
    %c0_74 = arith.constant 0 : index
    %75 = vector.load %arg9[%c1_73, %c0_74] : memref<4x128xf32, #tpu.memory_space<vmem>>, vector<1x128xf32>
    tpu.vector_store %arg9[%c1_73, %c0_74], %74 {strides = array<i32>} : memref<4x128xf32, #tpu.memory_space<vmem>>, vector<1x128xf32>,
    %c6 = arith.constant 6 : index
    %c0_75 = arith.constant 0 : index
    %c0_76 = arith.constant 0 : index
    %76 = vector.load %arg6[%c6, %c0_75, %c0_76] : memref<16x32x128xbf16, #tpu.memory_space<vmem>>, vector<1x32x128xbf16>
    %77 = vector.shape_cast %76 : vector<1x32x128xbf16> to vector<32x128xbf16>
    %cst_77 = arith.constant dense<0.000000e+00> : vector<1x128xf32>
    %78 = tpu.matmul %16, %77, %cst_77 {dimension_numbers = #tpu.dot_dimension_numbers<[1], [0], [0], [1], [0, 0, 1, 1], [], []>} : vector<1x32xbf16>, vector<32x128xbf16>, vector<1x128xf32> -> vector<1x128xf32>
    %c2_78 = arith.constant 2 : index
    %c0_79 = arith.constant 0 : index
    %79 = vector.load %arg9[%c2_78, %c0_79] : memref<4x128xf32, #tpu.memory_space<vmem>>, vector<1x128xf32>
    %80 = arith.addf %79, %78 : vector<1x128xf32>
    %c2_80 = arith.constant 2 : index
    %c0_81 = arith.constant 0 : index
    %81 = vector.load %arg9[%c2_80, %c0_81] : memref<4x128xf32, #tpu.memory_space<vmem>>, vector<1x128xf32>
    tpu.vector_store %arg9[%c2_80, %c0_81], %80 {strides = array<i32>} : memref<4x128xf32, #tpu.memory_space<vmem>>, vector<1x128xf32>,
    %c7 = arith.constant 7 : index
    %c0_82 = arith.constant 0 : index
    %c0_83 = arith.constant 0 : index
    %82 = vector.load %arg6[%c7, %c0_82, %c0_83] : memref<16x32x128xbf16, #tpu.memory_space<vmem>>, vector<1x32x128xbf16>
    %83 = vector.shape_cast %82 : vector<1x32x128xbf16> to vector<32x128xbf16>
    %cst_84 = arith.constant dense<0.000000e+00> : vector<1x128xf32>
    %84 = tpu.matmul %16, %83, %cst_84 {dimension_numbers = #tpu.dot_dimension_numbers<[1], [0], [0], [1], [0, 0, 1, 1], [], []>} : vector<1x32xbf16>, vector<32x128xbf16>, vector<1x128xf32> -> vector<1x128xf32>
    %c3_85 = arith.constant 3 : index
    %c0_86 = arith.constant 0 : index
    %85 = vector.load %arg9[%c3_85, %c0_86] : memref<4x128xf32, #tpu.memory_space<vmem>>, vector<1x128xf32>
    %86 = arith.addf %85, %84 : vector<1x128xf32>
    %c3_87 = arith.constant 3 : index
    %c0_88 = arith.constant 0 : index
    %87 = vector.load %arg9[%c3_87, %c0_88] : memref<4x128xf32, #tpu.memory_space<vmem>>, vector<1x128xf32>
    tpu.vector_store %arg9[%c3_87, %c0_88], %86 {strides = array<i32>} : memref<4x128xf32, #tpu.memory_space<vmem>>, vector<1x128xf32>,
    %c8 = arith.constant 8 : index
    %c0_89 = arith.constant 0 : index
    %c0_90 = arith.constant 0 : index
    %88 = vector.load %arg6[%c8, %c0_89, %c0_90] : memref<16x32x128xbf16, #tpu.memory_space<vmem>>, vector<1x32x128xbf16>
    %89 = vector.shape_cast %88 : vector<1x32x128xbf16> to vector<32x128xbf16>
    %cst_91 = arith.constant dense<0.000000e+00> : vector<1x128xf32>
    %90 = tpu.matmul %24, %89, %cst_91 {dimension_numbers = #tpu.dot_dimension_numbers<[1], [0], [0], [1], [0, 0, 1, 1], [], []>} : vector<1x32xbf16>, vector<32x128xbf16>, vector<1x128xf32> -> vector<1x128xf32>
    %c0_92 = arith.constant 0 : index
    %c0_93 = arith.constant 0 : index
    %91 = vector.load %arg9[%c0_92, %c0_93] : memref<4x128xf32, #tpu.memory_space<vmem>>, vector<1x128xf32>
    %92 = arith.addf %91, %90 : vector<1x128xf32>
    %c0_94 = arith.constant 0 : index
    %c0_95 = arith.constant 0 : index
    %93 = vector.load %arg9[%c0_94, %c0_95] : memref<4x128xf32, #tpu.memory_space<vmem>>, vector<1x128xf32>
    tpu.vector_store %arg9[%c0_94, %c0_95], %92 {strides = array<i32>} : memref<4x128xf32, #tpu.memory_space<vmem>>, vector<1x128xf32>,
    %c9 = arith.constant 9 : index
    %c0_96 = arith.constant 0 : index
    %c0_97 = arith.constant 0 : index
    %94 = vector.load %arg6[%c9, %c0_96, %c0_97] : memref<16x32x128xbf16, #tpu.memory_space<vmem>>, vector<1x32x128xbf16>
    %95 = vector.shape_cast %94 : vector<1x32x128xbf16> to vector<32x128xbf16>
    %cst_98 = arith.constant dense<0.000000e+00> : vector<1x128xf32>
    %96 = tpu.matmul %24, %95, %cst_98 {dimension_numbers = #tpu.dot_dimension_numbers<[1], [0], [0], [1], [0, 0, 1, 1], [], []>} : vector<1x32xbf16>, vector<32x128xbf16>, vector<1x128xf32> -> vector<1x128xf32>
    %c1_99 = arith.constant 1 : index
    %c0_100 = arith.constant 0 : index
    %97 = vector.load %arg9[%c1_99, %c0_100] : memref<4x128xf32, #tpu.memory_space<vmem>>, vector<1x128xf32>
    %98 = arith.addf %97, %96 : vector<1x128xf32>
    %c1_101 = arith.constant 1 : index
    %c0_102 = arith.constant 0 : index
    %99 = vector.load %arg9[%c1_101, %c0_102] : memref<4x128xf32, #tpu.memory_space<vmem>>, vector<1x128xf32>
    tpu.vector_store %arg9[%c1_101, %c0_102], %98 {strides = array<i32>} : memref<4x128xf32, #tpu.memory_space<vmem>>, vector<1x128xf32>,
    %c10 = arith.constant 10 : index
    %c0_103 = arith.constant 0 : index
    %c0_104 = arith.constant 0 : index
    %100 = vector.load %arg6[%c10, %c0_103, %c0_104] : memref<16x32x128xbf16, #tpu.memory_space<vmem>>, vector<1x32x128xbf16>
    %101 = vector.shape_cast %100 : vector<1x32x128xbf16> to vector<32x128xbf16>
    %cst_105 = arith.constant dense<0.000000e+00> : vector<1x128xf32>
    %102 = tpu.matmul %24, %101, %cst_105 {dimension_numbers = #tpu.dot_dimension_numbers<[1], [0], [0], [1], [0, 0, 1, 1], [], []>} : vector<1x32xbf16>, vector<32x128xbf16>, vector<1x128xf32> -> vector<1x128xf32>
    %c2_106 = arith.constant 2 : index
    %c0_107 = arith.constant 0 : index
    %103 = vector.load %arg9[%c2_106, %c0_107] : memref<4x128xf32, #tpu.memory_space<vmem>>, vector<1x128xf32>
    %104 = arith.addf %103, %102 : vector<1x128xf32>
    %c2_108 = arith.constant 2 : index
    %c0_109 = arith.constant 0 : index
    %105 = vector.load %arg9[%c2_108, %c0_109] : memref<4x128xf32, #tpu.memory_space<vmem>>, vector<1x128xf32>
    tpu.vector_store %arg9[%c2_108, %c0_109], %104 {strides = array<i32>} : memref<4x128xf32, #tpu.memory_space<vmem>>, vector<1x128xf32>,
    %c11 = arith.constant 11 : index
    %c0_110 = arith.constant 0 : index
    %c0_111 = arith.constant 0 : index
    %106 = vector.load %arg6[%c11, %c0_110, %c0_111] : memref<16x32x128xbf16, #tpu.memory_space<vmem>>, vector<1x32x128xbf16>
    %107 = vector.shape_cast %106 : vector<1x32x128xbf16> to vector<32x128xbf16>
    %cst_112 = arith.constant dense<0.000000e+00> : vector<1x128xf32>
    %108 = tpu.matmul %24, %107, %cst_112 {dimension_numbers = #tpu.dot_dimension_numbers<[1], [0], [0], [1], [0, 0, 1, 1], [], []>} : vector<1x32xbf16>, vector<32x128xbf16>, vector<1x128xf32> -> vector<1x128xf32>
    %c3_113 = arith.constant 3 : index
    %c0_114 = arith.constant 0 : index
    %109 = vector.load %arg9[%c3_113, %c0_114] : memref<4x128xf32, #tpu.memory_space<vmem>>, vector<1x128xf32>
    %110 = arith.addf %109, %108 : vector<1x128xf32>
    %c3_115 = arith.constant 3 : index
    %c0_116 = arith.constant 0 : index
    %111 = vector.load %arg9[%c3_115, %c0_116] : memref<4x128xf32, #tpu.memory_space<vmem>>, vector<1x128xf32>
    tpu.vector_store %arg9[%c3_115, %c0_116], %110 {strides = array<i32>} : memref<4x128xf32, #tpu.memory_space<vmem>>, vector<1x128xf32>,
    %c12 = arith.constant 12 : index
    %c0_117 = arith.constant 0 : index
    %c0_118 = arith.constant 0 : index
    %112 = vector.load %arg6[%c12, %c0_117, %c0_118] : memref<16x32x128xbf16, #tpu.memory_space<vmem>>, vector<1x32x128xbf16>
    %113 = vector.shape_cast %112 : vector<1x32x128xbf16> to vector<32x128xbf16>
    %cst_119 = arith.constant dense<0.000000e+00> : vector<1x128xf32>
    %114 = tpu.matmul %32, %113, %cst_119 {dimension_numbers = #tpu.dot_dimension_numbers<[1], [0], [0], [1], [0, 0, 1, 1], [], []>} : vector<1x32xbf16>, vector<32x128xbf16>, vector<1x128xf32> -> vector<1x128xf32>
    %c0_120 = arith.constant 0 : index
    %c0_121 = arith.constant 0 : index
    %115 = vector.load %arg9[%c0_120, %c0_121] : memref<4x128xf32, #tpu.memory_space<vmem>>, vector<1x128xf32>
    %116 = arith.addf %115, %114 : vector<1x128xf32>
    %c0_122 = arith.constant 0 : index
    %c0_123 = arith.constant 0 : index
    %117 = vector.load %arg9[%c0_122, %c0_123] : memref<4x128xf32, #tpu.memory_space<vmem>>, vector<1x128xf32>
    tpu.vector_store %arg9[%c0_122, %c0_123], %116 {strides = array<i32>} : memref<4x128xf32, #tpu.memory_space<vmem>>, vector<1x128xf32>,
    %c13 = arith.constant 13 : index
    %c0_124 = arith.constant 0 : index
    %c0_125 = arith.constant 0 : index
    %118 = vector.load %arg6[%c13, %c0_124, %c0_125] : memref<16x32x128xbf16, #tpu.memory_space<vmem>>, vector<1x32x128xbf16>
    %119 = vector.shape_cast %118 : vector<1x32x128xbf16> to vector<32x128xbf16>
    %cst_126 = arith.constant dense<0.000000e+00> : vector<1x128xf32>
    %120 = tpu.matmul %32, %119, %cst_126 {dimension_numbers = #tpu.dot_dimension_numbers<[1], [0], [0], [1], [0, 0, 1, 1], [], []>} : vector<1x32xbf16>, vector<32x128xbf16>, vector<1x128xf32> -> vector<1x128xf32>
    %c1_127 = arith.constant 1 : index
    %c0_128 = arith.constant 0 : index
    %121 = vector.load %arg9[%c1_127, %c0_128] : memref<4x128xf32, #tpu.memory_space<vmem>>, vector<1x128xf32>
    %122 = arith.addf %121, %120 : vector<1x128xf32>
    %c1_129 = arith.constant 1 : index
    %c0_130 = arith.constant 0 : index
    %123 = vector.load %arg9[%c1_129, %c0_130] : memref<4x128xf32, #tpu.memory_space<vmem>>, vector<1x128xf32>
    tpu.vector_store %arg9[%c1_129, %c0_130], %122 {strides = array<i32>} : memref<4x128xf32, #tpu.memory_space<vmem>>, vector<1x128xf32>,
    %c14 = arith.constant 14 : index
    %c0_131 = arith.constant 0 : index
    %c0_132 = arith.constant 0 : index
    %124 = vector.load %arg6[%c14, %c0_131, %c0_132] : memref<16x32x128xbf16, #tpu.memory_space<vmem>>, vector<1x32x128xbf16>
    %125 = vector.shape_cast %124 : vector<1x32x128xbf16> to vector<32x128xbf16>
    %cst_133 = arith.constant dense<0.000000e+00> : vector<1x128xf32>
    %126 = tpu.matmul %32, %125, %cst_133 {dimension_numbers = #tpu.dot_dimension_numbers<[1], [0], [0], [1], [0, 0, 1, 1], [], []>} : vector<1x32xbf16>, vector<32x128xbf16>, vector<1x128xf32> -> vector<1x128xf32>
    %c2_134 = arith.constant 2 : index
    %c0_135 = arith.constant 0 : index
    %127 = vector.load %arg9[%c2_134, %c0_135] : memref<4x128xf32, #tpu.memory_space<vmem>>, vector<1x128xf32>
    %128 = arith.addf %127, %126 : vector<1x128xf32>
    %c2_136 = arith.constant 2 : index
    %c0_137 = arith.constant 0 : index
    %129 = vector.load %arg9[%c2_136, %c0_137] : memref<4x128xf32, #tpu.memory_space<vmem>>, vector<1x128xf32>
    tpu.vector_store %arg9[%c2_136, %c0_137], %128 {strides = array<i32>} : memref<4x128xf32, #tpu.memory_space<vmem>>, vector<1x128xf32>,
    %c15 = arith.constant 15 : index
    %c0_138 = arith.constant 0 : index
    %c0_139 = arith.constant 0 : index
    %130 = vector.load %arg6[%c15, %c0_138, %c0_139] : memref<16x32x128xbf16, #tpu.memory_space<vmem>>, vector<1x32x128xbf16>
    %131 = vector.shape_cast %130 : vector<1x32x128xbf16> to vector<32x128xbf16>
    %cst_140 = arith.constant dense<0.000000e+00> : vector<1x128xf32>
    %132 = tpu.matmul %32, %131, %cst_140 {dimension_numbers = #tpu.dot_dimension_numbers<[1], [0], [0], [1], [0, 0, 1, 1], [], []>} : vector<1x32xbf16>, vector<32x128xbf16>, vector<1x128xf32> -> vector<1x128xf32>
    %c3_141 = arith.constant 3 : index
    %c0_142 = arith.constant 0 : index
    %133 = vector.load %arg9[%c3_141, %c0_142] : memref<4x128xf32, #tpu.memory_space<vmem>>, vector<1x128xf32>
    %134 = arith.addf %133, %132 : vector<1x128xf32>
    %c3_143 = arith.constant 3 : index
    %c0_144 = arith.constant 0 : index
    %135 = vector.load %arg9[%c3_143, %c0_144] : memref<4x128xf32, #tpu.memory_space<vmem>>, vector<1x128xf32>
    tpu.vector_store %arg9[%c3_143, %c0_144], %134 {strides = array<i32>} : memref<4x128xf32, #tpu.memory_space<vmem>>, vector<1x128xf32>,
    %c0_145 = arith.constant 0 : index
    %c0_146 = arith.constant 0 : index
    %136 = vector.load %arg9[%c0_145, %c0_146] : memref<4x128xf32, #tpu.memory_space<vmem>>, vector<4x128xf32>
    %cst_147 = arith.constant 0.000000e+00 : f32
    %137 = vector.broadcast %cst_147 : f32 to vector<4x128xf32>
    %138 = arith.maximumf %136, %137 : vector<4x128xf32>
    %c4_i32_148 = arith.constant 4 : i32
    %139 = vector.broadcast %c4_i32_148 : i32 to vector<4x1xi32>
    %140 = arith.cmpi slt, %33, %139 : vector<4x1xi32>
    %141 = vector.broadcast %36 : i1 to vector<4x1xi1>
    %142 = arith.andi %140, %141 : vector<4x1xi1>
    %cst_149 = arith.constant 0.000000e+00 : f32
    %143 = vector.shape_cast %142 : vector<4x1xi1> to vector<4x1xi1>
    %144 = vector.broadcast %143 : vector<4x1xi1> to vector<4x128xi1>
    %145 = vector.broadcast %cst_149 : f32 to vector<4x128xf32>
    %146 = arith.select %144, %138, %145 : vector<4x128xi1>, vector<4x128xf32>
    %147 = vector.extract_strided_slice %146 {offsets = [0, 0], sizes = [4, 64], strides = [1, 1]} : vector<4x128xf32> to vector<4x64xf32>
    %148 = arith.truncf %147 : vector<4x64xf32> to vector<4x64xbf16>
    %c0_150 = arith.constant 0 : index
    %c0_151 = arith.constant 0 : index
    %c0_152 = arith.constant 0 : index
    %c0_153 = arith.constant 0 : index
    %149 = vector.load %arg8[%c0_150, %c0_151, %c0_152, %c0_153] : memref<1x1x4x64xbf16, #tpu.memory_space<vmem>>, vector<1x1x4x64xbf16>
    %150 = vector.shape_cast %149 : vector<1x1x4x64xbf16> to vector<4x64xbf16>
    %151 = vector.shape_cast %148 : vector<4x64xbf16> to vector<1x1x4x64xbf16>
    tpu.vector_store %arg8[%c0_150, %c0_151, %c0_152, %c0_153], %151 {strides = array<i32>} : memref<1x1x4x64xbf16, #tpu.memory_space<vmem>>, vector<1x1x4x64xbf16>,
    return
  }
  func.func @transform_0(%arg0: i32, %arg1: i32) -> (i32, i32, i32, i32) {
    %c0_i32 = arith.constant 0 : i32
    %0 = arith.subi %arg1, %c0_i32 : i32
    %c0_i32_0 = arith.constant 0 : i32
    %c0_i32_1 = arith.constant 0 : i32
    %1 = arith.maxsi %c0_i32_0, %0 : i32
    %2 = arith.minsi %c0_i32_1, %1 : i32
    %c0_i32_2 = arith.constant 0 : i32
    %c0_i32_3 = arith.constant 0 : i32
    %c0_i32_4 = arith.constant 0 : i32
    return %arg0, %2, %c0_i32_2, %c0_i32_3 : i32, i32, i32, i32
  }
  func.func @transform_1(%arg0: i32, %arg1: i32) -> (i32, i32, i32, i32) {
    %c1_i32 = arith.constant 1 : i32
    %0 = arith.subi %arg1, %c1_i32 : i32
    %c0_i32 = arith.constant 0 : i32
    %c0_i32_0 = arith.constant 0 : i32
    %1 = arith.maxsi %c0_i32, %0 : i32
    %2 = arith.minsi %c0_i32_0, %1 : i32
    %c0_i32_1 = arith.constant 0 : i32
    %c0_i32_2 = arith.constant 0 : i32
    %c0_i32_3 = arith.constant 0 : i32
    return %arg0, %2, %c0_i32_1, %c0_i32_2 : i32, i32, i32, i32
  }
  func.func @transform_2(%arg0: i32, %arg1: i32) -> (i32, i32, i32, i32) {
    %c2_i32 = arith.constant 2 : i32
    %0 = arith.subi %arg1, %c2_i32 : i32
    %c0_i32 = arith.constant 0 : i32
    %c0_i32_0 = arith.constant 0 : i32
    %1 = arith.maxsi %c0_i32, %0 : i32
    %2 = arith.minsi %c0_i32_0, %1 : i32
    %c0_i32_1 = arith.constant 0 : i32
    %c0_i32_2 = arith.constant 0 : i32
    %c0_i32_3 = arith.constant 0 : i32
    return %arg0, %2, %c0_i32_1, %c0_i32_2 : i32, i32, i32, i32
  }
  func.func @transform_3(%arg0: i32, %arg1: i32) -> (i32, i32, i32, i32) {
    %c3_i32 = arith.constant 3 : i32
    %0 = arith.subi %arg1, %c3_i32 : i32
    %c0_i32 = arith.constant 0 : i32
    %c0_i32_0 = arith.constant 0 : i32
    %1 = arith.maxsi %c0_i32, %0 : i32
    %2 = arith.minsi %c0_i32_0, %1 : i32
    %c0_i32_1 = arith.constant 0 : i32
    %c0_i32_2 = arith.constant 0 : i32
    %c0_i32_3 = arith.constant 0 : i32
    return %arg0, %2, %c0_i32_1, %c0_i32_2 : i32, i32, i32, i32
  }
  func.func @transform_4(%arg0: i32, %arg1: i32) -> (i32, i32, i32) {
    %c0_i32 = arith.constant 0 : i32
    %c0_i32_0 = arith.constant 0 : i32
    %c0_i32_1 = arith.constant 0 : i32
    %c0_i32_2 = arith.constant 0 : i32
    return %c0_i32, %c0_i32_0, %c0_i32_1 : i32, i32, i32
  }
  func.func @transform_5(%arg0: i32, %arg1: i32) -> (i32, i32) {
    %c0_i32 = arith.constant 0 : i32
    %c0_i32_0 = arith.constant 0 : i32
    %c0_i32_1 = arith.constant 0 : i32
    return %c0_i32, %c0_i32_0 : i32, i32
  }
  func.func @transform_6(%arg0: i32, %arg1: i32) -> (i32, i32, i32, i32) {
    %c0_i32 = arith.constant 0 : i32
    %c0_i32_0 = arith.constant 0 : i32
    %c0_i32_1 = arith.constant 0 : i32
    return %arg0, %arg1, %c0_i32, %c0_i32_0 : i32, i32, i32, i32
  }
}

module attributes {stable_mosaic.version = 11 : i64} {
  func.func @_convt_kernel(%arg0: i32, %arg1: i32, %arg2: memref<1x1x4x64xbf16, #tpu.memory_space<vmem>>, %arg3: memref<1x1x4x64xbf16, #tpu.memory_space<vmem>>, %arg4: memref<9x64x128xbf16, #tpu.memory_space<vmem>>, %arg5: memref<1x128xf32, #tpu.memory_space<vmem>>, %arg6: memref<1x2x5x64xbf16, #tpu.memory_space<vmem>>, %arg7: memref<5x128xf32, #tpu.memory_space<vmem>>) attributes {dimension_semantics = [#tpu.dimension_semantics<parallel>, #tpu.dimension_semantics<parallel>], iteration_bounds = array<i64: 2, 5>, scalar_prefetch = 0 : i64, scratch_operands = 1 : i64, tpu.core_type = #tpu.core_type<tc>, window_params = [{transform_indices = @transform_0, window_bounds = array<i64: 1, 1, 4, 64>}, {transform_indices = @transform_1, window_bounds = array<i64: 1, 1, 4, 64>}, {pipeline_mode = #tpu.pipeline_mode<synchronous>, transform_indices = @transform_2, window_bounds = array<i64: 9, 64, 128>}, {pipeline_mode = #tpu.pipeline_mode<synchronous>, transform_indices = @transform_3, window_bounds = array<i64: 1, 128>}, {transform_indices = @transform_4, window_bounds = array<i64: 1, 2, 5, 64>}]} {
    %c0 = arith.constant 0 : index
    %c0_0 = arith.constant 0 : index
    %0 = vector.load %arg5[%c0, %c0_0] : memref<1x128xf32, #tpu.memory_space<vmem>>, vector<1x128xf32>
    %c0_i32 = arith.constant 0 : i32
    %1 = arith.subi %arg1, %c0_i32 : i32
    %c0_i32_1 = arith.constant 0 : i32
    %2 = arith.cmpi sge, %1, %c0_i32_1 : i32
    %c4_i32 = arith.constant 4 : i32
    %3 = arith.cmpi slt, %1, %c4_i32 : i32
    %4 = arith.andi %2, %3 : i1
    %c0_2 = arith.constant 0 : index
    %c0_3 = arith.constant 0 : index
    %c0_4 = arith.constant 0 : index
    %c0_5 = arith.constant 0 : index
    %5 = vector.load %arg2[%c0_2, %c0_3, %c0_4, %c0_5] : memref<1x1x4x64xbf16, #tpu.memory_space<vmem>>, vector<1x1x4x64xbf16>
    %6 = vector.shape_cast %5 : vector<1x1x4x64xbf16> to vector<4x64xbf16>
    %cst = arith.constant 0.000000e+00 : bf16
    %7 = vector.broadcast %cst : bf16 to vector<4x64xbf16>
    %8 = arith.select %4, %6, %7 : vector<4x64xbf16>
    %c1_i32 = arith.constant 1 : i32
    %9 = arith.subi %arg1, %c1_i32 : i32
    %c0_i32_6 = arith.constant 0 : i32
    %10 = arith.cmpi sge, %9, %c0_i32_6 : i32
    %c4_i32_7 = arith.constant 4 : i32
    %11 = arith.cmpi slt, %9, %c4_i32_7 : i32
    %12 = arith.andi %10, %11 : i1
    %c0_8 = arith.constant 0 : index
    %c0_9 = arith.constant 0 : index
    %c0_10 = arith.constant 0 : index
    %c0_11 = arith.constant 0 : index
    %13 = vector.load %arg3[%c0_8, %c0_9, %c0_10, %c0_11] : memref<1x1x4x64xbf16, #tpu.memory_space<vmem>>, vector<1x1x4x64xbf16>
    %14 = vector.shape_cast %13 : vector<1x1x4x64xbf16> to vector<4x64xbf16>
    %cst_12 = arith.constant 0.000000e+00 : bf16
    %15 = vector.broadcast %cst_12 : bf16 to vector<4x64xbf16>
    %16 = arith.select %12, %14, %15 : vector<4x64xbf16>
    %17 = tpu.iota {dimensions = array<i32: 0>} : vector<5x1xi32>
    %c2_i32 = arith.constant 2 : i32
    %18 = arith.muli %arg1, %c2_i32 : i32
    %c0_i32_13 = arith.constant 0 : i32
    %19 = arith.addi %18, %c0_i32_13 : i32
    %c9_i32 = arith.constant 9 : i32
    %20 = arith.cmpi slt, %19, %c9_i32 : i32
    %21 = vector.shape_cast %0 : vector<1x128xf32> to vector<1x128xf32>
    %22 = vector.broadcast %21 : vector<1x128xf32> to vector<5x128xf32>
    %c0_14 = arith.constant 0 : index
    %c0_15 = arith.constant 0 : index
    %23 = vector.load %arg7[%c0_14, %c0_15] : memref<5x128xf32, #tpu.memory_space<vmem>>, vector<5x128xf32>
    tpu.vector_store %arg7[%c0_14, %c0_15], %22 {strides = array<i32>} : memref<5x128xf32, #tpu.memory_space<vmem>>, vector<5x128xf32>,
    %c0_16 = arith.constant 0 : index
    %c0_17 = arith.constant 0 : index
    %c0_18 = arith.constant 0 : index
    %24 = vector.load %arg4[%c0_16, %c0_17, %c0_18] : memref<9x64x128xbf16, #tpu.memory_space<vmem>>, vector<1x64x128xbf16>
    %25 = vector.shape_cast %24 : vector<1x64x128xbf16> to vector<64x128xbf16>
    %cst_19 = arith.constant dense<0.000000e+00> : vector<4x128xf32>
    %26 = tpu.matmul %8, %25, %cst_19 {dimension_numbers = #tpu.dot_dimension_numbers<[1], [0], [0], [1], [0, 0, 1, 1], [], []>} : vector<4x64xbf16>, vector<64x128xbf16>, vector<4x128xf32> -> vector<4x128xf32>
    %c0_20 = arith.constant 0 : index
    %c0_21 = arith.constant 0 : index
    %27 = vector.load %arg7[%c0_20, %c0_21] : memref<5x128xf32, #tpu.memory_space<vmem>>, vector<4x128xf32>
    %28 = arith.addf %27, %26 : vector<4x128xf32>
    %c0_22 = arith.constant 0 : index
    %c0_23 = arith.constant 0 : index
    %29 = vector.load %arg7[%c0_22, %c0_23] : memref<5x128xf32, #tpu.memory_space<vmem>>, vector<4x128xf32>
    tpu.vector_store %arg7[%c0_22, %c0_23], %28 {strides = array<i32>} : memref<5x128xf32, #tpu.memory_space<vmem>>, vector<4x128xf32>,
    %c2 = arith.constant 2 : index
    %c0_24 = arith.constant 0 : index
    %c0_25 = arith.constant 0 : index
    %30 = vector.load %arg4[%c2, %c0_24, %c0_25] : memref<9x64x128xbf16, #tpu.memory_space<vmem>>, vector<1x64x128xbf16>
    %31 = vector.shape_cast %30 : vector<1x64x128xbf16> to vector<64x128xbf16>
    %cst_26 = arith.constant dense<0.000000e+00> : vector<4x128xf32>
    %32 = tpu.matmul %8, %31, %cst_26 {dimension_numbers = #tpu.dot_dimension_numbers<[1], [0], [0], [1], [0, 0, 1, 1], [], []>} : vector<4x64xbf16>, vector<64x128xbf16>, vector<4x128xf32> -> vector<4x128xf32>
    %c1 = arith.constant 1 : index
    %c0_27 = arith.constant 0 : index
    %33 = vector.load %arg7[%c1, %c0_27] : memref<5x128xf32, #tpu.memory_space<vmem>>, vector<4x128xf32>
    %34 = arith.addf %33, %32 : vector<4x128xf32>
    %c1_28 = arith.constant 1 : index
    %c0_29 = arith.constant 0 : index
    %35 = vector.load %arg7[%c1_28, %c0_29] : memref<5x128xf32, #tpu.memory_space<vmem>>, vector<4x128xf32>
    tpu.vector_store %arg7[%c1_28, %c0_29], %34 {strides = array<i32>} : memref<5x128xf32, #tpu.memory_space<vmem>>, vector<4x128xf32>,
    %c6 = arith.constant 6 : index
    %c0_30 = arith.constant 0 : index
    %c0_31 = arith.constant 0 : index
    %36 = vector.load %arg4[%c6, %c0_30, %c0_31] : memref<9x64x128xbf16, #tpu.memory_space<vmem>>, vector<1x64x128xbf16>
    %37 = vector.shape_cast %36 : vector<1x64x128xbf16> to vector<64x128xbf16>
    %cst_32 = arith.constant dense<0.000000e+00> : vector<4x128xf32>
    %38 = tpu.matmul %16, %37, %cst_32 {dimension_numbers = #tpu.dot_dimension_numbers<[1], [0], [0], [1], [0, 0, 1, 1], [], []>} : vector<4x64xbf16>, vector<64x128xbf16>, vector<4x128xf32> -> vector<4x128xf32>
    %c0_33 = arith.constant 0 : index
    %c0_34 = arith.constant 0 : index
    %39 = vector.load %arg7[%c0_33, %c0_34] : memref<5x128xf32, #tpu.memory_space<vmem>>, vector<4x128xf32>
    %40 = arith.addf %39, %38 : vector<4x128xf32>
    %c0_35 = arith.constant 0 : index
    %c0_36 = arith.constant 0 : index
    %41 = vector.load %arg7[%c0_35, %c0_36] : memref<5x128xf32, #tpu.memory_space<vmem>>, vector<4x128xf32>
    tpu.vector_store %arg7[%c0_35, %c0_36], %40 {strides = array<i32>} : memref<5x128xf32, #tpu.memory_space<vmem>>, vector<4x128xf32>,
    %c8 = arith.constant 8 : index
    %c0_37 = arith.constant 0 : index
    %c0_38 = arith.constant 0 : index
    %42 = vector.load %arg4[%c8, %c0_37, %c0_38] : memref<9x64x128xbf16, #tpu.memory_space<vmem>>, vector<1x64x128xbf16>
    %43 = vector.shape_cast %42 : vector<1x64x128xbf16> to vector<64x128xbf16>
    %cst_39 = arith.constant dense<0.000000e+00> : vector<4x128xf32>
    %44 = tpu.matmul %16, %43, %cst_39 {dimension_numbers = #tpu.dot_dimension_numbers<[1], [0], [0], [1], [0, 0, 1, 1], [], []>} : vector<4x64xbf16>, vector<64x128xbf16>, vector<4x128xf32> -> vector<4x128xf32>
    %c1_40 = arith.constant 1 : index
    %c0_41 = arith.constant 0 : index
    %45 = vector.load %arg7[%c1_40, %c0_41] : memref<5x128xf32, #tpu.memory_space<vmem>>, vector<4x128xf32>
    %46 = arith.addf %45, %44 : vector<4x128xf32>
    %c1_42 = arith.constant 1 : index
    %c0_43 = arith.constant 0 : index
    %47 = vector.load %arg7[%c1_42, %c0_43] : memref<5x128xf32, #tpu.memory_space<vmem>>, vector<4x128xf32>
    tpu.vector_store %arg7[%c1_42, %c0_43], %46 {strides = array<i32>} : memref<5x128xf32, #tpu.memory_space<vmem>>, vector<4x128xf32>,
    %c0_44 = arith.constant 0 : index
    %c0_45 = arith.constant 0 : index
    %48 = vector.load %arg7[%c0_44, %c0_45] : memref<5x128xf32, #tpu.memory_space<vmem>>, vector<5x128xf32>
    %cst_46 = arith.constant 0.000000e+00 : f32
    %49 = vector.broadcast %cst_46 : f32 to vector<5x128xf32>
    %50 = arith.maximumf %48, %49 : vector<5x128xf32>
    %c5_i32 = arith.constant 5 : i32
    %51 = vector.broadcast %c5_i32 : i32 to vector<5x1xi32>
    %52 = arith.cmpi slt, %17, %51 : vector<5x1xi32>
    %53 = vector.broadcast %20 : i1 to vector<5x1xi1>
    %54 = arith.andi %52, %53 : vector<5x1xi1>
    %cst_47 = arith.constant 0.000000e+00 : f32
    %55 = vector.shape_cast %54 : vector<5x1xi1> to vector<5x1xi1>
    %56 = vector.broadcast %55 : vector<5x1xi1> to vector<5x128xi1>
    %57 = vector.broadcast %cst_47 : f32 to vector<5x128xf32>
    %58 = arith.select %56, %50, %57 : vector<5x128xi1>, vector<5x128xf32>
    %59 = vector.extract_strided_slice %58 {offsets = [0, 0], sizes = [5, 32], strides = [1, 1]} : vector<5x128xf32> to vector<5x32xf32>
    %60 = arith.truncf %59 : vector<5x32xf32> to vector<5x32xbf16>
    %c0_48 = arith.constant 0 : index
    %c0_49 = arith.constant 0 : index
    %c0_50 = arith.constant 0 : index
    %c0_51 = arith.constant 0 : index
    %61 = vector.load %arg6[%c0_48, %c0_49, %c0_50, %c0_51] : memref<1x2x5x64xbf16, #tpu.memory_space<vmem>>, vector<1x1x5x32xbf16>
    %62 = vector.shape_cast %61 : vector<1x1x5x32xbf16> to vector<5x32xbf16>
    %63 = vector.shape_cast %60 : vector<5x32xbf16> to vector<1x1x5x32xbf16>
    tpu.vector_store %arg6[%c0_48, %c0_49, %c0_50, %c0_51], %63 {strides = array<i32>} : memref<1x2x5x64xbf16, #tpu.memory_space<vmem>>, vector<1x1x5x32xbf16>,
    %64 = vector.shape_cast %0 : vector<1x128xf32> to vector<1x128xf32>
    %65 = vector.broadcast %64 : vector<1x128xf32> to vector<5x128xf32>
    %c0_52 = arith.constant 0 : index
    %c0_53 = arith.constant 0 : index
    %66 = vector.load %arg7[%c0_52, %c0_53] : memref<5x128xf32, #tpu.memory_space<vmem>>, vector<5x128xf32>
    tpu.vector_store %arg7[%c0_52, %c0_53], %65 {strides = array<i32>} : memref<5x128xf32, #tpu.memory_space<vmem>>, vector<5x128xf32>,
    %c1_54 = arith.constant 1 : index
    %c0_55 = arith.constant 0 : index
    %c0_56 = arith.constant 0 : index
    %67 = vector.load %arg4[%c1_54, %c0_55, %c0_56] : memref<9x64x128xbf16, #tpu.memory_space<vmem>>, vector<1x64x128xbf16>
    %68 = vector.shape_cast %67 : vector<1x64x128xbf16> to vector<64x128xbf16>
    %cst_57 = arith.constant dense<0.000000e+00> : vector<4x128xf32>
    %69 = tpu.matmul %8, %68, %cst_57 {dimension_numbers = #tpu.dot_dimension_numbers<[1], [0], [0], [1], [0, 0, 1, 1], [], []>} : vector<4x64xbf16>, vector<64x128xbf16>, vector<4x128xf32> -> vector<4x128xf32>
    %c0_58 = arith.constant 0 : index
    %c0_59 = arith.constant 0 : index
    %70 = vector.load %arg7[%c0_58, %c0_59] : memref<5x128xf32, #tpu.memory_space<vmem>>, vector<4x128xf32>
    %71 = arith.addf %70, %69 : vector<4x128xf32>
    %c0_60 = arith.constant 0 : index
    %c0_61 = arith.constant 0 : index
    %72 = vector.load %arg7[%c0_60, %c0_61] : memref<5x128xf32, #tpu.memory_space<vmem>>, vector<4x128xf32>
    tpu.vector_store %arg7[%c0_60, %c0_61], %71 {strides = array<i32>} : memref<5x128xf32, #tpu.memory_space<vmem>>, vector<4x128xf32>,
    %c7 = arith.constant 7 : index
    %c0_62 = arith.constant 0 : index
    %c0_63 = arith.constant 0 : index
    %73 = vector.load %arg4[%c7, %c0_62, %c0_63] : memref<9x64x128xbf16, #tpu.memory_space<vmem>>, vector<1x64x128xbf16>
    %74 = vector.shape_cast %73 : vector<1x64x128xbf16> to vector<64x128xbf16>
    %cst_64 = arith.constant dense<0.000000e+00> : vector<4x128xf32>
    %75 = tpu.matmul %16, %74, %cst_64 {dimension_numbers = #tpu.dot_dimension_numbers<[1], [0], [0], [1], [0, 0, 1, 1], [], []>} : vector<4x64xbf16>, vector<64x128xbf16>, vector<4x128xf32> -> vector<4x128xf32>
    %c0_65 = arith.constant 0 : index
    %c0_66 = arith.constant 0 : index
    %76 = vector.load %arg7[%c0_65, %c0_66] : memref<5x128xf32, #tpu.memory_space<vmem>>, vector<4x128xf32>
    %77 = arith.addf %76, %75 : vector<4x128xf32>
    %c0_67 = arith.constant 0 : index
    %c0_68 = arith.constant 0 : index
    %78 = vector.load %arg7[%c0_67, %c0_68] : memref<5x128xf32, #tpu.memory_space<vmem>>, vector<4x128xf32>
    tpu.vector_store %arg7[%c0_67, %c0_68], %77 {strides = array<i32>} : memref<5x128xf32, #tpu.memory_space<vmem>>, vector<4x128xf32>,
    %c0_69 = arith.constant 0 : index
    %c0_70 = arith.constant 0 : index
    %79 = vector.load %arg7[%c0_69, %c0_70] : memref<5x128xf32, #tpu.memory_space<vmem>>, vector<5x128xf32>
    %cst_71 = arith.constant 0.000000e+00 : f32
    %80 = vector.broadcast %cst_71 : f32 to vector<5x128xf32>
    %81 = arith.maximumf %79, %80 : vector<5x128xf32>
    %c4_i32_72 = arith.constant 4 : i32
    %82 = vector.broadcast %c4_i32_72 : i32 to vector<5x1xi32>
    %83 = arith.cmpi slt, %17, %82 : vector<5x1xi32>
    %84 = vector.broadcast %20 : i1 to vector<5x1xi1>
    %85 = arith.andi %83, %84 : vector<5x1xi1>
    %cst_73 = arith.constant 0.000000e+00 : f32
    %86 = vector.shape_cast %85 : vector<5x1xi1> to vector<5x1xi1>
    %87 = vector.broadcast %86 : vector<5x1xi1> to vector<5x128xi1>
    %88 = vector.broadcast %cst_73 : f32 to vector<5x128xf32>
    %89 = arith.select %87, %81, %88 : vector<5x128xi1>, vector<5x128xf32>
    %90 = vector.extract_strided_slice %89 {offsets = [0, 0], sizes = [5, 32], strides = [1, 1]} : vector<5x128xf32> to vector<5x32xf32>
    %91 = arith.truncf %90 : vector<5x32xf32> to vector<5x32xbf16>
    %c0_74 = arith.constant 0 : index
    %c0_75 = arith.constant 0 : index
    %c0_76 = arith.constant 0 : index
    %c32 = arith.constant 32 : index
    %92 = vector.load %arg6[%c0_74, %c0_75, %c0_76, %c32] : memref<1x2x5x64xbf16, #tpu.memory_space<vmem>>, vector<1x1x5x32xbf16>
    %93 = vector.shape_cast %92 : vector<1x1x5x32xbf16> to vector<5x32xbf16>
    %94 = vector.shape_cast %91 : vector<5x32xbf16> to vector<1x1x5x32xbf16>
    tpu.vector_store %arg6[%c0_74, %c0_75, %c0_76, %c32], %94 {strides = array<i32>} : memref<1x2x5x64xbf16, #tpu.memory_space<vmem>>, vector<1x1x5x32xbf16>,
    %c2_i32_77 = arith.constant 2 : i32
    %95 = arith.muli %arg1, %c2_i32_77 : i32
    %c1_i32_78 = arith.constant 1 : i32
    %96 = arith.addi %95, %c1_i32_78 : i32
    %c9_i32_79 = arith.constant 9 : i32
    %97 = arith.cmpi slt, %96, %c9_i32_79 : i32
    %98 = vector.shape_cast %0 : vector<1x128xf32> to vector<1x128xf32>
    %99 = vector.broadcast %98 : vector<1x128xf32> to vector<5x128xf32>
    %c0_80 = arith.constant 0 : index
    %c0_81 = arith.constant 0 : index
    %100 = vector.load %arg7[%c0_80, %c0_81] : memref<5x128xf32, #tpu.memory_space<vmem>>, vector<5x128xf32>
    tpu.vector_store %arg7[%c0_80, %c0_81], %99 {strides = array<i32>} : memref<5x128xf32, #tpu.memory_space<vmem>>, vector<5x128xf32>,
    %c3 = arith.constant 3 : index
    %c0_82 = arith.constant 0 : index
    %c0_83 = arith.constant 0 : index
    %101 = vector.load %arg4[%c3, %c0_82, %c0_83] : memref<9x64x128xbf16, #tpu.memory_space<vmem>>, vector<1x64x128xbf16>
    %102 = vector.shape_cast %101 : vector<1x64x128xbf16> to vector<64x128xbf16>
    %cst_84 = arith.constant dense<0.000000e+00> : vector<4x128xf32>
    %103 = tpu.matmul %8, %102, %cst_84 {dimension_numbers = #tpu.dot_dimension_numbers<[1], [0], [0], [1], [0, 0, 1, 1], [], []>} : vector<4x64xbf16>, vector<64x128xbf16>, vector<4x128xf32> -> vector<4x128xf32>
    %c0_85 = arith.constant 0 : index
    %c0_86 = arith.constant 0 : index
    %104 = vector.load %arg7[%c0_85, %c0_86] : memref<5x128xf32, #tpu.memory_space<vmem>>, vector<4x128xf32>
    %105 = arith.addf %104, %103 : vector<4x128xf32>
    %c0_87 = arith.constant 0 : index
    %c0_88 = arith.constant 0 : index
    %106 = vector.load %arg7[%c0_87, %c0_88] : memref<5x128xf32, #tpu.memory_space<vmem>>, vector<4x128xf32>
    tpu.vector_store %arg7[%c0_87, %c0_88], %105 {strides = array<i32>} : memref<5x128xf32, #tpu.memory_space<vmem>>, vector<4x128xf32>,
    %c5 = arith.constant 5 : index
    %c0_89 = arith.constant 0 : index
    %c0_90 = arith.constant 0 : index
    %107 = vector.load %arg4[%c5, %c0_89, %c0_90] : memref<9x64x128xbf16, #tpu.memory_space<vmem>>, vector<1x64x128xbf16>
    %108 = vector.shape_cast %107 : vector<1x64x128xbf16> to vector<64x128xbf16>
    %cst_91 = arith.constant dense<0.000000e+00> : vector<4x128xf32>
    %109 = tpu.matmul %8, %108, %cst_91 {dimension_numbers = #tpu.dot_dimension_numbers<[1], [0], [0], [1], [0, 0, 1, 1], [], []>} : vector<4x64xbf16>, vector<64x128xbf16>, vector<4x128xf32> -> vector<4x128xf32>
    %c1_92 = arith.constant 1 : index
    %c0_93 = arith.constant 0 : index
    %110 = vector.load %arg7[%c1_92, %c0_93] : memref<5x128xf32, #tpu.memory_space<vmem>>, vector<4x128xf32>
    %111 = arith.addf %110, %109 : vector<4x128xf32>
    %c1_94 = arith.constant 1 : index
    %c0_95 = arith.constant 0 : index
    %112 = vector.load %arg7[%c1_94, %c0_95] : memref<5x128xf32, #tpu.memory_space<vmem>>, vector<4x128xf32>
    tpu.vector_store %arg7[%c1_94, %c0_95], %111 {strides = array<i32>} : memref<5x128xf32, #tpu.memory_space<vmem>>, vector<4x128xf32>,
    %c0_96 = arith.constant 0 : index
    %c0_97 = arith.constant 0 : index
    %113 = vector.load %arg7[%c0_96, %c0_97] : memref<5x128xf32, #tpu.memory_space<vmem>>, vector<5x128xf32>
    %cst_98 = arith.constant 0.000000e+00 : f32
    %114 = vector.broadcast %cst_98 : f32 to vector<5x128xf32>
    %115 = arith.maximumf %113, %114 : vector<5x128xf32>
    %c5_i32_99 = arith.constant 5 : i32
    %116 = vector.broadcast %c5_i32_99 : i32 to vector<5x1xi32>
    %117 = arith.cmpi slt, %17, %116 : vector<5x1xi32>
    %118 = vector.broadcast %97 : i1 to vector<5x1xi1>
    %119 = arith.andi %117, %118 : vector<5x1xi1>
    %cst_100 = arith.constant 0.000000e+00 : f32
    %120 = vector.shape_cast %119 : vector<5x1xi1> to vector<5x1xi1>
    %121 = vector.broadcast %120 : vector<5x1xi1> to vector<5x128xi1>
    %122 = vector.broadcast %cst_100 : f32 to vector<5x128xf32>
    %123 = arith.select %121, %115, %122 : vector<5x128xi1>, vector<5x128xf32>
    %124 = vector.extract_strided_slice %123 {offsets = [0, 0], sizes = [5, 32], strides = [1, 1]} : vector<5x128xf32> to vector<5x32xf32>
    %125 = arith.truncf %124 : vector<5x32xf32> to vector<5x32xbf16>
    %c0_101 = arith.constant 0 : index
    %c1_102 = arith.constant 1 : index
    %c0_103 = arith.constant 0 : index
    %c0_104 = arith.constant 0 : index
    %126 = vector.load %arg6[%c0_101, %c1_102, %c0_103, %c0_104] : memref<1x2x5x64xbf16, #tpu.memory_space<vmem>>, vector<1x1x5x32xbf16>
    %127 = vector.shape_cast %126 : vector<1x1x5x32xbf16> to vector<5x32xbf16>
    %128 = vector.shape_cast %125 : vector<5x32xbf16> to vector<1x1x5x32xbf16>
    tpu.vector_store %arg6[%c0_101, %c1_102, %c0_103, %c0_104], %128 {strides = array<i32>} : memref<1x2x5x64xbf16, #tpu.memory_space<vmem>>, vector<1x1x5x32xbf16>,
    %129 = vector.shape_cast %0 : vector<1x128xf32> to vector<1x128xf32>
    %130 = vector.broadcast %129 : vector<1x128xf32> to vector<5x128xf32>
    %c0_105 = arith.constant 0 : index
    %c0_106 = arith.constant 0 : index
    %131 = vector.load %arg7[%c0_105, %c0_106] : memref<5x128xf32, #tpu.memory_space<vmem>>, vector<5x128xf32>
    tpu.vector_store %arg7[%c0_105, %c0_106], %130 {strides = array<i32>} : memref<5x128xf32, #tpu.memory_space<vmem>>, vector<5x128xf32>,
    %c4 = arith.constant 4 : index
    %c0_107 = arith.constant 0 : index
    %c0_108 = arith.constant 0 : index
    %132 = vector.load %arg4[%c4, %c0_107, %c0_108] : memref<9x64x128xbf16, #tpu.memory_space<vmem>>, vector<1x64x128xbf16>
    %133 = vector.shape_cast %132 : vector<1x64x128xbf16> to vector<64x128xbf16>
    %cst_109 = arith.constant dense<0.000000e+00> : vector<4x128xf32>
    %134 = tpu.matmul %8, %133, %cst_109 {dimension_numbers = #tpu.dot_dimension_numbers<[1], [0], [0], [1], [0, 0, 1, 1], [], []>} : vector<4x64xbf16>, vector<64x128xbf16>, vector<4x128xf32> -> vector<4x128xf32>
    %c0_110 = arith.constant 0 : index
    %c0_111 = arith.constant 0 : index
    %135 = vector.load %arg7[%c0_110, %c0_111] : memref<5x128xf32, #tpu.memory_space<vmem>>, vector<4x128xf32>
    %136 = arith.addf %135, %134 : vector<4x128xf32>
    %c0_112 = arith.constant 0 : index
    %c0_113 = arith.constant 0 : index
    %137 = vector.load %arg7[%c0_112, %c0_113] : memref<5x128xf32, #tpu.memory_space<vmem>>, vector<4x128xf32>
    tpu.vector_store %arg7[%c0_112, %c0_113], %136 {strides = array<i32>} : memref<5x128xf32, #tpu.memory_space<vmem>>, vector<4x128xf32>,
    %c0_114 = arith.constant 0 : index
    %c0_115 = arith.constant 0 : index
    %138 = vector.load %arg7[%c0_114, %c0_115] : memref<5x128xf32, #tpu.memory_space<vmem>>, vector<5x128xf32>
    %cst_116 = arith.constant 0.000000e+00 : f32
    %139 = vector.broadcast %cst_116 : f32 to vector<5x128xf32>
    %140 = arith.maximumf %138, %139 : vector<5x128xf32>
    %c4_i32_117 = arith.constant 4 : i32
    %141 = vector.broadcast %c4_i32_117 : i32 to vector<5x1xi32>
    %142 = arith.cmpi slt, %17, %141 : vector<5x1xi32>
    %143 = vector.broadcast %97 : i1 to vector<5x1xi1>
    %144 = arith.andi %142, %143 : vector<5x1xi1>
    %cst_118 = arith.constant 0.000000e+00 : f32
    %145 = vector.shape_cast %144 : vector<5x1xi1> to vector<5x1xi1>
    %146 = vector.broadcast %145 : vector<5x1xi1> to vector<5x128xi1>
    %147 = vector.broadcast %cst_118 : f32 to vector<5x128xf32>
    %148 = arith.select %146, %140, %147 : vector<5x128xi1>, vector<5x128xf32>
    %149 = vector.extract_strided_slice %148 {offsets = [0, 0], sizes = [5, 32], strides = [1, 1]} : vector<5x128xf32> to vector<5x32xf32>
    %150 = arith.truncf %149 : vector<5x32xf32> to vector<5x32xbf16>
    %c0_119 = arith.constant 0 : index
    %c1_120 = arith.constant 1 : index
    %c0_121 = arith.constant 0 : index
    %c32_122 = arith.constant 32 : index
    %151 = vector.load %arg6[%c0_119, %c1_120, %c0_121, %c32_122] : memref<1x2x5x64xbf16, #tpu.memory_space<vmem>>, vector<1x1x5x32xbf16>
    %152 = vector.shape_cast %151 : vector<1x1x5x32xbf16> to vector<5x32xbf16>
    %153 = vector.shape_cast %150 : vector<5x32xbf16> to vector<1x1x5x32xbf16>
    tpu.vector_store %arg6[%c0_119, %c1_120, %c0_121, %c32_122], %153 {strides = array<i32>} : memref<1x2x5x64xbf16, #tpu.memory_space<vmem>>, vector<1x1x5x32xbf16>,
    return
  }
  func.func @transform_0(%arg0: i32, %arg1: i32) -> (i32, i32, i32, i32) {
    %c0_i32 = arith.constant 0 : i32
    %0 = arith.subi %arg1, %c0_i32 : i32
    %c0_i32_0 = arith.constant 0 : i32
    %c3_i32 = arith.constant 3 : i32
    %1 = arith.maxsi %c0_i32_0, %0 : i32
    %2 = arith.minsi %c3_i32, %1 : i32
    %c0_i32_1 = arith.constant 0 : i32
    %c0_i32_2 = arith.constant 0 : i32
    %c0_i32_3 = arith.constant 0 : i32
    return %arg0, %2, %c0_i32_1, %c0_i32_2 : i32, i32, i32, i32
  }
  func.func @transform_1(%arg0: i32, %arg1: i32) -> (i32, i32, i32, i32) {
    %c1_i32 = arith.constant 1 : i32
    %0 = arith.subi %arg1, %c1_i32 : i32
    %c0_i32 = arith.constant 0 : i32
    %c3_i32 = arith.constant 3 : i32
    %1 = arith.maxsi %c0_i32, %0 : i32
    %2 = arith.minsi %c3_i32, %1 : i32
    %c0_i32_0 = arith.constant 0 : i32
    %c0_i32_1 = arith.constant 0 : i32
    %c0_i32_2 = arith.constant 0 : i32
    return %arg0, %2, %c0_i32_0, %c0_i32_1 : i32, i32, i32, i32
  }
  func.func @transform_2(%arg0: i32, %arg1: i32) -> (i32, i32, i32) {
    %c0_i32 = arith.constant 0 : i32
    %c0_i32_0 = arith.constant 0 : i32
    %c0_i32_1 = arith.constant 0 : i32
    %c0_i32_2 = arith.constant 0 : i32
    return %c0_i32, %c0_i32_0, %c0_i32_1 : i32, i32, i32
  }
  func.func @transform_3(%arg0: i32, %arg1: i32) -> (i32, i32) {
    %c0_i32 = arith.constant 0 : i32
    %c0_i32_0 = arith.constant 0 : i32
    %c0_i32_1 = arith.constant 0 : i32
    return %c0_i32, %c0_i32_0 : i32, i32
  }
  func.func @transform_4(%arg0: i32, %arg1: i32) -> (i32, i32, i32, i32) {
    %c0_i32 = arith.constant 0 : i32
    %c0_i32_0 = arith.constant 0 : i32
    %c0_i32_1 = arith.constant 0 : i32
    return %arg0, %arg1, %c0_i32, %c0_i32_0 : i32, i32, i32, i32
  }
}

module attributes {stable_mosaic.version = 11 : i64} {
  func.func @_convt_kernel(%arg0: i32, %arg1: i32, %arg2: memref<1x1x10x32xbf16, #tpu.memory_space<vmem>>, %arg3: memref<1x1x10x32xbf16, #tpu.memory_space<vmem>>, %arg4: memref<9x32x128xbf16, #tpu.memory_space<vmem>>, %arg5: memref<1x128xf32, #tpu.memory_space<vmem>>, %arg6: memref<1x2x11x32xbf16, #tpu.memory_space<vmem>>, %arg7: memref<11x128xf32, #tpu.memory_space<vmem>>) attributes {dimension_semantics = [#tpu.dimension_semantics<parallel>, #tpu.dimension_semantics<parallel>], iteration_bounds = array<i64: 2, 10>, scalar_prefetch = 0 : i64, scratch_operands = 1 : i64, tpu.core_type = #tpu.core_type<tc>, window_params = [{transform_indices = @transform_0, window_bounds = array<i64: 1, 1, 10, 32>}, {transform_indices = @transform_1, window_bounds = array<i64: 1, 1, 10, 32>}, {pipeline_mode = #tpu.pipeline_mode<synchronous>, transform_indices = @transform_2, window_bounds = array<i64: 9, 32, 128>}, {pipeline_mode = #tpu.pipeline_mode<synchronous>, transform_indices = @transform_3, window_bounds = array<i64: 1, 128>}, {transform_indices = @transform_4, window_bounds = array<i64: 1, 2, 11, 32>}]} {
    %c0 = arith.constant 0 : index
    %c0_0 = arith.constant 0 : index
    %0 = vector.load %arg5[%c0, %c0_0] : memref<1x128xf32, #tpu.memory_space<vmem>>, vector<1x128xf32>
    %c0_i32 = arith.constant 0 : i32
    %1 = arith.subi %arg1, %c0_i32 : i32
    %c0_i32_1 = arith.constant 0 : i32
    %2 = arith.cmpi sge, %1, %c0_i32_1 : i32
    %c9_i32 = arith.constant 9 : i32
    %3 = arith.cmpi slt, %1, %c9_i32 : i32
    %4 = arith.andi %2, %3 : i1
    %c0_2 = arith.constant 0 : index
    %c0_3 = arith.constant 0 : index
    %c0_4 = arith.constant 0 : index
    %c0_5 = arith.constant 0 : index
    %5 = vector.load %arg2[%c0_2, %c0_3, %c0_4, %c0_5] : memref<1x1x10x32xbf16, #tpu.memory_space<vmem>>, vector<1x1x10x32xbf16>
    %6 = vector.shape_cast %5 : vector<1x1x10x32xbf16> to vector<10x32xbf16>
    %cst = arith.constant 0.000000e+00 : bf16
    %7 = vector.broadcast %cst : bf16 to vector<10x32xbf16>
    %8 = arith.select %4, %6, %7 : vector<10x32xbf16>
    %c1_i32 = arith.constant 1 : i32
    %9 = arith.subi %arg1, %c1_i32 : i32
    %c0_i32_6 = arith.constant 0 : i32
    %10 = arith.cmpi sge, %9, %c0_i32_6 : i32
    %c9_i32_7 = arith.constant 9 : i32
    %11 = arith.cmpi slt, %9, %c9_i32_7 : i32
    %12 = arith.andi %10, %11 : i1
    %c0_8 = arith.constant 0 : index
    %c0_9 = arith.constant 0 : index
    %c0_10 = arith.constant 0 : index
    %c0_11 = arith.constant 0 : index
    %13 = vector.load %arg3[%c0_8, %c0_9, %c0_10, %c0_11] : memref<1x1x10x32xbf16, #tpu.memory_space<vmem>>, vector<1x1x10x32xbf16>
    %14 = vector.shape_cast %13 : vector<1x1x10x32xbf16> to vector<10x32xbf16>
    %cst_12 = arith.constant 0.000000e+00 : bf16
    %15 = vector.broadcast %cst_12 : bf16 to vector<10x32xbf16>
    %16 = arith.select %12, %14, %15 : vector<10x32xbf16>
    %17 = tpu.iota {dimensions = array<i32: 0>} : vector<11x1xi32>
    %c2_i32 = arith.constant 2 : i32
    %18 = arith.muli %arg1, %c2_i32 : i32
    %c0_i32_13 = arith.constant 0 : i32
    %19 = arith.addi %18, %c0_i32_13 : i32
    %c19_i32 = arith.constant 19 : i32
    %20 = arith.cmpi slt, %19, %c19_i32 : i32
    %21 = vector.shape_cast %0 : vector<1x128xf32> to vector<1x128xf32>
    %22 = vector.broadcast %21 : vector<1x128xf32> to vector<11x128xf32>
    %c0_14 = arith.constant 0 : index
    %c0_15 = arith.constant 0 : index
    %23 = vector.load %arg7[%c0_14, %c0_15] : memref<11x128xf32, #tpu.memory_space<vmem>>, vector<11x128xf32>
    tpu.vector_store %arg7[%c0_14, %c0_15], %22 {strides = array<i32>} : memref<11x128xf32, #tpu.memory_space<vmem>>, vector<11x128xf32>,
    %c0_16 = arith.constant 0 : index
    %c0_17 = arith.constant 0 : index
    %c0_18 = arith.constant 0 : index
    %24 = vector.load %arg4[%c0_16, %c0_17, %c0_18] : memref<9x32x128xbf16, #tpu.memory_space<vmem>>, vector<1x32x128xbf16>
    %25 = vector.shape_cast %24 : vector<1x32x128xbf16> to vector<32x128xbf16>
    %cst_19 = arith.constant dense<0.000000e+00> : vector<10x128xf32>
    %26 = tpu.matmul %8, %25, %cst_19 {dimension_numbers = #tpu.dot_dimension_numbers<[1], [0], [0], [1], [0, 0, 1, 1], [], []>} : vector<10x32xbf16>, vector<32x128xbf16>, vector<10x128xf32> -> vector<10x128xf32>
    %c0_20 = arith.constant 0 : index
    %c0_21 = arith.constant 0 : index
    %27 = vector.load %arg7[%c0_20, %c0_21] : memref<11x128xf32, #tpu.memory_space<vmem>>, vector<10x128xf32>
    %28 = arith.addf %27, %26 : vector<10x128xf32>
    %c0_22 = arith.constant 0 : index
    %c0_23 = arith.constant 0 : index
    %29 = vector.load %arg7[%c0_22, %c0_23] : memref<11x128xf32, #tpu.memory_space<vmem>>, vector<10x128xf32>
    tpu.vector_store %arg7[%c0_22, %c0_23], %28 {strides = array<i32>} : memref<11x128xf32, #tpu.memory_space<vmem>>, vector<10x128xf32>,
    %c2 = arith.constant 2 : index
    %c0_24 = arith.constant 0 : index
    %c0_25 = arith.constant 0 : index
    %30 = vector.load %arg4[%c2, %c0_24, %c0_25] : memref<9x32x128xbf16, #tpu.memory_space<vmem>>, vector<1x32x128xbf16>
    %31 = vector.shape_cast %30 : vector<1x32x128xbf16> to vector<32x128xbf16>
    %cst_26 = arith.constant dense<0.000000e+00> : vector<10x128xf32>
    %32 = tpu.matmul %8, %31, %cst_26 {dimension_numbers = #tpu.dot_dimension_numbers<[1], [0], [0], [1], [0, 0, 1, 1], [], []>} : vector<10x32xbf16>, vector<32x128xbf16>, vector<10x128xf32> -> vector<10x128xf32>
    %c1 = arith.constant 1 : index
    %c0_27 = arith.constant 0 : index
    %33 = vector.load %arg7[%c1, %c0_27] : memref<11x128xf32, #tpu.memory_space<vmem>>, vector<10x128xf32>
    %34 = arith.addf %33, %32 : vector<10x128xf32>
    %c1_28 = arith.constant 1 : index
    %c0_29 = arith.constant 0 : index
    %35 = vector.load %arg7[%c1_28, %c0_29] : memref<11x128xf32, #tpu.memory_space<vmem>>, vector<10x128xf32>
    tpu.vector_store %arg7[%c1_28, %c0_29], %34 {strides = array<i32>} : memref<11x128xf32, #tpu.memory_space<vmem>>, vector<10x128xf32>,
    %c6 = arith.constant 6 : index
    %c0_30 = arith.constant 0 : index
    %c0_31 = arith.constant 0 : index
    %36 = vector.load %arg4[%c6, %c0_30, %c0_31] : memref<9x32x128xbf16, #tpu.memory_space<vmem>>, vector<1x32x128xbf16>
    %37 = vector.shape_cast %36 : vector<1x32x128xbf16> to vector<32x128xbf16>
    %cst_32 = arith.constant dense<0.000000e+00> : vector<10x128xf32>
    %38 = tpu.matmul %16, %37, %cst_32 {dimension_numbers = #tpu.dot_dimension_numbers<[1], [0], [0], [1], [0, 0, 1, 1], [], []>} : vector<10x32xbf16>, vector<32x128xbf16>, vector<10x128xf32> -> vector<10x128xf32>
    %c0_33 = arith.constant 0 : index
    %c0_34 = arith.constant 0 : index
    %39 = vector.load %arg7[%c0_33, %c0_34] : memref<11x128xf32, #tpu.memory_space<vmem>>, vector<10x128xf32>
    %40 = arith.addf %39, %38 : vector<10x128xf32>
    %c0_35 = arith.constant 0 : index
    %c0_36 = arith.constant 0 : index
    %41 = vector.load %arg7[%c0_35, %c0_36] : memref<11x128xf32, #tpu.memory_space<vmem>>, vector<10x128xf32>
    tpu.vector_store %arg7[%c0_35, %c0_36], %40 {strides = array<i32>} : memref<11x128xf32, #tpu.memory_space<vmem>>, vector<10x128xf32>,
    %c8 = arith.constant 8 : index
    %c0_37 = arith.constant 0 : index
    %c0_38 = arith.constant 0 : index
    %42 = vector.load %arg4[%c8, %c0_37, %c0_38] : memref<9x32x128xbf16, #tpu.memory_space<vmem>>, vector<1x32x128xbf16>
    %43 = vector.shape_cast %42 : vector<1x32x128xbf16> to vector<32x128xbf16>
    %cst_39 = arith.constant dense<0.000000e+00> : vector<10x128xf32>
    %44 = tpu.matmul %16, %43, %cst_39 {dimension_numbers = #tpu.dot_dimension_numbers<[1], [0], [0], [1], [0, 0, 1, 1], [], []>} : vector<10x32xbf16>, vector<32x128xbf16>, vector<10x128xf32> -> vector<10x128xf32>
    %c1_40 = arith.constant 1 : index
    %c0_41 = arith.constant 0 : index
    %45 = vector.load %arg7[%c1_40, %c0_41] : memref<11x128xf32, #tpu.memory_space<vmem>>, vector<10x128xf32>
    %46 = arith.addf %45, %44 : vector<10x128xf32>
    %c1_42 = arith.constant 1 : index
    %c0_43 = arith.constant 0 : index
    %47 = vector.load %arg7[%c1_42, %c0_43] : memref<11x128xf32, #tpu.memory_space<vmem>>, vector<10x128xf32>
    tpu.vector_store %arg7[%c1_42, %c0_43], %46 {strides = array<i32>} : memref<11x128xf32, #tpu.memory_space<vmem>>, vector<10x128xf32>,
    %c0_44 = arith.constant 0 : index
    %c0_45 = arith.constant 0 : index
    %48 = vector.load %arg7[%c0_44, %c0_45] : memref<11x128xf32, #tpu.memory_space<vmem>>, vector<11x128xf32>
    %cst_46 = arith.constant 0.000000e+00 : f32
    %49 = vector.broadcast %cst_46 : f32 to vector<11x128xf32>
    %50 = arith.maximumf %48, %49 : vector<11x128xf32>
    %c10_i32 = arith.constant 10 : i32
    %51 = vector.broadcast %c10_i32 : i32 to vector<11x1xi32>
    %52 = arith.cmpi slt, %17, %51 : vector<11x1xi32>
    %53 = vector.broadcast %20 : i1 to vector<11x1xi1>
    %54 = arith.andi %52, %53 : vector<11x1xi1>
    %cst_47 = arith.constant 0.000000e+00 : f32
    %55 = vector.shape_cast %54 : vector<11x1xi1> to vector<11x1xi1>
    %56 = vector.broadcast %55 : vector<11x1xi1> to vector<11x128xi1>
    %57 = vector.broadcast %cst_47 : f32 to vector<11x128xf32>
    %58 = arith.select %56, %50, %57 : vector<11x128xi1>, vector<11x128xf32>
    %59 = vector.extract_strided_slice %58 {offsets = [0, 0], sizes = [11, 16], strides = [1, 1]} : vector<11x128xf32> to vector<11x16xf32>
    %60 = arith.truncf %59 : vector<11x16xf32> to vector<11x16xbf16>
    %c0_48 = arith.constant 0 : index
    %c0_49 = arith.constant 0 : index
    %c0_50 = arith.constant 0 : index
    %c0_51 = arith.constant 0 : index
    %61 = vector.load %arg6[%c0_48, %c0_49, %c0_50, %c0_51] : memref<1x2x11x32xbf16, #tpu.memory_space<vmem>>, vector<1x1x11x16xbf16>
    %62 = vector.shape_cast %61 : vector<1x1x11x16xbf16> to vector<11x16xbf16>
    %63 = vector.shape_cast %60 : vector<11x16xbf16> to vector<1x1x11x16xbf16>
    tpu.vector_store %arg6[%c0_48, %c0_49, %c0_50, %c0_51], %63 {strides = array<i32>} : memref<1x2x11x32xbf16, #tpu.memory_space<vmem>>, vector<1x1x11x16xbf16>,
    %64 = vector.shape_cast %0 : vector<1x128xf32> to vector<1x128xf32>
    %65 = vector.broadcast %64 : vector<1x128xf32> to vector<11x128xf32>
    %c0_52 = arith.constant 0 : index
    %c0_53 = arith.constant 0 : index
    %66 = vector.load %arg7[%c0_52, %c0_53] : memref<11x128xf32, #tpu.memory_space<vmem>>, vector<11x128xf32>
    tpu.vector_store %arg7[%c0_52, %c0_53], %65 {strides = array<i32>} : memref<11x128xf32, #tpu.memory_space<vmem>>, vector<11x128xf32>,
    %c1_54 = arith.constant 1 : index
    %c0_55 = arith.constant 0 : index
    %c0_56 = arith.constant 0 : index
    %67 = vector.load %arg4[%c1_54, %c0_55, %c0_56] : memref<9x32x128xbf16, #tpu.memory_space<vmem>>, vector<1x32x128xbf16>
    %68 = vector.shape_cast %67 : vector<1x32x128xbf16> to vector<32x128xbf16>
    %cst_57 = arith.constant dense<0.000000e+00> : vector<10x128xf32>
    %69 = tpu.matmul %8, %68, %cst_57 {dimension_numbers = #tpu.dot_dimension_numbers<[1], [0], [0], [1], [0, 0, 1, 1], [], []>} : vector<10x32xbf16>, vector<32x128xbf16>, vector<10x128xf32> -> vector<10x128xf32>
    %c0_58 = arith.constant 0 : index
    %c0_59 = arith.constant 0 : index
    %70 = vector.load %arg7[%c0_58, %c0_59] : memref<11x128xf32, #tpu.memory_space<vmem>>, vector<10x128xf32>
    %71 = arith.addf %70, %69 : vector<10x128xf32>
    %c0_60 = arith.constant 0 : index
    %c0_61 = arith.constant 0 : index
    %72 = vector.load %arg7[%c0_60, %c0_61] : memref<11x128xf32, #tpu.memory_space<vmem>>, vector<10x128xf32>
    tpu.vector_store %arg7[%c0_60, %c0_61], %71 {strides = array<i32>} : memref<11x128xf32, #tpu.memory_space<vmem>>, vector<10x128xf32>,
    %c7 = arith.constant 7 : index
    %c0_62 = arith.constant 0 : index
    %c0_63 = arith.constant 0 : index
    %73 = vector.load %arg4[%c7, %c0_62, %c0_63] : memref<9x32x128xbf16, #tpu.memory_space<vmem>>, vector<1x32x128xbf16>
    %74 = vector.shape_cast %73 : vector<1x32x128xbf16> to vector<32x128xbf16>
    %cst_64 = arith.constant dense<0.000000e+00> : vector<10x128xf32>
    %75 = tpu.matmul %16, %74, %cst_64 {dimension_numbers = #tpu.dot_dimension_numbers<[1], [0], [0], [1], [0, 0, 1, 1], [], []>} : vector<10x32xbf16>, vector<32x128xbf16>, vector<10x128xf32> -> vector<10x128xf32>
    %c0_65 = arith.constant 0 : index
    %c0_66 = arith.constant 0 : index
    %76 = vector.load %arg7[%c0_65, %c0_66] : memref<11x128xf32, #tpu.memory_space<vmem>>, vector<10x128xf32>
    %77 = arith.addf %76, %75 : vector<10x128xf32>
    %c0_67 = arith.constant 0 : index
    %c0_68 = arith.constant 0 : index
    %78 = vector.load %arg7[%c0_67, %c0_68] : memref<11x128xf32, #tpu.memory_space<vmem>>, vector<10x128xf32>
    tpu.vector_store %arg7[%c0_67, %c0_68], %77 {strides = array<i32>} : memref<11x128xf32, #tpu.memory_space<vmem>>, vector<10x128xf32>,
    %c0_69 = arith.constant 0 : index
    %c0_70 = arith.constant 0 : index
    %79 = vector.load %arg7[%c0_69, %c0_70] : memref<11x128xf32, #tpu.memory_space<vmem>>, vector<11x128xf32>
    %cst_71 = arith.constant 0.000000e+00 : f32
    %80 = vector.broadcast %cst_71 : f32 to vector<11x128xf32>
    %81 = arith.maximumf %79, %80 : vector<11x128xf32>
    %c9_i32_72 = arith.constant 9 : i32
    %82 = vector.broadcast %c9_i32_72 : i32 to vector<11x1xi32>
    %83 = arith.cmpi slt, %17, %82 : vector<11x1xi32>
    %84 = vector.broadcast %20 : i1 to vector<11x1xi1>
    %85 = arith.andi %83, %84 : vector<11x1xi1>
    %cst_73 = arith.constant 0.000000e+00 : f32
    %86 = vector.shape_cast %85 : vector<11x1xi1> to vector<11x1xi1>
    %87 = vector.broadcast %86 : vector<11x1xi1> to vector<11x128xi1>
    %88 = vector.broadcast %cst_73 : f32 to vector<11x128xf32>
    %89 = arith.select %87, %81, %88 : vector<11x128xi1>, vector<11x128xf32>
    %90 = vector.extract_strided_slice %89 {offsets = [0, 0], sizes = [11, 16], strides = [1, 1]} : vector<11x128xf32> to vector<11x16xf32>
    %91 = arith.truncf %90 : vector<11x16xf32> to vector<11x16xbf16>
    %c0_74 = arith.constant 0 : index
    %c0_75 = arith.constant 0 : index
    %c0_76 = arith.constant 0 : index
    %c16 = arith.constant 16 : index
    %92 = vector.load %arg6[%c0_74, %c0_75, %c0_76, %c16] : memref<1x2x11x32xbf16, #tpu.memory_space<vmem>>, vector<1x1x11x16xbf16>
    %93 = vector.shape_cast %92 : vector<1x1x11x16xbf16> to vector<11x16xbf16>
    %94 = vector.shape_cast %91 : vector<11x16xbf16> to vector<1x1x11x16xbf16>
    tpu.vector_store %arg6[%c0_74, %c0_75, %c0_76, %c16], %94 {strides = array<i32>} : memref<1x2x11x32xbf16, #tpu.memory_space<vmem>>, vector<1x1x11x16xbf16>,
    %c2_i32_77 = arith.constant 2 : i32
    %95 = arith.muli %arg1, %c2_i32_77 : i32
    %c1_i32_78 = arith.constant 1 : i32
    %96 = arith.addi %95, %c1_i32_78 : i32
    %c19_i32_79 = arith.constant 19 : i32
    %97 = arith.cmpi slt, %96, %c19_i32_79 : i32
    %98 = vector.shape_cast %0 : vector<1x128xf32> to vector<1x128xf32>
    %99 = vector.broadcast %98 : vector<1x128xf32> to vector<11x128xf32>
    %c0_80 = arith.constant 0 : index
    %c0_81 = arith.constant 0 : index
    %100 = vector.load %arg7[%c0_80, %c0_81] : memref<11x128xf32, #tpu.memory_space<vmem>>, vector<11x128xf32>
    tpu.vector_store %arg7[%c0_80, %c0_81], %99 {strides = array<i32>} : memref<11x128xf32, #tpu.memory_space<vmem>>, vector<11x128xf32>,
    %c3 = arith.constant 3 : index
    %c0_82 = arith.constant 0 : index
    %c0_83 = arith.constant 0 : index
    %101 = vector.load %arg4[%c3, %c0_82, %c0_83] : memref<9x32x128xbf16, #tpu.memory_space<vmem>>, vector<1x32x128xbf16>
    %102 = vector.shape_cast %101 : vector<1x32x128xbf16> to vector<32x128xbf16>
    %cst_84 = arith.constant dense<0.000000e+00> : vector<10x128xf32>
    %103 = tpu.matmul %8, %102, %cst_84 {dimension_numbers = #tpu.dot_dimension_numbers<[1], [0], [0], [1], [0, 0, 1, 1], [], []>} : vector<10x32xbf16>, vector<32x128xbf16>, vector<10x128xf32> -> vector<10x128xf32>
    %c0_85 = arith.constant 0 : index
    %c0_86 = arith.constant 0 : index
    %104 = vector.load %arg7[%c0_85, %c0_86] : memref<11x128xf32, #tpu.memory_space<vmem>>, vector<10x128xf32>
    %105 = arith.addf %104, %103 : vector<10x128xf32>
    %c0_87 = arith.constant 0 : index
    %c0_88 = arith.constant 0 : index
    %106 = vector.load %arg7[%c0_87, %c0_88] : memref<11x128xf32, #tpu.memory_space<vmem>>, vector<10x128xf32>
    tpu.vector_store %arg7[%c0_87, %c0_88], %105 {strides = array<i32>} : memref<11x128xf32, #tpu.memory_space<vmem>>, vector<10x128xf32>,
    %c5 = arith.constant 5 : index
    %c0_89 = arith.constant 0 : index
    %c0_90 = arith.constant 0 : index
    %107 = vector.load %arg4[%c5, %c0_89, %c0_90] : memref<9x32x128xbf16, #tpu.memory_space<vmem>>, vector<1x32x128xbf16>
    %108 = vector.shape_cast %107 : vector<1x32x128xbf16> to vector<32x128xbf16>
    %cst_91 = arith.constant dense<0.000000e+00> : vector<10x128xf32>
    %109 = tpu.matmul %8, %108, %cst_91 {dimension_numbers = #tpu.dot_dimension_numbers<[1], [0], [0], [1], [0, 0, 1, 1], [], []>} : vector<10x32xbf16>, vector<32x128xbf16>, vector<10x128xf32> -> vector<10x128xf32>
    %c1_92 = arith.constant 1 : index
    %c0_93 = arith.constant 0 : index
    %110 = vector.load %arg7[%c1_92, %c0_93] : memref<11x128xf32, #tpu.memory_space<vmem>>, vector<10x128xf32>
    %111 = arith.addf %110, %109 : vector<10x128xf32>
    %c1_94 = arith.constant 1 : index
    %c0_95 = arith.constant 0 : index
    %112 = vector.load %arg7[%c1_94, %c0_95] : memref<11x128xf32, #tpu.memory_space<vmem>>, vector<10x128xf32>
    tpu.vector_store %arg7[%c1_94, %c0_95], %111 {strides = array<i32>} : memref<11x128xf32, #tpu.memory_space<vmem>>, vector<10x128xf32>,
    %c0_96 = arith.constant 0 : index
    %c0_97 = arith.constant 0 : index
    %113 = vector.load %arg7[%c0_96, %c0_97] : memref<11x128xf32, #tpu.memory_space<vmem>>, vector<11x128xf32>
    %cst_98 = arith.constant 0.000000e+00 : f32
    %114 = vector.broadcast %cst_98 : f32 to vector<11x128xf32>
    %115 = arith.maximumf %113, %114 : vector<11x128xf32>
    %c10_i32_99 = arith.constant 10 : i32
    %116 = vector.broadcast %c10_i32_99 : i32 to vector<11x1xi32>
    %117 = arith.cmpi slt, %17, %116 : vector<11x1xi32>
    %118 = vector.broadcast %97 : i1 to vector<11x1xi1>
    %119 = arith.andi %117, %118 : vector<11x1xi1>
    %cst_100 = arith.constant 0.000000e+00 : f32
    %120 = vector.shape_cast %119 : vector<11x1xi1> to vector<11x1xi1>
    %121 = vector.broadcast %120 : vector<11x1xi1> to vector<11x128xi1>
    %122 = vector.broadcast %cst_100 : f32 to vector<11x128xf32>
    %123 = arith.select %121, %115, %122 : vector<11x128xi1>, vector<11x128xf32>
    %124 = vector.extract_strided_slice %123 {offsets = [0, 0], sizes = [11, 16], strides = [1, 1]} : vector<11x128xf32> to vector<11x16xf32>
    %125 = arith.truncf %124 : vector<11x16xf32> to vector<11x16xbf16>
    %c0_101 = arith.constant 0 : index
    %c1_102 = arith.constant 1 : index
    %c0_103 = arith.constant 0 : index
    %c0_104 = arith.constant 0 : index
    %126 = vector.load %arg6[%c0_101, %c1_102, %c0_103, %c0_104] : memref<1x2x11x32xbf16, #tpu.memory_space<vmem>>, vector<1x1x11x16xbf16>
    %127 = vector.shape_cast %126 : vector<1x1x11x16xbf16> to vector<11x16xbf16>
    %128 = vector.shape_cast %125 : vector<11x16xbf16> to vector<1x1x11x16xbf16>
    tpu.vector_store %arg6[%c0_101, %c1_102, %c0_103, %c0_104], %128 {strides = array<i32>} : memref<1x2x11x32xbf16, #tpu.memory_space<vmem>>, vector<1x1x11x16xbf16>,
    %129 = vector.shape_cast %0 : vector<1x128xf32> to vector<1x128xf32>
    %130 = vector.broadcast %129 : vector<1x128xf32> to vector<11x128xf32>
    %c0_105 = arith.constant 0 : index
    %c0_106 = arith.constant 0 : index
    %131 = vector.load %arg7[%c0_105, %c0_106] : memref<11x128xf32, #tpu.memory_space<vmem>>, vector<11x128xf32>
    tpu.vector_store %arg7[%c0_105, %c0_106], %130 {strides = array<i32>} : memref<11x128xf32, #tpu.memory_space<vmem>>, vector<11x128xf32>,
    %c4 = arith.constant 4 : index
    %c0_107 = arith.constant 0 : index
    %c0_108 = arith.constant 0 : index
    %132 = vector.load %arg4[%c4, %c0_107, %c0_108] : memref<9x32x128xbf16, #tpu.memory_space<vmem>>, vector<1x32x128xbf16>
    %133 = vector.shape_cast %132 : vector<1x32x128xbf16> to vector<32x128xbf16>
    %cst_109 = arith.constant dense<0.000000e+00> : vector<10x128xf32>
    %134 = tpu.matmul %8, %133, %cst_109 {dimension_numbers = #tpu.dot_dimension_numbers<[1], [0], [0], [1], [0, 0, 1, 1], [], []>} : vector<10x32xbf16>, vector<32x128xbf16>, vector<10x128xf32> -> vector<10x128xf32>
    %c0_110 = arith.constant 0 : index
    %c0_111 = arith.constant 0 : index
    %135 = vector.load %arg7[%c0_110, %c0_111] : memref<11x128xf32, #tpu.memory_space<vmem>>, vector<10x128xf32>
    %136 = arith.addf %135, %134 : vector<10x128xf32>
    %c0_112 = arith.constant 0 : index
    %c0_113 = arith.constant 0 : index
    %137 = vector.load %arg7[%c0_112, %c0_113] : memref<11x128xf32, #tpu.memory_space<vmem>>, vector<10x128xf32>
    tpu.vector_store %arg7[%c0_112, %c0_113], %136 {strides = array<i32>} : memref<11x128xf32, #tpu.memory_space<vmem>>, vector<10x128xf32>,
    %c0_114 = arith.constant 0 : index
    %c0_115 = arith.constant 0 : index
    %138 = vector.load %arg7[%c0_114, %c0_115] : memref<11x128xf32, #tpu.memory_space<vmem>>, vector<11x128xf32>
    %cst_116 = arith.constant 0.000000e+00 : f32
    %139 = vector.broadcast %cst_116 : f32 to vector<11x128xf32>
    %140 = arith.maximumf %138, %139 : vector<11x128xf32>
    %c9_i32_117 = arith.constant 9 : i32
    %141 = vector.broadcast %c9_i32_117 : i32 to vector<11x1xi32>
    %142 = arith.cmpi slt, %17, %141 : vector<11x1xi32>
    %143 = vector.broadcast %97 : i1 to vector<11x1xi1>
    %144 = arith.andi %142, %143 : vector<11x1xi1>
    %cst_118 = arith.constant 0.000000e+00 : f32
    %145 = vector.shape_cast %144 : vector<11x1xi1> to vector<11x1xi1>
    %146 = vector.broadcast %145 : vector<11x1xi1> to vector<11x128xi1>
    %147 = vector.broadcast %cst_118 : f32 to vector<11x128xf32>
    %148 = arith.select %146, %140, %147 : vector<11x128xi1>, vector<11x128xf32>
    %149 = vector.extract_strided_slice %148 {offsets = [0, 0], sizes = [11, 16], strides = [1, 1]} : vector<11x128xf32> to vector<11x16xf32>
    %150 = arith.truncf %149 : vector<11x16xf32> to vector<11x16xbf16>
    %c0_119 = arith.constant 0 : index
    %c1_120 = arith.constant 1 : index
    %c0_121 = arith.constant 0 : index
    %c16_122 = arith.constant 16 : index
    %151 = vector.load %arg6[%c0_119, %c1_120, %c0_121, %c16_122] : memref<1x2x11x32xbf16, #tpu.memory_space<vmem>>, vector<1x1x11x16xbf16>
    %152 = vector.shape_cast %151 : vector<1x1x11x16xbf16> to vector<11x16xbf16>
    %153 = vector.shape_cast %150 : vector<11x16xbf16> to vector<1x1x11x16xbf16>
    tpu.vector_store %arg6[%c0_119, %c1_120, %c0_121, %c16_122], %153 {strides = array<i32>} : memref<1x2x11x32xbf16, #tpu.memory_space<vmem>>, vector<1x1x11x16xbf16>,
    return
  }
  func.func @transform_0(%arg0: i32, %arg1: i32) -> (i32, i32, i32, i32) {
    %c0_i32 = arith.constant 0 : i32
    %0 = arith.subi %arg1, %c0_i32 : i32
    %c0_i32_0 = arith.constant 0 : i32
    %c8_i32 = arith.constant 8 : i32
    %1 = arith.maxsi %c0_i32_0, %0 : i32
    %2 = arith.minsi %c8_i32, %1 : i32
    %c0_i32_1 = arith.constant 0 : i32
    %c0_i32_2 = arith.constant 0 : i32
    %c0_i32_3 = arith.constant 0 : i32
    return %arg0, %2, %c0_i32_1, %c0_i32_2 : i32, i32, i32, i32
  }
  func.func @transform_1(%arg0: i32, %arg1: i32) -> (i32, i32, i32, i32) {
    %c1_i32 = arith.constant 1 : i32
    %0 = arith.subi %arg1, %c1_i32 : i32
    %c0_i32 = arith.constant 0 : i32
    %c8_i32 = arith.constant 8 : i32
    %1 = arith.maxsi %c0_i32, %0 : i32
    %2 = arith.minsi %c8_i32, %1 : i32
    %c0_i32_0 = arith.constant 0 : i32
    %c0_i32_1 = arith.constant 0 : i32
    %c0_i32_2 = arith.constant 0 : i32
    return %arg0, %2, %c0_i32_0, %c0_i32_1 : i32, i32, i32, i32
  }
  func.func @transform_2(%arg0: i32, %arg1: i32) -> (i32, i32, i32) {
    %c0_i32 = arith.constant 0 : i32
    %c0_i32_0 = arith.constant 0 : i32
    %c0_i32_1 = arith.constant 0 : i32
    %c0_i32_2 = arith.constant 0 : i32
    return %c0_i32, %c0_i32_0, %c0_i32_1 : i32, i32, i32
  }
  func.func @transform_3(%arg0: i32, %arg1: i32) -> (i32, i32) {
    %c0_i32 = arith.constant 0 : i32
    %c0_i32_0 = arith.constant 0 : i32
    %c0_i32_1 = arith.constant 0 : i32
    return %c0_i32, %c0_i32_0 : i32, i32
  }
  func.func @transform_4(%arg0: i32, %arg1: i32) -> (i32, i32, i32, i32) {
    %c0_i32 = arith.constant 0 : i32
    %c0_i32_0 = arith.constant 0 : i32
    %c0_i32_1 = arith.constant 0 : i32
    return %arg0, %arg1, %c0_i32, %c0_i32_0 : i32, i32, i32, i32
  }
}

module attributes {stable_mosaic.version = 11 : i64} {
  func.func @_convt_kernel(%arg0: i32, %arg1: i32, %arg2: memref<1x1x22x16xbf16, #tpu.memory_space<vmem>>, %arg3: memref<1x1x22x16xbf16, #tpu.memory_space<vmem>>, %arg4: memref<9x16x128xbf16, #tpu.memory_space<vmem>>, %arg5: memref<1x128xf32, #tpu.memory_space<vmem>>, %arg6: memref<1x2x23x6xf32, #tpu.memory_space<vmem>>, %arg7: memref<23x128xf32, #tpu.memory_space<vmem>>) attributes {dimension_semantics = [#tpu.dimension_semantics<parallel>, #tpu.dimension_semantics<parallel>], iteration_bounds = array<i64: 2, 20>, scalar_prefetch = 0 : i64, scratch_operands = 1 : i64, tpu.core_type = #tpu.core_type<tc>, window_params = [{transform_indices = @transform_0, window_bounds = array<i64: 1, 1, 22, 16>}, {transform_indices = @transform_1, window_bounds = array<i64: 1, 1, 22, 16>}, {pipeline_mode = #tpu.pipeline_mode<synchronous>, transform_indices = @transform_2, window_bounds = array<i64: 9, 16, 128>}, {pipeline_mode = #tpu.pipeline_mode<synchronous>, transform_indices = @transform_3, window_bounds = array<i64: 1, 128>}, {transform_indices = @transform_4, window_bounds = array<i64: 1, 2, 23, 6>}]} {
    %c0 = arith.constant 0 : index
    %c0_0 = arith.constant 0 : index
    %0 = vector.load %arg5[%c0, %c0_0] : memref<1x128xf32, #tpu.memory_space<vmem>>, vector<1x128xf32>
    %c0_i32 = arith.constant 0 : i32
    %1 = arith.subi %arg1, %c0_i32 : i32
    %c0_i32_1 = arith.constant 0 : i32
    %2 = arith.cmpi sge, %1, %c0_i32_1 : i32
    %c19_i32 = arith.constant 19 : i32
    %3 = arith.cmpi slt, %1, %c19_i32 : i32
    %4 = arith.andi %2, %3 : i1
    %c0_2 = arith.constant 0 : index
    %c0_3 = arith.constant 0 : index
    %c0_4 = arith.constant 0 : index
    %c0_5 = arith.constant 0 : index
    %5 = vector.load %arg2[%c0_2, %c0_3, %c0_4, %c0_5] : memref<1x1x22x16xbf16, #tpu.memory_space<vmem>>, vector<1x1x22x16xbf16>
    %6 = vector.shape_cast %5 : vector<1x1x22x16xbf16> to vector<22x16xbf16>
    %cst = arith.constant 0.000000e+00 : bf16
    %7 = vector.broadcast %cst : bf16 to vector<22x16xbf16>
    %8 = arith.select %4, %6, %7 : vector<22x16xbf16>
    %c1_i32 = arith.constant 1 : i32
    %9 = arith.subi %arg1, %c1_i32 : i32
    %c0_i32_6 = arith.constant 0 : i32
    %10 = arith.cmpi sge, %9, %c0_i32_6 : i32
    %c19_i32_7 = arith.constant 19 : i32
    %11 = arith.cmpi slt, %9, %c19_i32_7 : i32
    %12 = arith.andi %10, %11 : i1
    %c0_8 = arith.constant 0 : index
    %c0_9 = arith.constant 0 : index
    %c0_10 = arith.constant 0 : index
    %c0_11 = arith.constant 0 : index
    %13 = vector.load %arg3[%c0_8, %c0_9, %c0_10, %c0_11] : memref<1x1x22x16xbf16, #tpu.memory_space<vmem>>, vector<1x1x22x16xbf16>
    %14 = vector.shape_cast %13 : vector<1x1x22x16xbf16> to vector<22x16xbf16>
    %cst_12 = arith.constant 0.000000e+00 : bf16
    %15 = vector.broadcast %cst_12 : bf16 to vector<22x16xbf16>
    %16 = arith.select %12, %14, %15 : vector<22x16xbf16>
    %17 = tpu.iota {dimensions = array<i32: 0>} : vector<23x1xi32>
    %c2_i32 = arith.constant 2 : i32
    %18 = arith.muli %arg1, %c2_i32 : i32
    %c0_i32_13 = arith.constant 0 : i32
    %19 = arith.addi %18, %c0_i32_13 : i32
    %c39_i32 = arith.constant 39 : i32
    %20 = arith.cmpi slt, %19, %c39_i32 : i32
    %21 = vector.shape_cast %0 : vector<1x128xf32> to vector<1x128xf32>
    %22 = vector.broadcast %21 : vector<1x128xf32> to vector<23x128xf32>
    %c0_14 = arith.constant 0 : index
    %c0_15 = arith.constant 0 : index
    %23 = vector.load %arg7[%c0_14, %c0_15] : memref<23x128xf32, #tpu.memory_space<vmem>>, vector<23x128xf32>
    tpu.vector_store %arg7[%c0_14, %c0_15], %22 {strides = array<i32>} : memref<23x128xf32, #tpu.memory_space<vmem>>, vector<23x128xf32>,
    %c0_16 = arith.constant 0 : index
    %c0_17 = arith.constant 0 : index
    %c0_18 = arith.constant 0 : index
    %24 = vector.load %arg4[%c0_16, %c0_17, %c0_18] : memref<9x16x128xbf16, #tpu.memory_space<vmem>>, vector<1x16x128xbf16>
    %25 = vector.shape_cast %24 : vector<1x16x128xbf16> to vector<16x128xbf16>
    %cst_19 = arith.constant dense<0.000000e+00> : vector<22x128xf32>
    %26 = tpu.matmul %8, %25, %cst_19 {dimension_numbers = #tpu.dot_dimension_numbers<[1], [0], [0], [1], [0, 0, 1, 1], [], []>} : vector<22x16xbf16>, vector<16x128xbf16>, vector<22x128xf32> -> vector<22x128xf32>
    %c0_20 = arith.constant 0 : index
    %c0_21 = arith.constant 0 : index
    %27 = vector.load %arg7[%c0_20, %c0_21] : memref<23x128xf32, #tpu.memory_space<vmem>>, vector<22x128xf32>
    %28 = arith.addf %27, %26 : vector<22x128xf32>
    %c0_22 = arith.constant 0 : index
    %c0_23 = arith.constant 0 : index
    %29 = vector.load %arg7[%c0_22, %c0_23] : memref<23x128xf32, #tpu.memory_space<vmem>>, vector<22x128xf32>
    tpu.vector_store %arg7[%c0_22, %c0_23], %28 {strides = array<i32>} : memref<23x128xf32, #tpu.memory_space<vmem>>, vector<22x128xf32>,
    %c2 = arith.constant 2 : index
    %c0_24 = arith.constant 0 : index
    %c0_25 = arith.constant 0 : index
    %30 = vector.load %arg4[%c2, %c0_24, %c0_25] : memref<9x16x128xbf16, #tpu.memory_space<vmem>>, vector<1x16x128xbf16>
    %31 = vector.shape_cast %30 : vector<1x16x128xbf16> to vector<16x128xbf16>
    %cst_26 = arith.constant dense<0.000000e+00> : vector<22x128xf32>
    %32 = tpu.matmul %8, %31, %cst_26 {dimension_numbers = #tpu.dot_dimension_numbers<[1], [0], [0], [1], [0, 0, 1, 1], [], []>} : vector<22x16xbf16>, vector<16x128xbf16>, vector<22x128xf32> -> vector<22x128xf32>
    %c1 = arith.constant 1 : index
    %c0_27 = arith.constant 0 : index
    %33 = vector.load %arg7[%c1, %c0_27] : memref<23x128xf32, #tpu.memory_space<vmem>>, vector<22x128xf32>
    %34 = arith.addf %33, %32 : vector<22x128xf32>
    %c1_28 = arith.constant 1 : index
    %c0_29 = arith.constant 0 : index
    %35 = vector.load %arg7[%c1_28, %c0_29] : memref<23x128xf32, #tpu.memory_space<vmem>>, vector<22x128xf32>
    tpu.vector_store %arg7[%c1_28, %c0_29], %34 {strides = array<i32>} : memref<23x128xf32, #tpu.memory_space<vmem>>, vector<22x128xf32>,
    %c6 = arith.constant 6 : index
    %c0_30 = arith.constant 0 : index
    %c0_31 = arith.constant 0 : index
    %36 = vector.load %arg4[%c6, %c0_30, %c0_31] : memref<9x16x128xbf16, #tpu.memory_space<vmem>>, vector<1x16x128xbf16>
    %37 = vector.shape_cast %36 : vector<1x16x128xbf16> to vector<16x128xbf16>
    %cst_32 = arith.constant dense<0.000000e+00> : vector<22x128xf32>
    %38 = tpu.matmul %16, %37, %cst_32 {dimension_numbers = #tpu.dot_dimension_numbers<[1], [0], [0], [1], [0, 0, 1, 1], [], []>} : vector<22x16xbf16>, vector<16x128xbf16>, vector<22x128xf32> -> vector<22x128xf32>
    %c0_33 = arith.constant 0 : index
    %c0_34 = arith.constant 0 : index
    %39 = vector.load %arg7[%c0_33, %c0_34] : memref<23x128xf32, #tpu.memory_space<vmem>>, vector<22x128xf32>
    %40 = arith.addf %39, %38 : vector<22x128xf32>
    %c0_35 = arith.constant 0 : index
    %c0_36 = arith.constant 0 : index
    %41 = vector.load %arg7[%c0_35, %c0_36] : memref<23x128xf32, #tpu.memory_space<vmem>>, vector<22x128xf32>
    tpu.vector_store %arg7[%c0_35, %c0_36], %40 {strides = array<i32>} : memref<23x128xf32, #tpu.memory_space<vmem>>, vector<22x128xf32>,
    %c8 = arith.constant 8 : index
    %c0_37 = arith.constant 0 : index
    %c0_38 = arith.constant 0 : index
    %42 = vector.load %arg4[%c8, %c0_37, %c0_38] : memref<9x16x128xbf16, #tpu.memory_space<vmem>>, vector<1x16x128xbf16>
    %43 = vector.shape_cast %42 : vector<1x16x128xbf16> to vector<16x128xbf16>
    %cst_39 = arith.constant dense<0.000000e+00> : vector<22x128xf32>
    %44 = tpu.matmul %16, %43, %cst_39 {dimension_numbers = #tpu.dot_dimension_numbers<[1], [0], [0], [1], [0, 0, 1, 1], [], []>} : vector<22x16xbf16>, vector<16x128xbf16>, vector<22x128xf32> -> vector<22x128xf32>
    %c1_40 = arith.constant 1 : index
    %c0_41 = arith.constant 0 : index
    %45 = vector.load %arg7[%c1_40, %c0_41] : memref<23x128xf32, #tpu.memory_space<vmem>>, vector<22x128xf32>
    %46 = arith.addf %45, %44 : vector<22x128xf32>
    %c1_42 = arith.constant 1 : index
    %c0_43 = arith.constant 0 : index
    %47 = vector.load %arg7[%c1_42, %c0_43] : memref<23x128xf32, #tpu.memory_space<vmem>>, vector<22x128xf32>
    tpu.vector_store %arg7[%c1_42, %c0_43], %46 {strides = array<i32>} : memref<23x128xf32, #tpu.memory_space<vmem>>, vector<22x128xf32>,
    %c0_44 = arith.constant 0 : index
    %c0_45 = arith.constant 0 : index
    %48 = vector.load %arg7[%c0_44, %c0_45] : memref<23x128xf32, #tpu.memory_space<vmem>>, vector<23x128xf32>
    %c20_i32 = arith.constant 20 : i32
    %49 = vector.broadcast %c20_i32 : i32 to vector<23x1xi32>
    %50 = arith.cmpi slt, %17, %49 : vector<23x1xi32>
    %51 = vector.broadcast %20 : i1 to vector<23x1xi1>
    %52 = arith.andi %50, %51 : vector<23x1xi1>
    %cst_46 = arith.constant 0.000000e+00 : f32
    %53 = vector.shape_cast %52 : vector<23x1xi1> to vector<23x1xi1>
    %54 = vector.broadcast %53 : vector<23x1xi1> to vector<23x128xi1>
    %55 = vector.broadcast %cst_46 : f32 to vector<23x128xf32>
    %56 = arith.select %54, %48, %55 : vector<23x128xi1>, vector<23x128xf32>
    %57 = vector.extract_strided_slice %56 {offsets = [0, 0], sizes = [23, 3], strides = [1, 1]} : vector<23x128xf32> to vector<23x3xf32>
    %c0_47 = arith.constant 0 : index
    %c0_48 = arith.constant 0 : index
    %c0_49 = arith.constant 0 : index
    %c0_50 = arith.constant 0 : index
    %58 = vector.load %arg6[%c0_47, %c0_48, %c0_49, %c0_50] : memref<1x2x23x6xf32, #tpu.memory_space<vmem>>, vector<1x1x23x3xf32>
    %59 = vector.shape_cast %58 : vector<1x1x23x3xf32> to vector<23x3xf32>
    %60 = vector.shape_cast %57 : vector<23x3xf32> to vector<1x1x23x3xf32>
    tpu.vector_store %arg6[%c0_47, %c0_48, %c0_49, %c0_50], %60 {strides = array<i32>} : memref<1x2x23x6xf32, #tpu.memory_space<vmem>>, vector<1x1x23x3xf32>,
    %61 = vector.shape_cast %0 : vector<1x128xf32> to vector<1x128xf32>
    %62 = vector.broadcast %61 : vector<1x128xf32> to vector<23x128xf32>
    %c0_51 = arith.constant 0 : index
    %c0_52 = arith.constant 0 : index
    %63 = vector.load %arg7[%c0_51, %c0_52] : memref<23x128xf32, #tpu.memory_space<vmem>>, vector<23x128xf32>
    tpu.vector_store %arg7[%c0_51, %c0_52], %62 {strides = array<i32>} : memref<23x128xf32, #tpu.memory_space<vmem>>, vector<23x128xf32>,
    %c1_53 = arith.constant 1 : index
    %c0_54 = arith.constant 0 : index
    %c0_55 = arith.constant 0 : index
    %64 = vector.load %arg4[%c1_53, %c0_54, %c0_55] : memref<9x16x128xbf16, #tpu.memory_space<vmem>>, vector<1x16x128xbf16>
    %65 = vector.shape_cast %64 : vector<1x16x128xbf16> to vector<16x128xbf16>
    %cst_56 = arith.constant dense<0.000000e+00> : vector<22x128xf32>
    %66 = tpu.matmul %8, %65, %cst_56 {dimension_numbers = #tpu.dot_dimension_numbers<[1], [0], [0], [1], [0, 0, 1, 1], [], []>} : vector<22x16xbf16>, vector<16x128xbf16>, vector<22x128xf32> -> vector<22x128xf32>
    %c0_57 = arith.constant 0 : index
    %c0_58 = arith.constant 0 : index
    %67 = vector.load %arg7[%c0_57, %c0_58] : memref<23x128xf32, #tpu.memory_space<vmem>>, vector<22x128xf32>
    %68 = arith.addf %67, %66 : vector<22x128xf32>
    %c0_59 = arith.constant 0 : index
    %c0_60 = arith.constant 0 : index
    %69 = vector.load %arg7[%c0_59, %c0_60] : memref<23x128xf32, #tpu.memory_space<vmem>>, vector<22x128xf32>
    tpu.vector_store %arg7[%c0_59, %c0_60], %68 {strides = array<i32>} : memref<23x128xf32, #tpu.memory_space<vmem>>, vector<22x128xf32>,
    %c7 = arith.constant 7 : index
    %c0_61 = arith.constant 0 : index
    %c0_62 = arith.constant 0 : index
    %70 = vector.load %arg4[%c7, %c0_61, %c0_62] : memref<9x16x128xbf16, #tpu.memory_space<vmem>>, vector<1x16x128xbf16>
    %71 = vector.shape_cast %70 : vector<1x16x128xbf16> to vector<16x128xbf16>
    %cst_63 = arith.constant dense<0.000000e+00> : vector<22x128xf32>
    %72 = tpu.matmul %16, %71, %cst_63 {dimension_numbers = #tpu.dot_dimension_numbers<[1], [0], [0], [1], [0, 0, 1, 1], [], []>} : vector<22x16xbf16>, vector<16x128xbf16>, vector<22x128xf32> -> vector<22x128xf32>
    %c0_64 = arith.constant 0 : index
    %c0_65 = arith.constant 0 : index
    %73 = vector.load %arg7[%c0_64, %c0_65] : memref<23x128xf32, #tpu.memory_space<vmem>>, vector<22x128xf32>
    %74 = arith.addf %73, %72 : vector<22x128xf32>
    %c0_66 = arith.constant 0 : index
    %c0_67 = arith.constant 0 : index
    %75 = vector.load %arg7[%c0_66, %c0_67] : memref<23x128xf32, #tpu.memory_space<vmem>>, vector<22x128xf32>
    tpu.vector_store %arg7[%c0_66, %c0_67], %74 {strides = array<i32>} : memref<23x128xf32, #tpu.memory_space<vmem>>, vector<22x128xf32>,
    %c0_68 = arith.constant 0 : index
    %c0_69 = arith.constant 0 : index
    %76 = vector.load %arg7[%c0_68, %c0_69] : memref<23x128xf32, #tpu.memory_space<vmem>>, vector<23x128xf32>
    %c19_i32_70 = arith.constant 19 : i32
    %77 = vector.broadcast %c19_i32_70 : i32 to vector<23x1xi32>
    %78 = arith.cmpi slt, %17, %77 : vector<23x1xi32>
    %79 = vector.broadcast %20 : i1 to vector<23x1xi1>
    %80 = arith.andi %78, %79 : vector<23x1xi1>
    %cst_71 = arith.constant 0.000000e+00 : f32
    %81 = vector.shape_cast %80 : vector<23x1xi1> to vector<23x1xi1>
    %82 = vector.broadcast %81 : vector<23x1xi1> to vector<23x128xi1>
    %83 = vector.broadcast %cst_71 : f32 to vector<23x128xf32>
    %84 = arith.select %82, %76, %83 : vector<23x128xi1>, vector<23x128xf32>
    %85 = vector.extract_strided_slice %84 {offsets = [0, 0], sizes = [23, 3], strides = [1, 1]} : vector<23x128xf32> to vector<23x3xf32>
    %c0_72 = arith.constant 0 : index
    %c0_73 = arith.constant 0 : index
    %c0_74 = arith.constant 0 : index
    %c3 = arith.constant 3 : index
    %86 = vector.load %arg6[%c0_72, %c0_73, %c0_74, %c3] : memref<1x2x23x6xf32, #tpu.memory_space<vmem>>, vector<1x1x23x3xf32>
    %87 = vector.shape_cast %86 : vector<1x1x23x3xf32> to vector<23x3xf32>
    %88 = vector.shape_cast %85 : vector<23x3xf32> to vector<1x1x23x3xf32>
    tpu.vector_store %arg6[%c0_72, %c0_73, %c0_74, %c3], %88 {strides = array<i32>} : memref<1x2x23x6xf32, #tpu.memory_space<vmem>>, vector<1x1x23x3xf32>,
    %c2_i32_75 = arith.constant 2 : i32
    %89 = arith.muli %arg1, %c2_i32_75 : i32
    %c1_i32_76 = arith.constant 1 : i32
    %90 = arith.addi %89, %c1_i32_76 : i32
    %c39_i32_77 = arith.constant 39 : i32
    %91 = arith.cmpi slt, %90, %c39_i32_77 : i32
    %92 = vector.shape_cast %0 : vector<1x128xf32> to vector<1x128xf32>
    %93 = vector.broadcast %92 : vector<1x128xf32> to vector<23x128xf32>
    %c0_78 = arith.constant 0 : index
    %c0_79 = arith.constant 0 : index
    %94 = vector.load %arg7[%c0_78, %c0_79] : memref<23x128xf32, #tpu.memory_space<vmem>>, vector<23x128xf32>
    tpu.vector_store %arg7[%c0_78, %c0_79], %93 {strides = array<i32>} : memref<23x128xf32, #tpu.memory_space<vmem>>, vector<23x128xf32>,
    %c3_80 = arith.constant 3 : index
    %c0_81 = arith.constant 0 : index
    %c0_82 = arith.constant 0 : index
    %95 = vector.load %arg4[%c3_80, %c0_81, %c0_82] : memref<9x16x128xbf16, #tpu.memory_space<vmem>>, vector<1x16x128xbf16>
    %96 = vector.shape_cast %95 : vector<1x16x128xbf16> to vector<16x128xbf16>
    %cst_83 = arith.constant dense<0.000000e+00> : vector<22x128xf32>
    %97 = tpu.matmul %8, %96, %cst_83 {dimension_numbers = #tpu.dot_dimension_numbers<[1], [0], [0], [1], [0, 0, 1, 1], [], []>} : vector<22x16xbf16>, vector<16x128xbf16>, vector<22x128xf32> -> vector<22x128xf32>
    %c0_84 = arith.constant 0 : index
    %c0_85 = arith.constant 0 : index
    %98 = vector.load %arg7[%c0_84, %c0_85] : memref<23x128xf32, #tpu.memory_space<vmem>>, vector<22x128xf32>
    %99 = arith.addf %98, %97 : vector<22x128xf32>
    %c0_86 = arith.constant 0 : index
    %c0_87 = arith.constant 0 : index
    %100 = vector.load %arg7[%c0_86, %c0_87] : memref<23x128xf32, #tpu.memory_space<vmem>>, vector<22x128xf32>
    tpu.vector_store %arg7[%c0_86, %c0_87], %99 {strides = array<i32>} : memref<23x128xf32, #tpu.memory_space<vmem>>, vector<22x128xf32>,
    %c5 = arith.constant 5 : index
    %c0_88 = arith.constant 0 : index
    %c0_89 = arith.constant 0 : index
    %101 = vector.load %arg4[%c5, %c0_88, %c0_89] : memref<9x16x128xbf16, #tpu.memory_space<vmem>>, vector<1x16x128xbf16>
    %102 = vector.shape_cast %101 : vector<1x16x128xbf16> to vector<16x128xbf16>
    %cst_90 = arith.constant dense<0.000000e+00> : vector<22x128xf32>
    %103 = tpu.matmul %8, %102, %cst_90 {dimension_numbers = #tpu.dot_dimension_numbers<[1], [0], [0], [1], [0, 0, 1, 1], [], []>} : vector<22x16xbf16>, vector<16x128xbf16>, vector<22x128xf32> -> vector<22x128xf32>
    %c1_91 = arith.constant 1 : index
    %c0_92 = arith.constant 0 : index
    %104 = vector.load %arg7[%c1_91, %c0_92] : memref<23x128xf32, #tpu.memory_space<vmem>>, vector<22x128xf32>
    %105 = arith.addf %104, %103 : vector<22x128xf32>
    %c1_93 = arith.constant 1 : index
    %c0_94 = arith.constant 0 : index
    %106 = vector.load %arg7[%c1_93, %c0_94] : memref<23x128xf32, #tpu.memory_space<vmem>>, vector<22x128xf32>
    tpu.vector_store %arg7[%c1_93, %c0_94], %105 {strides = array<i32>} : memref<23x128xf32, #tpu.memory_space<vmem>>, vector<22x128xf32>,
    %c0_95 = arith.constant 0 : index
    %c0_96 = arith.constant 0 : index
    %107 = vector.load %arg7[%c0_95, %c0_96] : memref<23x128xf32, #tpu.memory_space<vmem>>, vector<23x128xf32>
    %c20_i32_97 = arith.constant 20 : i32
    %108 = vector.broadcast %c20_i32_97 : i32 to vector<23x1xi32>
    %109 = arith.cmpi slt, %17, %108 : vector<23x1xi32>
    %110 = vector.broadcast %91 : i1 to vector<23x1xi1>
    %111 = arith.andi %109, %110 : vector<23x1xi1>
    %cst_98 = arith.constant 0.000000e+00 : f32
    %112 = vector.shape_cast %111 : vector<23x1xi1> to vector<23x1xi1>
    %113 = vector.broadcast %112 : vector<23x1xi1> to vector<23x128xi1>
    %114 = vector.broadcast %cst_98 : f32 to vector<23x128xf32>
    %115 = arith.select %113, %107, %114 : vector<23x128xi1>, vector<23x128xf32>
    %116 = vector.extract_strided_slice %115 {offsets = [0, 0], sizes = [23, 3], strides = [1, 1]} : vector<23x128xf32> to vector<23x3xf32>
    %c0_99 = arith.constant 0 : index
    %c1_100 = arith.constant 1 : index
    %c0_101 = arith.constant 0 : index
    %c0_102 = arith.constant 0 : index
    %117 = vector.load %arg6[%c0_99, %c1_100, %c0_101, %c0_102] : memref<1x2x23x6xf32, #tpu.memory_space<vmem>>, vector<1x1x23x3xf32>
    %118 = vector.shape_cast %117 : vector<1x1x23x3xf32> to vector<23x3xf32>
    %119 = vector.shape_cast %116 : vector<23x3xf32> to vector<1x1x23x3xf32>
    tpu.vector_store %arg6[%c0_99, %c1_100, %c0_101, %c0_102], %119 {strides = array<i32>} : memref<1x2x23x6xf32, #tpu.memory_space<vmem>>, vector<1x1x23x3xf32>,
    %120 = vector.shape_cast %0 : vector<1x128xf32> to vector<1x128xf32>
    %121 = vector.broadcast %120 : vector<1x128xf32> to vector<23x128xf32>
    %c0_103 = arith.constant 0 : index
    %c0_104 = arith.constant 0 : index
    %122 = vector.load %arg7[%c0_103, %c0_104] : memref<23x128xf32, #tpu.memory_space<vmem>>, vector<23x128xf32>
    tpu.vector_store %arg7[%c0_103, %c0_104], %121 {strides = array<i32>} : memref<23x128xf32, #tpu.memory_space<vmem>>, vector<23x128xf32>,
    %c4 = arith.constant 4 : index
    %c0_105 = arith.constant 0 : index
    %c0_106 = arith.constant 0 : index
    %123 = vector.load %arg4[%c4, %c0_105, %c0_106] : memref<9x16x128xbf16, #tpu.memory_space<vmem>>, vector<1x16x128xbf16>
    %124 = vector.shape_cast %123 : vector<1x16x128xbf16> to vector<16x128xbf16>
    %cst_107 = arith.constant dense<0.000000e+00> : vector<22x128xf32>
    %125 = tpu.matmul %8, %124, %cst_107 {dimension_numbers = #tpu.dot_dimension_numbers<[1], [0], [0], [1], [0, 0, 1, 1], [], []>} : vector<22x16xbf16>, vector<16x128xbf16>, vector<22x128xf32> -> vector<22x128xf32>
    %c0_108 = arith.constant 0 : index
    %c0_109 = arith.constant 0 : index
    %126 = vector.load %arg7[%c0_108, %c0_109] : memref<23x128xf32, #tpu.memory_space<vmem>>, vector<22x128xf32>
    %127 = arith.addf %126, %125 : vector<22x128xf32>
    %c0_110 = arith.constant 0 : index
    %c0_111 = arith.constant 0 : index
    %128 = vector.load %arg7[%c0_110, %c0_111] : memref<23x128xf32, #tpu.memory_space<vmem>>, vector<22x128xf32>
    tpu.vector_store %arg7[%c0_110, %c0_111], %127 {strides = array<i32>} : memref<23x128xf32, #tpu.memory_space<vmem>>, vector<22x128xf32>,
    %c0_112 = arith.constant 0 : index
    %c0_113 = arith.constant 0 : index
    %129 = vector.load %arg7[%c0_112, %c0_113] : memref<23x128xf32, #tpu.memory_space<vmem>>, vector<23x128xf32>
    %c19_i32_114 = arith.constant 19 : i32
    %130 = vector.broadcast %c19_i32_114 : i32 to vector<23x1xi32>
    %131 = arith.cmpi slt, %17, %130 : vector<23x1xi32>
    %132 = vector.broadcast %91 : i1 to vector<23x1xi1>
    %133 = arith.andi %131, %132 : vector<23x1xi1>
    %cst_115 = arith.constant 0.000000e+00 : f32
    %134 = vector.shape_cast %133 : vector<23x1xi1> to vector<23x1xi1>
    %135 = vector.broadcast %134 : vector<23x1xi1> to vector<23x128xi1>
    %136 = vector.broadcast %cst_115 : f32 to vector<23x128xf32>
    %137 = arith.select %135, %129, %136 : vector<23x128xi1>, vector<23x128xf32>
    %138 = vector.extract_strided_slice %137 {offsets = [0, 0], sizes = [23, 3], strides = [1, 1]} : vector<23x128xf32> to vector<23x3xf32>
    %c0_116 = arith.constant 0 : index
    %c1_117 = arith.constant 1 : index
    %c0_118 = arith.constant 0 : index
    %c3_119 = arith.constant 3 : index
    %139 = vector.load %arg6[%c0_116, %c1_117, %c0_118, %c3_119] : memref<1x2x23x6xf32, #tpu.memory_space<vmem>>, vector<1x1x23x3xf32>
    %140 = vector.shape_cast %139 : vector<1x1x23x3xf32> to vector<23x3xf32>
    %141 = vector.shape_cast %138 : vector<23x3xf32> to vector<1x1x23x3xf32>
    tpu.vector_store %arg6[%c0_116, %c1_117, %c0_118, %c3_119], %141 {strides = array<i32>} : memref<1x2x23x6xf32, #tpu.memory_space<vmem>>, vector<1x1x23x3xf32>,
    return
  }
  func.func @transform_0(%arg0: i32, %arg1: i32) -> (i32, i32, i32, i32) {
    %c0_i32 = arith.constant 0 : i32
    %0 = arith.subi %arg1, %c0_i32 : i32
    %c0_i32_0 = arith.constant 0 : i32
    %c18_i32 = arith.constant 18 : i32
    %1 = arith.maxsi %c0_i32_0, %0 : i32
    %2 = arith.minsi %c18_i32, %1 : i32
    %c0_i32_1 = arith.constant 0 : i32
    %c0_i32_2 = arith.constant 0 : i32
    %c0_i32_3 = arith.constant 0 : i32
    return %arg0, %2, %c0_i32_1, %c0_i32_2 : i32, i32, i32, i32
  }
  func.func @transform_1(%arg0: i32, %arg1: i32) -> (i32, i32, i32, i32) {
    %c1_i32 = arith.constant 1 : i32
    %0 = arith.subi %arg1, %c1_i32 : i32
    %c0_i32 = arith.constant 0 : i32
    %c18_i32 = arith.constant 18 : i32
    %1 = arith.maxsi %c0_i32, %0 : i32
    %2 = arith.minsi %c18_i32, %1 : i32
    %c0_i32_0 = arith.constant 0 : i32
    %c0_i32_1 = arith.constant 0 : i32
    %c0_i32_2 = arith.constant 0 : i32
    return %arg0, %2, %c0_i32_0, %c0_i32_1 : i32, i32, i32, i32
  }
  func.func @transform_2(%arg0: i32, %arg1: i32) -> (i32, i32, i32) {
    %c0_i32 = arith.constant 0 : i32
    %c0_i32_0 = arith.constant 0 : i32
    %c0_i32_1 = arith.constant 0 : i32
    %c0_i32_2 = arith.constant 0 : i32
    return %c0_i32, %c0_i32_0, %c0_i32_1 : i32, i32, i32
  }
  func.func @transform_3(%arg0: i32, %arg1: i32) -> (i32, i32) {
    %c0_i32 = arith.constant 0 : i32
    %c0_i32_0 = arith.constant 0 : i32
    %c0_i32_1 = arith.constant 0 : i32
    return %c0_i32, %c0_i32_0 : i32, i32
  }
  func.func @transform_4(%arg0: i32, %arg1: i32) -> (i32, i32, i32, i32) {
    %c0_i32 = arith.constant 0 : i32
    %c0_i32_0 = arith.constant 0 : i32
    %c0_i32_1 = arith.constant 0 : i32
    return %arg0, %arg1, %c0_i32, %c0_i32_0 : i32, i32, i32, i32
  }
}

</mosaic_0001>

<bundles_post_ra>
// kernel: generator_forward.5
= control target key start
LH: loop header
LB: loop body
LE: loop exit
PB: predicated region body
PF: predicated region fallthrough
CT: control target
= control target key end

     0   :  { %s1717_s15 = smov 0   ;;  %s1719_s16 = smov 0   ;;  %s2031_s0 = inlined_call_operand.vmem [shape: bf16[2,4,4,64], index: 0, kind: input, shape index: {}, may-alias: {0,1}]   ;;  %s2032_s1 = inlined_call_operand.vmem [shape: bf16[2,4,4,64], index: 1, kind: input, shape index: {}, may-alias: {0,1}]   ;;  %s2033_s2 = inlined_call_operand.vmem [shape: bf16[9,64,128], index: 2, kind: input, shape index: {}]   ;;  %s2034_s3 = inlined_call_operand.vmem [shape: f32[1,128], index: 3, kind: input, shape index: {}]   ;;  %s2035_s4 = inlined_call_operand.vmem [shape: bf16[2,10,5,64], index: 4, kind: output, shape index: {}]  }
   0x1   :  { %s1721_s17 = smov 0   ;;  %s1723_s18 = smov 0  }
   0x2   :  { %s1725_s19 = smov 0  }
   0x3 LB: > { %s23_s20 = sadd.s32 1, %s1678_s17  ;;  %s26_s21 = sadd.s32 1, %s1682_s18  ;;  %s1686_s19 = sphi %s1725_s19, %s14_s19   ;;  %s1682_s18 = sphi %s1723_s18, %s2044_s18   ;;  %s1678_s17 = sphi %s1721_s17, %s2043_s17   ;;  %s1674_s16 = sphi %s1719_s16, %s2042_s16   ;;  %s1670_s15 = sphi %s1717_s15, %s2041_s15  }
   0x4   : > { %p24_p0 = scmp.ge.s32.totalorder %s23_s20, 5  ;;  %p1260_p1 = scmp.ge.s32.totalorder %s1686_s19, 1 }
   0x5   : > { %p232_p2 = scmp.lt.s32.totalorder %s1686_s19, 11 }
   0x6   : > { %s2046_s20 = smov (%p24_p0, %s23_s20), 0  ;;  %s2048_s21 = smov (!%p24_p0, %s26_s21), %s1682_s18 }
   0x7   : > { %p233_p3 = pnand %p1260_p1, %p232_p2  ;;  %p28_p4 = scmp.ge.s32.totalorder %s2048_s21, 2 }
   0x8   : > { %v1612_v0 = vld [vmem:[%s2033_s2] sm:$0xff] (!%p233_p3)   ;;  %v1688_v1 = vmov (!%p233_p3), 0.0   ;;  %v1613_v2 = vld [vmem:[%s2033_s2 + $0x8] sm:$0xff] (!%p233_p3)   ;;  %vm1689_vm0 = vmmov (!%p233_p3), 0   ;;  %p282_p5 = scmp.gt.s32.totalorder (!%p233_p3), %s1670_s15, 0  ;;  %p1261_p6 = scmp.lt.s32.totalorder (!%p233_p3), %s1670_s15, 3 }
   0x9   : > { %s2050_s21 = smov (%p28_p4, %s2048_s21), 0  ;;  %236 = sbr.rel (%p233_p3) target bundleno = 477 (0x1dd), region = 36 }
   0xa   : > { %1459 = vmatprep.subr.bf16.mxu0 (!%p233_p3), %v1688_v1  ;;  %1471 = vmatprep.subr.bf16.mxu1 (!%p233_p3), %v1688_v1  ;;  %v1614_v3 = vld [vmem:[%s2033_s2 + $0x40] sm:$0xff] (!%p233_p3)   ;;  %v1616_v4 = vld [vmem:[%s2033_s2 + $0x48] sm:$0xff] (!%p233_p3)   ;;  %p286_p7 = scmp.lt.s32.totalorder (!%p233_p3), %s1674_s16, 1  ;;  %v1615_v5 = vld [vmem:[%s2033_s2 + $0x10] sm:$0xff] (!%p233_p3)   ;;  %p329_p9 = scmp.ge.s32.totalorder (!%p233_p3), %s1670_s15, 0  ;;  %vm397_vm1 = vcmask (!%p233_p3), 523264  }
   0xb   : > { %1460 = vmatpush3.bf16.msra.mxu0 (!%p233_p3), %v1612_v0  ;;  %1467 = vmatprep.mubr.msk.bf16.mxu0 (!%p233_p3), %vm1689_vm0, %v1688_v1  ;;  %v1618_v6 = vld [vmem:[%s2033_s2 + $0x50] sm:$0xff] (!%p233_p3)   ;;  %p330_p10 = scmp.lt.s32.totalorder (!%p233_p3), %s1670_s15, 4  ;;  %v1617_v7 = vld [vmem:[%s2033_s2 + $0x18] sm:$0xff] (!%p233_p3)   ;;  %s1268_s23 = sadd.s32 (!%p233_p3), 4294967295, %s1670_s15  ;;  %v1690_v11 = vmov (!%p233_p3), 0   ;;  %v1619_v13 = vld [vmem:[%s2033_s2 + $0xc0] sm:$0xff] (!%p233_p3)  }
   0xc   : > { %1461 = vmatprep.subr.bf16.mxu0 (!%p233_p3), %v1688_v1  ;;  %1479 = vmatprep.mubr.msk.bf16.mxu1 (!%p233_p3), %vm1689_vm0, %v1688_v1  ;;  %v1620_v8 = vld [vmem:[%s2033_s2 + $0x58] sm:$0xff] (!%p233_p3)   ;;  %p299_p12 = scmp.gt.s32.totalorder (!%p233_p3), %s1268_s23, 0  ;;  %p1269_p13 = scmp.lt.s32.totalorder (!%p233_p3), %s1268_s23, 3  ;;  %v1623_v15 = vld [vmem:[%s2033_s2 + $0x100] sm:$0xff] (!%p233_p3)   ;;  %v1621_v17 = vld [vmem:[%s2033_s2 + $0xc8] sm:$0xff] (!%p233_p3)   ;;  %vm686_vm9 = vcmask (!%p233_p3), 256000  }
   0xd   : > { %1472 = vmatpush3.bf16.msra.mxu1 (!%p233_p3), %v1614_v3  ;;  %p1793_p11 = pnand (!%p233_p3), %p330_p10, %p329_p9  ;;  %p342_p0 = scmp.ge.s32.totalorder (!%p233_p3), %s1268_s23, 0  ;;  %v1625_v19 = vld [vmem:[%s2033_s2 + $0x108] sm:$0xff] (!%p233_p3)   ;;  %v1622_v21 = vld [vmem:[%s2033_s2 + $0xd0] sm:$0xff] (!%p233_p3)   ;;  %v1624_v24 = vld [vmem:[%s2033_s2 + $0xd8] sm:$0xff] (!%p233_p3)   ;;  %vm687_vm10 = vsmask.f32 (!%p233_p3), 2304 }
   0xe   : > { %1473 = vmatprep.subr.bf16.mxu1 (!%p233_p3), %v1688_v1  ;;  %p343_p1 = scmp.lt.s32.totalorder (!%p233_p3), %s1268_s23, 4  ;;  %v1626_v22 = vld [vmem:[%s2033_s2 + $0x110] sm:$0xff] (!%p233_p3)   ;;  %v1627_v25 = vld [vmem:[%s2033_s2 + $0x118] sm:$0xff] (!%p233_p3)   ;;  %v1628_v27 = vld [vmem:[%s2033_s2 + $0x20] sm:$0xff] (!%p233_p3)   ;;  %s1964_s12 = sshll.u32 (!%p233_p3), %s1670_s15, 1 }
   0xf   : > { %1462 = vmatpush3.bf16.msra.mxu0 (!%p233_p3), %v1613_v2  ;;  %v1631_v29 = vld [vmem:[%s2033_s2 + $0xe0] sm:$0xff] (!%p233_p3)   ;;  %v1629_v31 = vld [vmem:[%s2033_s2 + $0x28] sm:$0xff] (!%p233_p3)   ;;  %v1630_v33 = vld [vmem:[%s2033_s2 + $0x30] sm:$0xff] (!%p233_p3)   ;;  %p319_p4 = scmp.lt.s32.totalorder (!%p233_p3), %s1964_s12, 9  ;;  %s1691_s25 = smov (!%p233_p3), 32  }
  0x10   : > { %s283_s30 = scalar_select %p282_p5, %s1670_s15, 0  ;;  %1463 = vmatprep.subr.bf16.mxu0 %v1688_v1  ;;  %v1867_v30 = vld [vmem:[%s2034_s3] ss:$0 sm:$0xff]  ;;  %v1633_v32 = vld [vmem:[%s2033_s2 + $0xe8] sm:$0xff]   ;;  %v1634_v34 = vld [vmem:[%s2033_s2 + $0xf0] sm:$0xff]  }
  0x11   : > { %s2054_s16 = smov (!%p286_p7, %s1674_s16), 1  ;;  %1474 = vmatpush3.bf16.msra.mxu1 %v1616_v4  ;;  %p344_p2 = pnand %p343_p1, %p342_p0  ;;  %364 = vst [vmem:[#allocation2] sm:$0x1f] %v1867_v30  ;;  %v1632_v35 = vld [vmem:[%s2033_s2 + $0x38] sm:$0xff]   ;;  %v1636_v37 = vld [vmem:[%s2033_s2 + $0x60] sm:$0xff]   ;;  %v1637_v39 = vld [vmem:[%s2033_s2 + $0x68] sm:$0xff]  }
  0x12   : > { %s2052_s30 = smov (!%p1261_p6, %s283_s30), 3  ;;  %1475 = vmatprep.subr.bf16.mxu1 %v1688_v1  ;;  %s1266_s9 = sshll.u32 %s2054_s16, 2  ;;  %v1635_v36 = vld [vmem:[%s2033_s2 + $0xf8] sm:$0xff]   ;;  %v1639_v38 = vld [vmem:[%s2033_s2 + $0xa0] sm:$0xff]   ;;  %v1641_v40 = vld [vmem:[%s2033_s2 + $0xa8] sm:$0xff]  }
  0x13   : > { %p288_p8 = scmp.lt.s32.totalorder %s2052_s30, 3  ;;  %1464 = vmatpush3.bf16.msra.mxu0 %v1615_v5  ;;  %v1638_v41 = vld [vmem:[%s2033_s2 + $0x70] sm:$0xff]   ;;  %v1640_v43 = vld [vmem:[%s2033_s2 + $0x78] sm:$0xff]   ;;  %v1644_v45 = vld [vmem:[%s2033_s2 + $0x80] sm:$0xff]   ;;  %s864_s26 = sadd.s32 1, %s1964_s12 }
  0x14   : > { %1465 = vmatprep.subr.bf16.mxu0 %v1688_v1  ;;  %s1278_s28 = scalar_select %p1793_p11, 0, 1  ;;  %v1642_v42 = vld [vmem:[%s2033_s2 + $0xb0] sm:$0xff]   ;;  %v1643_v44 = vld [vmem:[%s2033_s2 + $0xb8] sm:$0xff]   ;;  %v1645_v46 = vld [vmem:[%s2033_s2 + $0x88] sm:$0xff]  }
  0x15   : > { %s2056_s30 = smov (!%p288_p8, %s2052_s30), 3  ;;  %1476 = vmatpush3.bf16.msra.mxu1 %v1618_v6  ;;  %v1646_v47 = vld [vmem:[%s2033_s2 + $0x90] sm:$0xff]   ;;  %v1647_v48 = vld [vmem:[%s2033_s2 + $0x98] sm:$0xff]   ;;  %vm1987_vm11 = vmand %vm686_vm9, %vm687_vm10  ;;  %p865_p5 = scmp.lt.s32.totalorder %s864_s26, 9 }
  0x16   : > { %s291_s13 = sadd.s32 %s1266_s9, %s2056_s30  ;;  %1477 = vmatprep.subr.bf16.mxu1 %v1688_v1  ;;  %v335_v9 = vstv %s1278_s28 }
  0x17   : > { %s1267_s24 = sshll.u32 %s291_s13, 1  ;;  %1466 = vmatpush3.bf16.msra.mxu0 %v1617_v7  ;;  %vm336_vm2 = vcmp.eq.s32.totalorder %v335_v9, 1  ;;  %v354_v7 = vlaneseq }
  0x18   : > { %s293_s27 = scalar_lea.vmem %s2031_s0, %s1267_s24  ;;  %1483 = vmatprep.subr.bf16.mxu0 %v1688_v1  ;;  %v337_v12 = vsel %vm336_vm2, 1, %v1690_v11  ;;  %v441_v49 = vld [vmem:[#allocation2] sm:$0xf] }
  0x19   : > { %1478 = vmatpush3.bf16.msra.mxu1 %v1620_v8  ;;  %s300_s29 = scalar_select %p299_p12, %s1268_s23, 0  ;;  %v333_v10 = vld [vmem:[%s293_s27] sm:$0x3]  ;;  %v338_v14 = vpack.c.b16 %v337_v12, %v337_v12 }
  0x1a   : > { %1495 = vmatprep.subr.bf16.mxu1 %v1688_v1  ;;  %s1280_s8 = scalar_select %p344_p2, 0, 1 }
  0x1b   : > { %s2058_s29 = smov (!%p1269_p13, %s300_s29), 3  ;;  %vm339_vm3 = vcmp.ne.s16.totalorder %v338_v14, 0  ;;  %v1969_v14 = vshrl.u32 %v354_v7, 7 }
  0x1c   : > { %p305_p3 = scmp.lt.s32.totalorder %s2058_s29, 3  ;;  %v1817_v16 = vsel %vm339_vm3, %v333_v10, 0  ;;  %v348_v18 = vstv %s1280_s8 }
  0x1d   : > { %1468 = vmatmul.mubr.msk.bf16.vlgmr.msra.gmra.mrb[0].mxu0 %vm397_vm1, %v1817_v16  ;;  %1480 = vmatmul.mubr.msk.bf16.vlgmr.msra.gmra.mrb[0].mxu1 %vm397_vm1, %v1817_v16  ;;  %vm349_vm4 = vcmp.eq.s32.totalorder %v348_v18, 1  ;;  %s678_s13 = scalar_select %p319_p4, 1, 0  ;;  %vm677_vm6 = vcmp.lt.s32.totalorder %v1969_v14, 5  ;;  %vm847_vm12 = vcmp.lt.s32.totalorder %v1969_v14, 4 }
  0x1e   : > { %s2060_s29 = smov (!%p305_p3, %s2058_s29), 3  ;;  %1484 = vmatpush3.bf16.msra.mxu0 %v1619_v13  ;;  %1496 = vmatpush3.bf16.msra.mxu1 %v1623_v15  ;;  %v350_v20 = vsel %vm349_vm4, 1, %v1690_v11 }
  0x1f   : > { %s308_s14 = sadd.s32 %s1266_s9, %s2060_s29  ;;  %1485 = vmatprep.subr.bf16.mxu0 %v1688_v1  ;;  %1497 = vmatprep.subr.bf16.mxu1 %v1688_v1  ;;  %v351_v23 = vpack.c.b16 %v350_v20, %v350_v20 }
  0x20   : > { %s1275_s22 = sshll.u32 %s308_s14, 1  ;;  %1491 = vmatprep.mubr.msk.bf16.mxu0 %vm1689_vm0, %v1688_v1  ;;  %1503 = vmatprep.mubr.msk.bf16.mxu1 %vm1689_vm0, %v1688_v1 }
  0x21   : > { %s310_s28 = scalar_lea.vmem %s2032_s1, %s1275_s22  ;;  %vm352_vm5 = vcmp.ne.s16.totalorder %v351_v23, 0  ;;  %s1567_s22 = smul.u32 10, %s2054_s16 }
  0x22   : > { %1486 = vmatpush3.bf16.msra.mxu0 %v1621_v17  ;;  %1498 = vmatpush3.bf16.msra.mxu1 %v1625_v19  ;;  %v346_v26 = vld [vmem:[%s310_s28] sm:$0x3]  ;;  %s320_s14 = scalar_select %p319_p4, %s1964_s12, 9  ;;  %v679_v17 = vstv %s678_s13 }
  0x23   : > { %1487 = vmatprep.subr.bf16.mxu0 %v1688_v1  ;;  %1499 = vmatprep.subr.bf16.mxu1 %v1688_v1  ;;  %v353_v28 = vsel %vm352_vm5, %v346_v26, 0  ;;  %vm1972_vm7 = vcmp.eq.s32.totalorder %v679_v17, 1  ;;  %s1021_s27 = scalar_select %p865_p5, 1, 0 }
  0x24   : > { %s322_s15 = sadd.s32 %s1567_s22, %s320_s14  ;;  %vm681_vm8 = vmand %vm677_vm6, %vm1972_vm7 }
  0x25   : > { %s1277_s23 = sshll.u32 %s322_s15, 2  ;;  %vm848_vm13 = vmand %vm847_vm12, %vm1972_vm7 }
  0x26   : > { %1488 = vmatpush3.bf16.msra.mxu0 %v1622_v21  ;;  %1500 = vmatpush3.bf16.msra.mxu1 %v1626_v22  ;;  %s1979_s9 = scalar_lea.vmem %s2035_s4, %s1277_s23 }
  0x27   : > { %1489 = vmatprep.subr.bf16.mxu0 %v1688_v1  ;;  %1501 = vmatprep.subr.bf16.mxu1 %v1688_v1 }
  0x2a   : > { %1490 = vmatpush3.bf16.msra.mxu0 %v1624_v24  ;;  %1502 = vmatpush3.bf16.msra.mxu1 %v1627_v25  ;;  %v689_v25 = vld [vmem:[%s1979_s9] sm:$0x7] }
  0x2b   : > { %1507 = vmatprep.subr.bf16.mxu0 %v1688_v1  ;;  %1519 = vmatprep.subr.bf16.mxu1 %v1688_v1 }
  0x2d   : > { %1492 = vmatmul.mubr.msk.bf16.vlgmr.msra.gmra.mrb[4].mxu0 %vm397_vm1, %v353_v28  ;;  %1504 = vmatmul.mubr.msk.bf16.vlgmr.msra.gmra.mrb[4].mxu1 %vm397_vm1, %v353_v28 }
  0x2e   : > { %1508 = vmatpush3.bf16.msra.mxu0 %v1628_v27  ;;  %1520 = vmatpush3.bf16.msra.mxu1 %v1631_v29 }
  0x2f   : > { %1509 = vmatprep.subr.bf16.mxu0 %v1688_v1  ;;  %1521 = vmatprep.subr.bf16.mxu1 %v1688_v1 }
  0x30   : > { %1515 = vmatprep.mubr.msk.bf16.mxu0 %vm1689_vm0, %v1688_v1  ;;  %1527 = vmatprep.mubr.msk.bf16.mxu1 %vm1689_vm0, %v1688_v1 }
  0x32   : > { %1510 = vmatpush3.bf16.msra.mxu0 %v1629_v31  ;;  %1522 = vmatpush3.bf16.msra.mxu1 %v1633_v32 }
  0x33   : > { %1511 = vmatprep.subr.bf16.mxu0 %v1688_v1  ;;  %1523 = vmatprep.subr.bf16.mxu1 %v1688_v1 }
  0x36   : > { %1512 = vmatpush3.bf16.msra.mxu0 %v1630_v33  ;;  %1524 = vmatpush3.bf16.msra.mxu1 %v1634_v34 }
  0x37   : > { %1513 = vmatprep.subr.bf16.mxu0 %v1688_v1  ;;  %1525 = vmatprep.subr.bf16.mxu1 %v1688_v1 }
  0x3a   : > { %1514 = vmatpush3.bf16.msra.mxu0 %v1632_v35  ;;  %1526 = vmatpush3.bf16.msra.mxu1 %v1635_v36 }
  0x3b   : > { %1531 = vmatprep.subr.bf16.mxu0 %v1688_v1  ;;  %1543 = vmatprep.subr.bf16.mxu1 %v1688_v1 }
  0x3d   : > { %1516 = vmatmul.mubr.msk.bf16.vlgmr.msra.gmra.mrb[8].mxu0 %vm397_vm1, %v1817_v16  ;;  %1528 = vmatmul.mubr.msk.bf16.vlgmr.msra.gmra.mrb[8].mxu1 %vm397_vm1, %v353_v28 }
  0x3e   : > { %1532 = vmatpush3.bf16.msra.mxu0 %v1636_v37  ;;  %1544 = vmatpush3.bf16.msra.mxu1 %v1639_v38 }
  0x3f   : > { %1533 = vmatprep.subr.bf16.mxu0 %v1688_v1  ;;  %1545 = vmatprep.subr.bf16.mxu1 %v1688_v1 }
  0x40   : > { %1539 = vmatprep.mubr.msk.bf16.mxu0 %vm1689_vm0, %v1688_v1  ;;  %1551 = vmatprep.mubr.msk.bf16.mxu1 %vm1689_vm0, %v1688_v1 }
  0x42   : > { %1534 = vmatpush3.bf16.msra.mxu0 %v1637_v39  ;;  %1546 = vmatpush3.bf16.msra.mxu1 %v1641_v40 }
  0x43   : > { %1535 = vmatprep.subr.bf16.mxu0 %v1688_v1  ;;  %1547 = vmatprep.subr.bf16.mxu1 %v1688_v1 }
  0x46   : > { %1536 = vmatpush3.bf16.msra.mxu0 %v1638_v41  ;;  %1548 = vmatpush3.bf16.msra.mxu1 %v1642_v42 }
  0x47   : > { %1537 = vmatprep.subr.bf16.mxu0 %v1688_v1  ;;  %1549 = vmatprep.subr.bf16.mxu1 %v1688_v1 }
  0x4a   : > { %1538 = vmatpush3.bf16.msra.mxu0 %v1640_v43  ;;  %1550 = vmatpush3.bf16.msra.mxu1 %v1643_v44 }
  0x4b   : > { %1555 = vmatprep.subr.bf16.mxu0 %v1688_v1 }
  0x4d   : > { %1540 = vmatmul.mubr.msk.bf16.vlgmr.msra.gmra.mrb[12].mxu0 %vm397_vm1, %v1817_v16  ;;  %1552 = vmatmul.mubr.msk.bf16.vlgmr.msra.gmra.mrb[12].mxu1 %vm397_vm1, %v1817_v16 }
  0x4e   : > { %1556 = vmatpush3.bf16.msra.mxu0 %v1644_v45  ;;  %1563 = vmatprep.mubr.msk.bf16.mxu0 %vm1689_vm0, %v1688_v1 }
  0x4f   : > { %1557 = vmatprep.subr.bf16.mxu0 %v1688_v1 }
  0x52   : > { %1558 = vmatpush3.bf16.msra.mxu0 %v1645_v46 }
  0x53   : > { %1559 = vmatprep.subr.bf16.mxu0 %v1688_v1 }
  0x56   : > { %1560 = vmatpush3.bf16.msra.mxu0 %v1646_v47 }
  0x57   : > { %1561 = vmatprep.subr.bf16.mxu0 %v1688_v1 }
  0x5a   : > { %1562 = vmatpush3.bf16.msra.mxu0 %v1647_v48 }
  0x5d   : > { %1564 = vmatmul.mubr.msk.bf16.vlgmr.msra.gmra.mrb[16].mxu0 %vm397_vm1, %v1817_v16  ;;  %vm859_vm1 = vcmask 518400  }
  0x5e   : > { %vm860_vm2 = vmand %vm859_vm1, %vm687_vm10 }
  0xf0   : > { %v435_v50 = vpop.f32.mrb[0].mxu0  ;;  %v511_v51 = vpop.f32.mrb[0].mxu1 }
  0xf1   : > { %v442_v52 = vadd.f32 %v441_v49, %v435_v50  ;;  %v1469_v53 = vpop.f32.mrb[1].mxu0  ;;  %v1481_v54 = vpop.f32.mrb[1].mxu1 }
  0xf2   : > { %v438_v55 = vpop.f32.mrb[2].mxu0  ;;  %v514_v56 = vpop.f32.mrb[2].mxu1  ;;  %v1022_v53 = vstv %s1021_s27 }
  0xf3   : > { %443 = vst [vmem:[#allocation2] sm:$0xf] %v442_v52  ;;  %v1470_v57 = vpop.f32.mrb[3].mxu0  ;;  %v1482_v58 = vpop.f32.mrb[3].mxu1  ;;  %vm1023_vm14 = vcmp.eq.s32.totalorder %v1022_v53, 1 }
  0xf4   : > { %vm1024_vm15 = vmand %vm677_vm6, %vm1023_vm14  ;;  %v1380_v56 = vld [vmem:[%s1979_s9 + $0x4] sm:$0x7] }
  0xf5   : > { %vm1112_vm0 = vmand %vm847_vm12, %vm1023_vm14 }
  0xfa   : > { %v517_v59 = vld [vmem:[#allocation2 + $0x1] sm:$0xf] }
  0xfb   : > { %v518_v60 = vadd.f32 %v517_v59, %v511_v51 }
  0xfd   : > { %519 = vst [vmem:[#allocation2 + $0x1] sm:$0xf] %v518_v60 }
 0x100   : > { %v590_v61 = vpop.f32.mrb[4].mxu0  ;;  %v666_v62 = vpop.f32.mrb[4].mxu1 }
 0x101   : > { %v1493_v63 = vpop.f32.mrb[5].mxu0  ;;  %v1505_v0 = vpop.f32.mrb[5].mxu1 }
 0x102   : > { %v593_v1 = vpop.f32.mrb[6].mxu0  ;;  %v669_v2 = vpop.f32.mrb[6].mxu1 }
 0x103   : > { %v1494_v3 = vpop.f32.mrb[7].mxu0  ;;  %v1506_v4 = vpop.f32.mrb[7].mxu1 }
 0x104   : > { %v596_v5 = vld [vmem:[#allocation2] sm:$0xf] }
 0x105   : > { %v597_v6 = vadd.f32 %v596_v5, %v590_v61 }
 0x107   : > { %598 = vst [vmem:[#allocation2] sm:$0xf] %v597_v6 }
 0x10e   : > { %v672_v8 = vld [vmem:[#allocation2 + $0x1] sm:$0xf] }
 0x10f   : > { %v673_v9 = vadd.f32 %v672_v8, %v666_v62 }
 0x110   : > { %v760_v10 = vpop.f32.mrb[8].mxu0  ;;  %v836_v11 = vpop.f32.mrb[8].mxu1 }
 0x111   : > { %674 = vst [vmem:[#allocation2 + $0x1] sm:$0xf] %v673_v9  ;;  %v1517_v12 = vpop.f32.mrb[9].mxu0  ;;  %v1529_v13 = vpop.f32.mrb[9].mxu1 }
 0x112   : > { %v763_v15 = vpop.f32.mrb[10].mxu0  ;;  %v839_v16 = vpop.f32.mrb[10].mxu1 }
 0x113   : > { %v1518_v18 = vpop.f32.mrb[11].mxu0  ;;  %v1530_v19 = vpop.f32.mrb[11].mxu1 }
 0x118   : > { %v675_v21 = vld [vmem:[#allocation2] sm:$0x1f] }
 0x119   : > { %692 = vst [vmem:[#allocation2] sm:$0x1f] %v1867_v30  ;;  %v676_v22 = vmax.f32 %v675_v21, 0.0 }
 0x11b   : > { %v684_v23 = vsel %vm681_vm8, %v676_v22, 0.0 }
 0x11c   : > { %v685_v26 = vpack.c.bf16 %v684_v23, %v684_v23 }
 0x11e   : > { %v690_v27 = vsel %vm1987_vm11, %v685_v26, %v689_v25 }
 0x11f   : > { %691 = vst [vmem:[%s1979_s9] sm:$0x7] %v690_v27 }
 0x120   : > { %v766_v28 = vld [vmem:[#allocation2] sm:$0xf]  ;;  %v934_v29 = vpop.f32.mrb[12].mxu0  ;;  %v1010_v31 = vpop.f32.mrb[12].mxu1 }
 0x121   : > { %v767_v32 = vadd.f32 %v766_v28, %v760_v10  ;;  %v1541_v33 = vpop.f32.mrb[13].mxu0  ;;  %v1553_v34 = vpop.f32.mrb[13].mxu1 }
 0x122   : > { %v937_v35 = vpop.f32.mrb[14].mxu0  ;;  %v1013_v36 = vpop.f32.mrb[14].mxu1 }
 0x123   : > { %768 = vst [vmem:[#allocation2] sm:$0xf] %v767_v32  ;;  %v1542_v37 = vpop.f32.mrb[15].mxu0  ;;  %v1554_v38 = vpop.f32.mrb[15].mxu1 }
 0x126   : > { %v861_v1 = vld [vmem:[%s1979_s9] sm:$0x7] }
 0x12a   : > { %v842_v39 = vld [vmem:[#allocation2] sm:$0xf] }
 0x12b   : > { %v843_v40 = vadd.f32 %v842_v39, %v836_v11 }
 0x12d   : > { %844 = vst [vmem:[#allocation2] sm:$0xf] %v843_v40 }
 0x130   : > { %v1101_v41 = vpop.f32.mrb[16].mxu0 }
 0x131   : > { %v1565_v42 = vpop.f32.mrb[17].mxu0 }
 0x132   : > { %v1104_v43 = vpop.f32.mrb[18].mxu0 }
 0x133   : > { %v1566_v44 = vpop.f32.mrb[19].mxu0 }
 0x134   : > { %v845_v45 = vld [vmem:[#allocation2] sm:$0x1f] }
 0x135   : > { %866 = vst [vmem:[#allocation2] sm:$0x1f] %v1867_v30  ;;  %v846_v46 = vmax.f32 %v845_v45, 0.0 }
 0x137   : > { %v851_v47 = vsel %vm848_vm13, %v846_v46, 0.0 }
 0x138   : > { %v1412_v48 = vpack.c.bf16 %v851_v47, %v851_v47 }
 0x13a   : > { %856 = vrot.lane.b32.xlu0 %v1412_v48, %s1691_s25 }
 0x13c   : > { %v940_v49 = vld [vmem:[#allocation2] sm:$0xf] }
 0x13d   : > { %v941_v50 = vadd.f32 %v940_v49, %v934_v29 }
 0x13f   : > { %942 = vst [vmem:[#allocation2] sm:$0xf] %v941_v50 }
 0x146   : > { %v1016_v51 = vld [vmem:[#allocation2 + $0x1] sm:$0xf] }
 0x147   : > { %v1017_v52 = vadd.f32 %v1016_v51, %v1010_v31 }
 0x149   : > { %1018 = vst [vmem:[#allocation2 + $0x1] sm:$0xf] %v1017_v52 }
 0x150   : > { %v1019_v54 = vld [vmem:[#allocation2] sm:$0x1f] }
 0x151   : > { %1033 = vst [vmem:[#allocation2] sm:$0x1f] %v1867_v30  ;;  %v1020_v55 = vmax.f32 %v1019_v54, 0.0 }
 0x153   : > { %v1027_v57 = vsel %vm1024_vm15, %v1020_v55, 0.0 }
 0x154   : > { %v1028_v58 = vpack.c.bf16 %v1027_v57, %v1027_v57 }
 0x156   : > { %v1031_v59 = vsel %vm1987_vm11, %v1028_v58, %v1380_v56 }
 0x157   : > { %1381 = vst [vmem:[%s1979_s9 + $0x4] sm:$0x7] %v1031_v59 }
 0x158   : > { %v1107_v60 = vld [vmem:[#allocation2] sm:$0xf] }
 0x159   : > { %v1108_v61 = vadd.f32 %v1107_v60, %v1101_v41 }
 0x15b   : > { %1109 = vst [vmem:[#allocation2] sm:$0xf] %v1108_v61 }
 0x15e   : > { %v1396_v4 = vld [vmem:[%s1979_s9 + $0x4] sm:$0x7] }
 0x162   : > { %v1110_v62 = vld [vmem:[#allocation2] sm:$0x1f] }
 0x163   : > { %v1111_v30 = vmax.f32 %v1110_v62, 0.0 }
 0x165   : > { %v1115_v63 = vsel %vm1112_vm0, %v1111_v30, 0.0 }
 0x166   : > { %v1413_v0 = vpack.c.bf16 %v1115_v63, %v1115_v63 }
 0x168   : > { %1120 = vrot.lane.b32.xlu0 %v1413_v0, %s1691_s25 }
 0x1ac   : > { %v857_v2 = vpop.permute.xlu0 %856 }
 0x1ad   : > { %v862_v3 = vsel %vm860_vm2, %v857_v2, %v861_v1 }
 0x1ae   : > { %863 = vst [vmem:[%s1979_s9] sm:$0x7] %v862_v3 }
 0x1da   : > { %v1121_v5 = vpop.permute.xlu0 %1120 }
 0x1db   : > { %v1124_v6 = vsel %vm860_vm2, %v1121_v5, %v1396_v4 }
 0x1dc   : > { %1397 = vst [vmem:[%s1979_s9 + $0x4] sm:$0x7] %v1124_v6 }
 0x1dd PF: > { %s14_s19 = sadd.s32 1, %s1686_s19   ;;  %s2041_s15 = smov %s1678_s17 }
 0x1de   : > { %p11_p6 = scmp.ge.s32.totalorder %s14_s19, 12   ;;  %s2042_s16 = smov %s1682_s18 }
 0x1df   : > { %s2043_s17 = smov %s2046_s20  ;;  %s2044_s18 = smov %s2050_s21 }
 0x1e0   :  { %13 = sbr.rel (!%p11_p6) target bundleno = 3 (0x3), region = 78 }

// kernel: generator_forward.6
= control target key start
LH: loop header
LB: loop body
LE: loop exit
PB: predicated region body
PF: predicated region fallthrough
CT: control target
= control target key end

     0   :  { %s1591_s15 = smov 0   ;;  %s1593_s16 = smov 0   ;;  %s1894_s0 = inlined_call_operand.vmem [shape: bf16[2,10,10,32], index: 0, kind: input, shape index: {}, may-alias: {0,1}]   ;;  %s1895_s1 = inlined_call_operand.vmem [shape: bf16[2,10,10,32], index: 1, kind: input, shape index: {}, may-alias: {0,1}]   ;;  %s1896_s2 = inlined_call_operand.vmem [shape: bf16[9,32,128], index: 2, kind: input, shape index: {}]   ;;  %s1897_s3 = inlined_call_operand.vmem [shape: f32[1,128], index: 3, kind: input, shape index: {}]   ;;  %s1898_s4 = inlined_call_operand.vmem [shape: bf16[2,20,11,32], index: 4, kind: output, shape index: {}]  }
   0x1   :  { %s1595_s17 = smov 0   ;;  %s1597_s18 = smov 0  }
   0x2   :  { %s1599_s19 = smov 0  }
   0x3 LB: > { %s23_s20 = sadd.s32 1, %s1553_s17  ;;  %s26_s21 = sadd.s32 1, %s1557_s18  ;;  %s1561_s19 = sphi %s1599_s19, %s14_s19   ;;  %s1557_s18 = sphi %s1597_s18, %s1908_s18   ;;  %s1553_s17 = sphi %s1595_s17, %s1907_s17   ;;  %s1549_s16 = sphi %s1593_s16, %s1906_s16   ;;  %s1545_s15 = sphi %s1591_s15, %s1905_s15  }
   0x4   : > { %p24_p0 = scmp.ge.s32.totalorder %s23_s20, 10  ;;  %p1240_p1 = scmp.ge.s32.totalorder %s1561_s19, 1 }
   0x5   : > { %p234_p2 = scmp.lt.s32.totalorder %s1561_s19, 21 }
   0x6   : > { %s1910_s20 = smov (%p24_p0, %s23_s20), 0  ;;  %s1912_s21 = smov (!%p24_p0, %s26_s21), %s1557_s18 }
   0x7   : > { %p235_p3 = pnand %p1240_p1, %p234_p2  ;;  %p28_p4 = scmp.ge.s32.totalorder %s1912_s21, 2 }
   0x8   : > { %v1505_v0 = vld [vmem:[%s1896_s2] sm:$0xff] (!%p235_p3)   ;;  %v1563_v1 = vmov (!%p235_p3), 0.0   ;;  %v1506_v2 = vld [vmem:[%s1896_s2 + $0x8] sm:$0xff] (!%p235_p3)   ;;  %vm1564_vm0 = vmmov (!%p235_p3), 0   ;;  %p287_p5 = scmp.gt.s32.totalorder (!%p235_p3), %s1545_s15, 0  ;;  %p1241_p6 = scmp.lt.s32.totalorder (!%p235_p3), %s1545_s15, 8 }
   0x9   : > { %s1914_s21 = smov (%p28_p4, %s1912_s21), 0  ;;  %238 = sbr.rel (%p235_p3) target bundleno = 480 (0x1e0), region = 36 }
   0xa   : > { %1388 = vmatprep.subr.bf16.mxu0 (!%p235_p3), %v1563_v1  ;;  %1396 = vmatprep.subr.bf16.mxu1 (!%p235_p3), %v1563_v1  ;;  %v1507_v3 = vld [vmem:[%s1896_s2 + $0x20] sm:$0xff] (!%p235_p3)   ;;  %p291_p7 = scmp.lt.s32.totalorder (!%p235_p3), %s1549_s16, 1  ;;  %p336_p8 = scmp.ge.s32.totalorder (!%p235_p3), %s1545_s15, 0  ;;  %v1508_v4 = vld [vmem:[%s1896_s2 + $0x28] sm:$0xff] (!%p235_p3)   ;;  %vm393_vm2 = vcmask (!%p235_p3), 261120   ;;  %v1513_v21 = vld [vmem:[%s1896_s2 + $0x10] sm:$0xff] (!%p235_p3)  }
   0xb   : > { %1389 = vmatpush3.bf16.msra.mxu0 (!%p235_p3), %v1505_v0  ;;  %1392 = vmatprep.mubr.msk.bf16.mxu0 (!%p235_p3), %vm1564_vm0, %v1563_v1  ;;  %p337_p9 = scmp.lt.s32.totalorder (!%p235_p3), %s1545_s15, 9  ;;  %s1248_s6 = sadd.s32 (!%p235_p3), 4294967295, %s1545_s15  ;;  %v1509_v8 = vld [vmem:[%s1896_s2 + $0x60] sm:$0xff] (!%p235_p3)   ;;  %v1510_v13 = vld [vmem:[%s1896_s2 + $0x68] sm:$0xff] (!%p235_p3)   ;;  %v1515_v23 = vld [vmem:[%s1896_s2 + $0x70] sm:$0xff] (!%p235_p3)   ;;  %vm671_vm8 = vcmask (!%p235_p3), 123904  }
   0xc   : > { %1390 = vmatprep.subr.bf16.mxu0 (!%p235_p3), %v1563_v1  ;;  %1400 = vmatprep.mubr.msk.bf16.mxu1 (!%p235_p3), %vm1564_vm0, %v1563_v1  ;;  %p305_p12 = scmp.gt.s32.totalorder (!%p235_p3), %s1248_s6, 0  ;;  %p1249_p13 = scmp.lt.s32.totalorder (!%p235_p3), %s1248_s6, 8  ;;  %v1511_v12 = vld [vmem:[%s1896_s2 + $0x80] sm:$0xff] (!%p235_p3)   ;;  %v1512_v15 = vld [vmem:[%s1896_s2 + $0x88] sm:$0xff] (!%p235_p3)   ;;  %v1514_v24 = vld [vmem:[%s1896_s2 + $0x18] sm:$0xff] (!%p235_p3)   ;;  %vm669_vm10 = vcmask (!%p235_p3), 125952  }
   0xd   : > { %1397 = vmatpush3.bf16.msra.mxu1 (!%p235_p3), %v1507_v3  ;;  %p338_p11 = pnand (!%p235_p3), %p337_p9, %p336_p8  ;;  %p348_p0 = scmp.ge.s32.totalorder (!%p235_p3), %s1248_s6, 0  ;;  %v1693_v14 = vld [vmem:[%s1897_s3] ss:$0 sm:$0xff] (!%p235_p3)  ;;  %v1516_v25 = vld [vmem:[%s1896_s2 + $0x78] sm:$0xff] (!%p235_p3)   ;;  %v1517_v26 = vld [vmem:[%s1896_s2 + $0x30] sm:$0xff] (!%p235_p3)  }
   0xe   : > { %1398 = vmatprep.subr.bf16.mxu1 (!%p235_p3), %v1563_v1  ;;  %p349_p1 = scmp.lt.s32.totalorder (!%p235_p3), %s1248_s6, 9  ;;  %371 = vst [vmem:[#allocation2 + $0x8] sm:$0x7] (!%p235_p3), %v1693_v14  ;;  %v1519_v27 = vld [vmem:[%s1896_s2 + $0x50] sm:$0xff] (!%p235_p3)   ;;  %v1518_v28 = vld [vmem:[%s1896_s2 + $0x38] sm:$0xff] (!%p235_p3)   ;;  %v1521_v30 = vld [vmem:[%s1896_s2 + $0x40] sm:$0xff] (!%p235_p3)  }
   0xf   : > { %1391 = vmatpush3.bf16.msra.mxu0 (!%p235_p3), %v1506_v2  ;;  %v1520_v29 = vld [vmem:[%s1896_s2 + $0x58] sm:$0xff] (!%p235_p3)   ;;  %v1522_v31 = vld [vmem:[%s1896_s2 + $0x48] sm:$0xff] (!%p235_p3)   ;;  %s1565_s25 = smov (!%p235_p3), 16   ;;  %vm672_vm9 = vsmask.f32 (!%p235_p3), 1280 }
  0x10   : > { %s288_s28 = scalar_select %p287_p5, %s1545_s15, 0  ;;  %1404 = vmatprep.subr.bf16.mxu0 %v1563_v1  ;;  %vm1831_vm11 = vmand %vm671_vm8, %vm672_vm9 }
  0x11   : > { %s1916_s16 = smov (!%p291_p7, %s1549_s16), 1  ;;  %1399 = vmatpush3.bf16.msra.mxu1 %v1508_v4  ;;  %p1669_p2 = pnand %p349_p1, %p348_p0 }
  0x12   : > { %s1918_s28 = smov (!%p1241_p6, %s288_s28), 8  ;;  %s1460_s5 = smul.u32 20, %s1916_s16  ;;  %1412 = vmatprep.subr.bf16.mxu1 %v1563_v1 }
  0x13   : > { %p293_p10 = scmp.lt.s32.totalorder %s1918_s28, 9 }
  0x14   : > { %s1259_s7 = scalar_select %p338_p11, 0, 1 }
  0x15   : > { %s1920_s28 = smov (!%p293_p10, %s1918_s28), 9  ;;  %v439_v33 = vld [vmem:[#allocation2 + $0x8] sm:$0x3] }
  0x16   : > { %s1246_s8 = sshll.u32 %s1920_s28, 1  ;;  %v343_v5 = vstv %s1259_s7 }
  0x17   : > { %s297_s9 = sadd.s32 %s1460_s5, %s1246_s8  ;;  %vm344_vm1 = vcmp.eq.s32.totalorder %v343_v5, 1 }
  0x18   : > { %s1247_s10 = sshll.u32 %s297_s9, 2 }
  0x19   : > { %s299_s13 = scalar_lea.vmem %s1894_s0, %s1247_s10 }
  0x1a   : > { %v340_v6 = vld [vmem:[%s299_s13] sm:$0xf]  ;;  %v341_v7 = vld [vmem:[%s299_s13 + $0x4] sm:$0x1]  ;;  %s306_s23 = scalar_select %p305_p12, %s1248_s6, 0 }
  0x1b   : > { %v345_v9 = vsel %vm344_vm1, %v340_v6, 0  ;;  %v346_v10 = vsel %vm344_vm1, %v341_v7, 0  ;;  %s1261_s27 = scalar_select %p1669_p2, 0, 1  ;;  %vm835_vm1 = vcmask 255104  }
  0x1c   : > { %v1673_v11 = vcombine.low %v345_v9, %v346_v10  ;;  %s1922_s23 = smov (!%p1249_p13, %s306_s23), 8  ;;  %v359_v9 = vlaneseq }
  0x1d   : > { %p311_p3 = scmp.lt.s32.totalorder %s1922_s23, 9  ;;  %v355_v16 = vstv %s1261_s27  ;;  %s1461_s27 = smul.u32 40, %s1916_s16 }
  0x1e   : > { %1393 = vmatmul.mubr.msk.bf16.vlgmr.msra.gmra.mrb[0].mxu0 %vm393_vm2, %v1673_v11  ;;  %1401 = vmatmul.mubr.msk.bf16.vlgmr.msra.gmra.mrb[0].mxu1 %vm393_vm2, %v1673_v11  ;;  %vm356_vm3 = vcmp.eq.s32.totalorder %v355_v16, 1  ;;  %v360_v16 = vshrl.u32 %v359_v9, 7 }
  0x1f   : > { %1405 = vmatpush3.bf16.msra.mxu0 %v1509_v8  ;;  %1408 = vmatprep.mubr.msk.bf16.mxu0 %vm1564_vm0, %v1563_v1  ;;  %s1924_s23 = smov (!%p311_p3, %s1922_s23), 9 }
  0x20   : > { %1406 = vmatprep.subr.bf16.mxu0 %v1563_v1  ;;  %1413 = vmatpush3.bf16.msra.mxu1 %v1511_v12  ;;  %s1254_s9 = sshll.u32 %s1924_s23, 1  ;;  %s1771_s23 = sshll.u32 %s1545_s15, 1 }
  0x21   : > { %1414 = vmatprep.subr.bf16.mxu1 %v1563_v1  ;;  %1416 = vmatprep.mubr.msk.bf16.mxu1 %vm1564_vm0, %v1563_v1  ;;  %s315_s10 = sadd.s32 %s1460_s5, %s1254_s9  ;;  %p326_p4 = scmp.lt.s32.totalorder %s1771_s23, 19 }
  0x22   : > { %s1255_s11 = sshll.u32 %s315_s10, 2  ;;  %s840_s15 = sadd.s32 1, %s1771_s23 }
  0x23   : > { %1407 = vmatpush3.bf16.msra.mxu0 %v1510_v13  ;;  %s317_s14 = scalar_lea.vmem %s1895_s1, %s1255_s11  ;;  %s1926_s23 = smov (!%p326_p4, %s1771_s23), 19 }
  0x24   : > { %1415 = vmatpush3.bf16.msra.mxu1 %v1512_v15  ;;  %1420 = vmatprep.subr.bf16.mxu0 %v1563_v1  ;;  %v352_v17 = vld [vmem:[%s317_s14] sm:$0xf]  ;;  %v353_v18 = vld [vmem:[%s317_s14 + $0x4] sm:$0x1]  ;;  %s650_s5 = scalar_select %p326_p4, 1, 0 }
  0x25   : > { %1428 = vmatprep.subr.bf16.mxu1 %v1563_v1  ;;  %v357_v19 = vsel %vm356_vm3, %v352_v17, 0  ;;  %v358_v20 = vsel %vm356_vm3, %v353_v18, 0  ;;  %p1791_p5 = scmp.lt.s32.totalorder %s840_s15, 19  ;;  %s1257_s26 = sshll.u32 %s1926_s23, 1 }
  0x26   : > { %v1279_v22 = vcombine.low %v357_v19, %v358_v20  ;;  %v651_v4 = vstv %s650_s5  ;;  %s330_s29 = sadd.s32 %s1461_s27, %s1257_s26 }
  0x27   : > { %vm1781_vm4 = vcmp.eq.s32.totalorder %v651_v4, 1  ;;  %s976_s28 = scalar_select %p1791_p5, 1, 0 }
  0x28   : > { %1409 = vmatmul.mubr.msk.bf16.vlgmr.msra.gmra.mrb[4].mxu0 %vm393_vm2, %v1279_v22  ;;  %1417 = vmatmul.mubr.msk.bf16.vlgmr.msra.gmra.mrb[4].mxu1 %vm393_vm2, %v1279_v22  ;;  %s1258_s16 = sshll.u32 %s330_s29, 2 }
  0x29   : > { %1421 = vmatpush3.bf16.msra.mxu0 %v1513_v21  ;;  %1424 = vmatprep.mubr.msk.bf16.mxu0 %vm1564_vm0, %v1563_v1  ;;  %s1820_s7 = scalar_lea.vmem %s1898_s4, %s1258_s16 }
  0x2a   : > { %1422 = vmatprep.subr.bf16.mxu0 %v1563_v1  ;;  %1429 = vmatpush3.bf16.msra.mxu1 %v1515_v23 }
  0x2b   : > { %1430 = vmatprep.subr.bf16.mxu1 %v1563_v1  ;;  %1432 = vmatprep.mubr.msk.bf16.mxu1 %vm1564_vm0, %v1563_v1 }
  0x2d   : > { %1423 = vmatpush3.bf16.msra.mxu0 %v1514_v24 }
  0x2e   : > { %1431 = vmatpush3.bf16.msra.mxu1 %v1516_v25  ;;  %1436 = vmatprep.subr.bf16.mxu0 %v1563_v1  ;;  %v1805_v25 = vadd.s32 8, %v360_v16 }
  0x2f   : > { %1444 = vmatprep.subr.bf16.mxu1 %v1563_v1 }
  0x30   : > { %1425 = vmatmul.mubr.msk.bf16.vlgmr.msra.gmra.mrb[8].mxu0 %vm393_vm2, %v1673_v11  ;;  %vm649_vm5 = vcmp.lt.s32.totalorder %v1805_v25, 10  ;;  %vm812_vm12 = vcmp.lt.s32.totalorder %v1805_v25, 9 }
  0x31   : > { %1433 = vmatmul.mubr.msk.bf16.vlgmr.msra.gmra.mrb[8].mxu1 %vm393_vm2, %v1279_v22  ;;  %1437 = vmatpush3.bf16.msra.mxu0 %v1517_v26  ;;  %vm654_vm7 = vmand %vm649_vm5, %vm1781_vm4 }
  0x32   : > { %1438 = vmatprep.subr.bf16.mxu0 %v1563_v1  ;;  %1440 = vmatprep.mubr.msk.bf16.mxu0 %vm1564_vm0, %v1563_v1  ;;  %vm814_vm13 = vmand %vm812_vm12, %vm1781_vm4 }
  0x33   : > { %1445 = vmatpush3.bf16.msra.mxu1 %v1519_v27  ;;  %1448 = vmatprep.mubr.msk.bf16.mxu1 %vm1564_vm0, %v1563_v1  ;;  %v1807_v27 = vstv %s976_s28 }
  0x34   : > { %1446 = vmatprep.subr.bf16.mxu1 %v1563_v1  ;;  %vm978_vm6 = vcmp.eq.s32.totalorder %v1807_v27, 1 }
  0x35   : > { %1439 = vmatpush3.bf16.msra.mxu0 %v1518_v28  ;;  %vm980_vm14 = vmand %vm649_vm5, %vm978_vm6 }
  0x36   : > { %1452 = vmatprep.subr.bf16.mxu0 %v1563_v1  ;;  %vm1071_vm15 = vmand %vm812_vm12, %vm978_vm6 }
  0x37   : > { %1447 = vmatpush3.bf16.msra.mxu1 %v1520_v29 }
  0x38   : > { %1441 = vmatmul.mubr.msk.bf16.vlgmr.msra.gmra.mrb[12].mxu0 %vm393_vm2, %v1673_v11 }
  0x39   : > { %1453 = vmatpush3.bf16.msra.mxu0 %v1521_v30  ;;  %1456 = vmatprep.mubr.msk.bf16.mxu0 %vm1564_vm0, %v1563_v1  ;;  %vm833_vm0 = vcmask 257152  }
  0x3a   : > { %1449 = vmatmul.mubr.msk.bf16.vlgmr.msra.gmra.mrb[12].mxu1 %vm393_vm2, %v1673_v11  ;;  %1454 = vmatprep.subr.bf16.mxu0 %v1563_v1 }
  0x3d   : > { %1455 = vmatpush3.bf16.msra.mxu0 %v1522_v31 }
  0x40   : > { %1457 = vmatmul.mubr.msk.bf16.vlgmr.msra.gmra.mrb[16].mxu0 %vm393_vm2, %v1673_v11  ;;  %vm836_vm2 = vmand %vm835_vm1, %vm672_vm9 }
  0xf1   : > { %v431_v32 = vpop.f32.mrb[0].mxu0  ;;  %v495_v34 = vpop.f32.mrb[0].mxu1 }
  0xf2   : > { %v440_v35 = vadd.f32 %v1693_v14, %v431_v32  ;;  %v1394_v36 = vpop.f32.mrb[1].mxu0  ;;  %v1402_v37 = vpop.f32.mrb[1].mxu1 }
  0xf3   : > { %v434_v38 = vpop.f32.mrb[2].mxu0  ;;  %v498_v39 = vpop.f32.mrb[2].mxu1 }
  0xf4   : > { %442 = vst [vmem:[#allocation2] sm:$0xff] %v440_v35  ;;  %v441_v40 = vadd.f32 %v439_v33, %v434_v38  ;;  %v1395_v41 = vpop.f32.mrb[3].mxu0  ;;  %v1403_v42 = vpop.f32.mrb[3].mxu1 }
  0xf6   : > { %443 = vst [vmem:[#allocation2 + $0x8] sm:$0x3] %v441_v40 }
  0xfb   : > { %v567_v45 = vpop.f32.mrb[4].mxu0  ;;  %v631_v46 = vpop.f32.mrb[4].mxu1 }
  0xfc   : > { %v1410_v49 = vpop.f32.mrb[5].mxu0  ;;  %v1418_v50 = vpop.f32.mrb[5].mxu1 }
  0xfd   : > { %v502_v43 = vld [vmem:[#allocation2 + $0x1] sm:$0xff]  ;;  %v503_v44 = vld [vmem:[#allocation2 + $0x9] sm:$0x3]  ;;  %v570_v51 = vpop.f32.mrb[6].mxu0  ;;  %v634_v52 = vpop.f32.mrb[6].mxu1 }
  0xfe   : > { %v504_v47 = vadd.f32 %v502_v43, %v495_v34  ;;  %v505_v48 = vadd.f32 %v503_v44, %v498_v39  ;;  %v1411_v53 = vpop.f32.mrb[7].mxu0  ;;  %v1419_v54 = vpop.f32.mrb[7].mxu1  ;;  %v674_v43 = vld [vmem:[%s1820_s7 + $0x4] sm:$0x3] }
 0x100   : > { %506 = vst [vmem:[#allocation2 + $0x1] sm:$0xff] %v504_v47  ;;  %507 = vst [vmem:[#allocation2 + $0x9] sm:$0x3] %v505_v48 }
 0x103   : > { %v730_v55 = vpop.f32.mrb[8].mxu0 }
 0x104   : > { %v739_v56 = vadd.f32 %v1693_v14, %v730_v55  ;;  %v1426_v57 = vpop.f32.mrb[9].mxu0  ;;  %v794_v58 = vpop.f32.mrb[8].mxu1 }
 0x105   : > { %v1777_v61 = vpop.f32.mrb[10].mxu0  ;;  %v1434_v62 = vpop.f32.mrb[9].mxu1 }
 0x106   : > { %v1427_v1 = vpop.f32.mrb[11].mxu0  ;;  %v803_v2 = vadd.f32 %v794_v58, %v739_v56  ;;  %v1779_v3 = vpop.f32.mrb[10].mxu1 }
 0x107   : > { %v574_v59 = vld [vmem:[#allocation2] sm:$0xff]  ;;  %v575_v60 = vld [vmem:[#allocation2 + $0x8] sm:$0x3]  ;;  %v1435_v5 = vpop.f32.mrb[11].mxu1  ;;  %v1325_v1 = vld [vmem:[%s1820_s7 + $0xc] sm:$0x3] }
 0x108   : > { %v576_v63 = vadd.f32 %v574_v59, %v567_v45  ;;  %v577_v0 = vadd.f32 %v575_v60, %v570_v51  ;;  %v809_v6 = vmax.f32 %v803_v2, 0.0 }
 0x10a   : > { %578 = vst [vmem:[#allocation2] sm:$0xff] %v576_v63  ;;  %579 = vst [vmem:[#allocation2 + $0x8] sm:$0x3] %v577_v0  ;;  %v819_v8 = vsel %vm1781_vm4, %v809_v6, 0.0 }
 0x10b   : > { %v895_v10 = vpop.f32.mrb[12].mxu0  ;;  %v1355_v11 = vpack.c.bf16 %v819_v8, %v819_v8 }
 0x10c   : > { %v1442_v12 = vpop.f32.mrb[13].mxu0  ;;  %v904_v31 = vadd.f32 %v1693_v14, %v895_v10 }
 0x10d   : > { %v1795_v13 = vpop.f32.mrb[14].mxu0  ;;  %827 = vrot.lane.b32.xlu1 %v1355_v11, %s1565_s25  ;;  %v1798_v15 = vpop.f32.mrb[12].mxu1 }
 0x10e   : > { %v1443_v17 = vpop.f32.mrb[15].mxu0  ;;  %v1450_v18 = vpop.f32.mrb[13].mxu1 }
 0x10f   : > { %v1801_v21 = vpop.f32.mrb[14].mxu1 }
 0x110   : > { %v1451_v24 = vpop.f32.mrb[15].mxu1 }
 0x111   : > { %v638_v19 = vld [vmem:[#allocation2 + $0x1] sm:$0xff]  ;;  %v639_v20 = vld [vmem:[#allocation2 + $0x9] sm:$0x3] }
 0x112   : > { %v640_v22 = vadd.f32 %v638_v19, %v631_v46  ;;  %v641_v23 = vadd.f32 %v639_v20, %v634_v52 }
 0x113   : > { %v1053_v26 = vpop.f32.mrb[16].mxu0 }
 0x114   : > { %642 = vst [vmem:[#allocation2 + $0x1] sm:$0xff] %v640_v22  ;;  %643 = vst [vmem:[#allocation2 + $0x9] sm:$0x3] %v641_v23  ;;  %v1062_v28 = vadd.f32 %v1693_v14, %v1053_v26  ;;  %v1458_v29 = vpop.f32.mrb[17].mxu0 }
 0x115   : > { %v1810_v30 = vpop.f32.mrb[18].mxu0 }
 0x116   : > { %v1459_v32 = vpop.f32.mrb[19].mxu0  ;;  %v1068_v33 = vmax.f32 %v1062_v28, 0.0 }
 0x118   : > { %v1076_v34 = vsel %vm978_vm6, %v1068_v33, 0.0 }
 0x119   : > { %v1359_v37 = vpack.c.bf16 %v1076_v34, %v1076_v34 }
 0x11b   : > { %v644_v35 = vld [vmem:[#allocation2] sm:$0xff]  ;;  %v645_v36 = vld [vmem:[#allocation2 + $0x8] sm:$0x7]  ;;  %1084 = vrot.lane.b32.xlu1 %v1359_v37, %s1565_s25 }
 0x11c   : > { %v646_v38 = vmax.f32 %v644_v35, 0.0  ;;  %678 = vst [vmem:[#allocation2 + $0x8] sm:$0x7] %v1693_v14  ;;  %906 = vst [vmem:[#allocation2] sm:$0xff] %v904_v31  ;;  %v647_v39 = vmax.f32 %v645_v36, 0.0 }
 0x11e   : > { %v659_v40 = vsel %vm1781_vm4, %v646_v38, 0.0  ;;  %v660_v41 = vsel %vm654_vm7, %v647_v39, 0.0 }
 0x11f   : > { %v1353_v44 = vpack.c.bf16 %v659_v40, %v659_v40  ;;  %v1354_v45 = vpack.c.bf16 %v660_v41, %v660_v41 }
 0x121   : > { %670 = vst.msk [vmem:[%s1820_s7] sm:$0xf] %vm669_vm10, %v1353_v44  ;;  %v675_v46 = vsel %vm1831_vm11, %v1354_v45, %v674_v43 }
 0x122   : > { %676 = vst [vmem:[%s1820_s7 + $0x4] sm:$0x3] %v675_v46 }
 0x123   : > { %v738_v47 = vld [vmem:[#allocation2 + $0x8] sm:$0x3] }
 0x124   : > { %v740_v48 = vadd.f32 %v738_v47, %v1777_v61 }
 0x126   : > { %742 = vst [vmem:[#allocation2 + $0x8] sm:$0x3] %v740_v48 }
 0x12d   : > { %v802_v49 = vld [vmem:[#allocation2 + $0x8] sm:$0x3] }
 0x12e   : > { %v804_v50 = vadd.f32 %v802_v49, %v1779_v3 }
 0x130   : > { %806 = vst [vmem:[#allocation2 + $0x8] sm:$0x3] %v804_v50 }
 0x137   : > { %v808_v51 = vld [vmem:[#allocation2 + $0x8] sm:$0x7] }
 0x138   : > { %843 = vst [vmem:[#allocation2 + $0x8] sm:$0x7] %v1693_v14  ;;  %v810_v52 = vmax.f32 %v808_v51, 0.0 }
 0x13a   : > { %v820_v53 = vsel %vm814_vm13, %v810_v52, 0.0 }
 0x13b   : > { %v1356_v54 = vpack.c.bf16 %v820_v53, %v820_v53 }
 0x13d   : > { %829 = vrot.lane.b32.xlu0 %v1356_v54, %s1565_s25 }
 0x13f   : > { %v903_v55 = vld [vmem:[#allocation2 + $0x8] sm:$0x3] }
 0x140   : > { %v905_v56 = vadd.f32 %v903_v55, %v1795_v13 }
 0x142   : > { %907 = vst [vmem:[#allocation2 + $0x8] sm:$0x3] %v905_v56 }
 0x149   : > { %v966_v57 = vld [vmem:[#allocation2 + $0x1] sm:$0xff]  ;;  %v967_v58 = vld [vmem:[#allocation2 + $0x9] sm:$0x3] }
 0x14a   : > { %v968_v59 = vadd.f32 %v966_v57, %v1798_v15  ;;  %v969_v60 = vadd.f32 %v967_v58, %v1801_v21  ;;  %v837_v15 = vld [vmem:[%s1820_s7 + $0x4] sm:$0x3] }
 0x14c   : > { %970 = vst [vmem:[#allocation2 + $0x1] sm:$0xff] %v968_v59  ;;  %971 = vst [vmem:[#allocation2 + $0x9] sm:$0x3] %v969_v60 }
 0x153   : > { %v972_v61 = vld [vmem:[#allocation2] sm:$0xff]  ;;  %v973_v62 = vld [vmem:[#allocation2 + $0x8] sm:$0x7] }
 0x154   : > { %v974_v63 = vmax.f32 %v972_v61, 0.0  ;;  %1064 = vst [vmem:[#allocation2] sm:$0xff] %v1062_v28  ;;  %1001 = vst [vmem:[#allocation2 + $0x8] sm:$0x7] %v1693_v14  ;;  %v975_v0 = vmax.f32 %v973_v62, 0.0 }
 0x156   : > { %v986_v2 = vsel %vm980_vm14, %v975_v0, 0.0  ;;  %v985_v3 = vsel %vm978_vm6, %v974_v63, 0.0 }
 0x157   : > { %v1358_v4 = vpack.c.bf16 %v986_v2, %v986_v2  ;;  %v1357_v5 = vpack.c.bf16 %v985_v3, %v985_v3 }
 0x159   : > { %v998_v6 = vsel %vm1831_vm11, %v1358_v4, %v1325_v1  ;;  %1324 = vst.msk [vmem:[%s1820_s7 + $0x8] sm:$0xf] %vm669_vm10, %v1357_v5 }
 0x15a   : > { %1326 = vst [vmem:[%s1820_s7 + $0xc] sm:$0x3] %v998_v6 }
 0x15b   : > { %v1061_v7 = vld [vmem:[#allocation2 + $0x8] sm:$0x3] }
 0x15c   : > { %v1063_v14 = vadd.f32 %v1061_v7, %v1810_v30 }
 0x15e   : > { %1065 = vst [vmem:[#allocation2 + $0x8] sm:$0x3] %v1063_v14 }
 0x161   : > { %v1337_v18 = vld [vmem:[%s1820_s7 + $0xc] sm:$0x3] }
 0x165   : > { %v1067_v8 = vld [vmem:[#allocation2 + $0x8] sm:$0x7] }
 0x166   : > { %v1069_v9 = vmax.f32 %v1067_v8, 0.0 }
 0x168   : > { %v1077_v10 = vsel %vm1071_vm15, %v1069_v9, 0.0 }
 0x169   : > { %v1360_v11 = vpack.c.bf16 %v1077_v10, %v1077_v10 }
 0x16b   : > { %1086 = vrot.lane.b32.xlu0 %v1360_v11, %s1565_s25 }
 0x17f   : > { %v828_v12 = vpop.permute.xlu1 %827 }
 0x180   : > { %834 = vst.msk [vmem:[%s1820_s7] sm:$0xf] %vm833_vm0, %v828_v12 }
 0x18d   : > { %v1085_v13 = vpop.permute.xlu1 %1084 }
 0x18e   : > { %1336 = vst.msk [vmem:[%s1820_s7 + $0x8] sm:$0xf] %vm833_vm0, %v1085_v13 }
 0x1af   : > { %v830_v16 = vpop.permute.xlu0 %829 }
 0x1b0   : > { %v838_v17 = vsel %vm836_vm2, %v830_v16, %v837_v15 }
 0x1b1   : > { %839 = vst [vmem:[%s1820_s7 + $0x4] sm:$0x3] %v838_v17 }
 0x1dd   : > { %v1087_v19 = vpop.permute.xlu0 %1086 }
 0x1de   : > { %v1092_v20 = vsel %vm836_vm2, %v1087_v19, %v1337_v18 }
 0x1df   : > { %1338 = vst [vmem:[%s1820_s7 + $0xc] sm:$0x3] %v1092_v20 }
 0x1e0 PF: > { %s14_s19 = sadd.s32 1, %s1561_s19   ;;  %s1905_s15 = smov %s1553_s17 }
 0x1e1   : > { %p11_p6 = scmp.ge.s32.totalorder %s14_s19, 22   ;;  %s1906_s16 = smov %s1557_s18 }
 0x1e2   : > { %s1907_s17 = smov %s1910_s20  ;;  %s1908_s18 = smov %s1914_s21 }
 0x1e3   :  { %13 = sbr.rel (!%p11_p6) target bundleno = 3 (0x3), region = 78 }

// kernel: generator_forward.4
= control target key start
LH: loop header
LB: loop body
LE: loop exit
PB: predicated region body
PF: predicated region fallthrough
CT: control target
= control target key end

     0   :  { %11 = vsyncpa [#allocation4], 0  ;;  %s2535_s0 = inlined_call_operand.vmem [shape: bf16[2,1,1,32], index: 0, kind: input, shape index: {}, may-alias: {0,1,2,3}]   ;;  %s2536_s1 = inlined_call_operand.vmem [shape: bf16[2,1,1,32], index: 1, kind: input, shape index: {}, may-alias: {0,1,2,3}]   ;;  %s2537_s2 = inlined_call_operand.vmem [shape: bf16[2,1,1,32], index: 2, kind: input, shape index: {}, may-alias: {0,1,2,3}]   ;;  %s2538_s3 = inlined_call_operand.vmem [shape: bf16[2,1,1,32], index: 3, kind: input, shape index: {}, may-alias: {0,1,2,3}]   ;;  %s2539_s4 = inlined_call_operand.hbm [shape: bf16[16,32,128], index: 4, kind: input, shape index: {}]   ;;  %s2540_s5 = inlined_call_operand.hbm [shape: f32[1,128], index: 5, kind: input, shape index: {}]   ;;  %s2541_s6 = inlined_call_operand.vmem [shape: bf16[2,4,4,64], index: 6, kind: output, shape index: {}]  }
   0x1   :  { %12 = vsyncpa [#allocation6], 0  ;;  %s2259_s21 = smov 0   ;;  %s2261_s22 = smov 0  }
   0x2   :  { %s2263_s23 = smov 0   ;;  %s2265_s24 = smov 0  }
   0x3   :  { %s2267_s25 = smov 0  }
   0x4 LB: > { %s1701_s26 = sadd.s32 4294967295, %s2215_s25   ;;  %s27_s27 = sadd.s32 1, %s2207_s23  ;;  %s2215_s25 = sphi %s2267_s25, %s18_s25   ;;  %s2211_s24 = sphi %s2265_s24, %s2560_s24   ;;  %s2207_s23 = sphi %s2263_s23, %s2559_s23   ;;  %s2203_s22 = sphi %s2261_s22, %s2558_s22   ;;  %s2199_s21 = sphi %s2259_s21, %s2557_s21  }
   0x5   : > { %p28_p0 = scmp.ge.s32.totalorder %s27_s27, 4  ;;  %s30_s28 = sadd.s32 1, %s2211_s24 }
   0x6   : > { %p1749_p1 = scmp.ge.s32.totalorder %s2215_s25, 1  ;;  %p255_p2 = scmp.lt.s32.totalorder %s2215_s25, 9 }
   0x7   : > { %s2562_s27 = smov (%p28_p0, %s27_s27), 0  ;;  %s2564_s28 = smov (!%p28_p0, %s30_s28), %s2211_s24 }
   0x8   : > { %p2292_p3 = pnand %p1749_p1, %p255_p2  ;;  %p32_p4 = scmp.ge.s32.totalorder %s2564_s28, 2 }
   0x9   : > { %p2296_p5 = scmp.eq.s32.totalorder %s1701_s26, 0  ;;  %s2217_s7 = smov [#allocation3]  }
   0xa   : > { %s2545_s29 = scalar_select %p2292_p3, 1, 0 }
   0xb   : > { %s2546_s30 = scalar_select %p2296_p5, 1, 0 }
   0xc   : > { %p2023_p6 = pneg %p2292_p3  ;;  %s2566_s28 = smov (%p32_p4, %s2564_s28), 0 }
   0xd   : > { %s267_s8 = sshll.u32 %s2217_s7, 4  ;;  %s2113_s12 = scalar_lea.hbm %s2539_s4, 4096  ;;  %s268_s8 = int_to_ptr.vmem [resolvable:$true] %s267_s8 }
   0xe   : > { %p2306_p7 = pnand %p2296_p5, %p2023_p6  ;;  %p2114_p8 = scmp.ne.s32.totalorder %s2539_s4, %s2113_s12 }
   0xf   : > { %p2120_p12 = scmp.lt.u32.totalorder %s2113_s12, %s2539_s4 }
  0x10   : > { %p2115_p9 = pneg %p2306_p7 }
  0x12   : > { %p2116_p10 = pnand %p2115_p9, %p2114_p8 }
  0x14   : > { %p2117_p11 = pneg %p2116_p10 }
  0x16   : > { %p2122_p13 = pnand %p2120_p12, %p2117_p11 }
  0x18   : > { %2125 = shalt.err (!%p2122_p13)
}
  0x19   : > { %s2126_s17 = scalar_lea.vmem %s268_s8, 4096  ;;  %p2134_p4 = scmp.lt.s32.totalorder %s268_s8, %s268_s8 }
  0x1a   : > { %p2127_p0 = scmp.ne.s32.totalorder %s268_s8, %s2126_s17  ;;  %p2135_p6 = scmp.lt.s32.totalorder %s2126_s17, %s2126_s17 }
  0x1c   : > { %p2129_p1 = pnand %p2127_p0, %p2115_p9  ;;  %p2136_p5 = por %p2135_p6, %p2134_p4 }
  0x1e   : > { %p2130_p2 = pneg %p2129_p1 }
  0x20   : > { %p2137_p3 = pnand %p2136_p5, %p2130_p2 }
  0x22   : > { %2140 = shalt.err (!%p2137_p3)
}
  0x23   : > { %s2218_s18 = smov 64   ;;  %s2219_s19 = smov 4  }
  0x24   : > { %2026 = dma.hbm_to_vmem [thread:$0]  (!%p2306_p7), %s2539_s4, 4096, %s268_s8, [#allocation4], %s2218_s18, %s2218_s18, %s2219_s19  }
  0x25   : > { %s2220_s7 = smov [#allocation5]   ;;  %s2141_s13 = scalar_lea.hbm %s2540_s5, 16 }
  0x26   : > { %s281_s10 = sshll.u32 %s2220_s7, 4  ;;  %p2142_p3 = scmp.ne.s32.totalorder %s2540_s5, %s2141_s13  ;;  %s282_s10 = int_to_ptr.vmem [resolvable:$true] %s281_s10 }
  0x27   : > { %p2148_p10 = scmp.lt.u32.totalorder %s2141_s13, %s2540_s5 }
  0x28   : > { %p2144_p5 = pnand %p2142_p3, %p2115_p9 }
  0x2a   : > { %p2145_p8 = pneg %p2144_p5 }
  0x2c   : > { %p2150_p11 = pnand %p2148_p10, %p2145_p8 }
  0x2e   : > { %2153 = shalt.err (!%p2150_p11)
}
  0x2f   : > { %s2154_s8 = scalar_lea.vmem %s282_s10, 16  ;;  %s2161_s18 = scalar_lea.vmem %s282_s10, 32 }
  0x30   : > { %p2155_p12 = scmp.ne.s32.totalorder %s282_s10, %s2154_s8  ;;  %p2162_p1 = scmp.lt.s32.totalorder %s282_s10, %s282_s10 }
  0x31   : > { %p2163_p2 = scmp.lt.s32.totalorder %s2161_s18, %s2154_s8 }
  0x32   : > { %p2157_p13 = pnand %p2155_p12, %p2115_p9 }
  0x33   : > { %p2164_p4 = por %p2163_p2, %p2162_p1 }
  0x34   : > { %p2158_p0 = pneg %p2157_p13 }
  0x36   : > { %p2165_p6 = pnand %p2164_p4, %p2158_p0 }
  0x38   : > { %2168 = shalt.err (!%p2165_p6)
}
  0x39   : > { %2029 = dma.hbm_to_vmem [thread:$0]  (!%p2306_p7), %s2540_s5, 16, %s282_s10, [#allocation6]  }
  0x3a   : > { %p2548_p3 = scmp.ne.s32.totalorder %s2545_s29, 0 }
  0x3b   : > { %p2549_p5 = scmp.ne.s32.totalorder (!%p2548_p3), %s2546_s30, 0 }
  0x3c   : > { %368 = sbr.rel (%p2548_p3) target bundleno = 368 (0x170), region = 44 }
  0x43   : > { %2190 = dma.done.wait (%p2549_p5), [#allocation4], 4096  }
  0x44   : > { %2192 = vsyncadd (%p2549_p5), [#allocation4], 4294963200 }
  0x45   : > { %2194 = dma.done.wait (%p2549_p5), [#allocation6], 16  }
  0x46   : > { %2196 = vsyncadd (%p2549_p5), [#allocation6], 4294967280  ;;  %v2221_v0 = vmov 0.0   ;;  %vm2222_vm0 = vmmov 0   ;;  %p447_p7 = scmp.lt.s32.totalorder %s2203_s22, 1  ;;  %p516_p9 = scmp.ge.s32.totalorder %s2199_s21, 0 }
  0x47   : > { %1887 = vmatprep.subr.bf16.mxu0 %v2221_v0  ;;  %1895 = vmatprep.subr.bf16.mxu1 %v2221_v0  ;;  %p517_p8 = scmp.lt.s32.totalorder %s2199_s21, 1  ;;  %v2081_v1 = vld [vmem:[#allocation3] sm:$0xff]   ;;  %v2082_v2 = vld [vmem:[#allocation3 + $0x10] sm:$0xff]   ;;  %v2083_v3 = vld [vmem:[#allocation3 + $0x8] sm:$0xff]   ;;  %s1782_s30 = sadd.s32 4294967295, %s2199_s21  ;;  %v2223_v7 = vmov 0  }
  0x48   : > { %1891 = vmatprep.mubr.msk.bf16.mxu0 %vm2222_vm0, %v2221_v0  ;;  %1899 = vmatprep.mubr.msk.bf16.mxu1 %vm2222_vm0, %v2221_v0  ;;  %s2568_s22 = smov (!%p447_p7, %s2203_s22), 1  ;;  %v2084_v4 = vld [vmem:[#allocation3 + $0x18] sm:$0xff]   ;;  %p2387_p11 = scmp.ge.s32.totalorder %s1782_s30, 0  ;;  %v2085_v10 = vld [vmem:[#allocation3 + $0x20] sm:$0xff]   ;;  %vm593_vm2 = vcmask 261120   ;;  %v2086_v11 = vld [vmem:[#allocation3 + $0x30] sm:$0xff]  }
  0x49   : > { %p2374_p10 = pnand %p517_p8, %p516_p9  ;;  %1888 = vmatpush3.bf16.msra.mxu0 %v2081_v1  ;;  %1896 = vmatpush3.bf16.msra.mxu1 %v2082_v2  ;;  %s452_s7 = scalar_lea.vmem %s2535_s0, %s2568_s22  ;;  %v2087_v13 = vld [vmem:[#allocation3 + $0x28] sm:$0xff]   ;;  %v2088_v14 = vld [vmem:[#allocation3 + $0x38] sm:$0xff]   ;;  %v2089_v16 = vld [vmem:[#allocation3 + $0x40] sm:$0xff]   ;;  %vm1560_vm13 = vcmask 517120  }
  0x4a   : > { %1889 = vmatprep.subr.bf16.mxu0 %v2221_v0  ;;  %1897 = vmatprep.subr.bf16.mxu1 %v2221_v0  ;;  %p2391_p12 = scmp.lt.s32.totalorder %s1782_s30, 1  ;;  %v520_v6 = vld [vmem:[%s452_s7] sm:$0x1]  ;;  %s1784_s13 = sadd.s32 4294967294, %s2199_s21  ;;  %v2090_v18 = vld [vmem:[#allocation3 + $0x50] sm:$0xff]   ;;  %v2091_v20 = vld [vmem:[#allocation3 + $0x48] sm:$0xff]  }
  0x4b   : > { %s1781_s10 = scalar_select %p2374_p10, 0, 1  ;;  %v2092_v21 = vld [vmem:[#allocation3 + $0x58] sm:$0xff]   ;;  %v2093_v23 = vld [vmem:[#allocation3 + $0x60] sm:$0xff]   ;;  %v2094_v25 = vld [vmem:[#allocation3 + $0x70] sm:$0xff]  }
  0x4c   : > { %p531_p13 = pnand %p2391_p12, %p2387_p11  ;;  %p2403_p0 = scmp.ge.s32.totalorder %s1784_s13, 0  ;;  %v2095_v27 = vld [vmem:[#allocation3 + $0x68] sm:$0xff]   ;;  %v2096_v28 = vld [vmem:[#allocation3 + $0x78] sm:$0xff]   ;;  %v2097_v30 = vld [vmem:[#allocation3 + $0x80] sm:$0xff]  }
  0x4d   : > { %1890 = vmatpush3.bf16.msra.mxu0 %v2083_v3  ;;  %v522_v5 = vstv %s1781_s10  ;;  %1898 = vmatpush3.bf16.msra.mxu1 %v2084_v4  ;;  %p2409_p1 = scmp.lt.s32.totalorder %s1784_s13, 1  ;;  %s467_s18 = scalar_lea.vmem %s2536_s1, %s2568_s22  ;;  %v2098_v31 = vld [vmem:[#allocation3 + $0x90] sm:$0xff]   ;;  %v1788_v32 = vld [vmem:[#allocation5] ss:$0 sm:$0xff]  ;;  %v2099_v34 = vld [vmem:[#allocation3 + $0x88] sm:$0xff]  }
  0x4e   : > { %vm523_vm1 = vcmp.eq.s32.totalorder %v522_v5, 1  ;;  %1903 = vmatprep.subr.bf16.mxu0 %v2221_v0  ;;  %1911 = vmatprep.subr.bf16.mxu1 %v2221_v0  ;;  %s1783_s15 = scalar_select %p531_p13, 0, 1  ;;  %v533_v22 = vld [vmem:[%s467_s18] sm:$0x1]  ;;  %v2101_v38 = vld [vmem:[#allocation3 + $0xa0] sm:$0xff]  }
  0x4f   : > { %v524_v8 = vsel %vm523_vm1, 1, %v2223_v7  ;;  %p544_p2 = pnand %p2409_p1, %p2403_p0  ;;  %s1786_s20 = sadd.s32 4294967293, %s2199_s21  ;;  %576 = vst [vmem:[#allocation2] sm:$0xf] %v1788_v32  ;;  %v2100_v35 = vld [vmem:[#allocation3 + $0x98] sm:$0xff]   ;;  %v2102_v39 = vld [vmem:[#allocation3 + $0xb0] sm:$0xff]  }
  0x50   : > { %v525_v9 = vpack.c.b16 %v524_v8, %v524_v8  ;;  %v535_v15 = vstv %s1783_s15  ;;  %p2443_p4 = scmp.ge.s32.totalorder %s1786_s20, 0  ;;  %p2447_p6 = scmp.lt.s32.totalorder %s1786_s20, 1  ;;  %v2103_v41 = vld [vmem:[#allocation3 + $0xa8] sm:$0xff]   ;;  %v2104_v42 = vld [vmem:[#allocation3 + $0xb8] sm:$0xff]   ;;  %v2105_v44 = vld [vmem:[#allocation3 + $0xc0] sm:$0xff]  }
  0x51   : > { %vm536_vm4 = vcmp.eq.s32.totalorder %v535_v15, 1  ;;  %s1785_s19 = scalar_select %p544_p2, 0, 1  ;;  %v2106_v45 = vld [vmem:[#allocation3 + $0xd0] sm:$0xff]   ;;  %v2107_v47 = vld [vmem:[#allocation3 + $0xc8] sm:$0xff]   ;;  %v2108_v48 = vld [vmem:[#allocation3 + $0xd8] sm:$0xff]  }
  0x52   : > { %vm526_vm3 = vcmp.ne.s16.totalorder %v525_v9, 0  ;;  %v537_v17 = vsel %vm536_vm4, 1, %v2223_v7  ;;  %p557_p3 = pnand %p2447_p6, %p2443_p4  ;;  %s483_s7 = scalar_lea.vmem %s2537_s2, %s2568_s22  ;;  %v2109_v51 = vld [vmem:[#allocation3 + $0xe0] sm:$0xff]   ;;  %v2110_v52 = vld [vmem:[#allocation3 + $0xf0] sm:$0xff]   ;;  %v2111_v53 = vld [vmem:[#allocation3 + $0xe8] sm:$0xff]  }
  0x53   : > { %v527_v12 = vsel %vm526_vm3, %v520_v6, 0  ;;  %v538_v19 = vpack.c.b16 %v537_v17, %v537_v17  ;;  %v548_v26 = vstv %s1785_s19  ;;  %v546_v36 = vld [vmem:[%s483_s7] sm:$0x1]  ;;  %s499_s13 = scalar_lea.vmem %s2538_s3, %s2568_s22  ;;  %p569_p5 = scmp.lt.s32.totalorder %s2199_s21, 4 }
  0x54   : > { %1892 = vmatmul.mubr.msk.bf16.vlgmr.msra.gmra.mrb[0].mxu0 %vm593_vm2, %v527_v12  ;;  %1900 = vmatmul.mubr.msk.bf16.vlgmr.msra.gmra.mrb[0].mxu1 %vm593_vm2, %v527_v12  ;;  %vm549_vm6 = vcmp.eq.s32.totalorder %v548_v26, 1  ;;  %s1787_s10 = scalar_select %p557_p3, 0, 1  ;;  %v559_v49 = vld [vmem:[%s499_s13] sm:$0x1] }
  0x55   : > { %1904 = vmatpush3.bf16.msra.mxu0 %v2085_v10  ;;  %1912 = vmatpush3.bf16.msra.mxu1 %v2086_v11  ;;  %vm539_vm5 = vcmp.ne.s16.totalorder %v538_v19, 0  ;;  %v550_v29 = vsel %vm549_vm6, 1, %v2223_v7  ;;  %v2112_v54 = vld [vmem:[#allocation3 + $0xf8] sm:$0xff]   ;;  %p507_p7 = scmp.lt.s32.totalorder %s2199_s21, 3  ;;  %s1779_s15 = sshll.u32 %s2568_s22, 2 }
  0x56   : > { %1905 = vmatprep.subr.bf16.mxu0 %v2221_v0  ;;  %1913 = vmatprep.subr.bf16.mxu1 %v2221_v0  ;;  %v540_v24 = vsel %vm539_vm5, %v533_v22, 0  ;;  %v551_v33 = vpack.c.b16 %v550_v29, %v550_v29  ;;  %v561_v40 = vstv %s1787_s10  ;;  %v637_v55 = vld [vmem:[#allocation2] sm:$0x1]  ;;  %v697_v56 = vld [vmem:[#allocation2 + $0x1] sm:$0x1] }
  0x57   : > { %1907 = vmatprep.mubr.msk.bf16.mxu0 %vm2222_vm0, %v2221_v0  ;;  %1915 = vmatprep.mubr.msk.bf16.mxu1 %vm2222_vm0, %v2221_v0  ;;  %vm562_vm8 = vcmp.eq.s32.totalorder %v561_v40, 1  ;;  %v757_v3 = vld [vmem:[#allocation2 + $0x2] sm:$0x1]  ;;  %v817_v4 = vld [vmem:[#allocation2 + $0x3] sm:$0x1]  ;;  %s2570_s21 = smov (!%p507_p7, %s2199_s21), 3 }
  0x58   : > { %vm552_vm7 = vcmp.ne.s16.totalorder %v551_v33, 0  ;;  %v563_v43 = vsel %vm562_vm8, 1, %v2223_v7  ;;  %s1552_s14 = scalar_select %p569_p5, 1, 0 }
  0x59   : > { %1906 = vmatpush3.bf16.msra.mxu0 %v2087_v13  ;;  %1914 = vmatpush3.bf16.msra.mxu1 %v2088_v14  ;;  %v553_v37 = vsel %vm552_vm7, %v546_v36, 0  ;;  %v564_v46 = vpack.c.b16 %v563_v43, %v563_v43  ;;  %s510_s16 = sadd.s32 %s1779_s15, %s2570_s21 }
  0x5a   : > { %1919 = vmatprep.subr.bf16.mxu0 %v2221_v0  ;;  %1927 = vmatprep.subr.bf16.mxu1 %v2221_v0  ;;  %s1780_s17 = sshll.u32 %s510_s16, 1 }
  0x5b   : > { %vm565_vm9 = vcmp.ne.s16.totalorder %v564_v46, 0  ;;  %s512_s19 = scalar_lea.vmem %s2541_s6, %s1780_s17 }
  0x5c   : > { %1908 = vmatmul.mubr.msk.bf16.vlgmr.msra.gmra.mrb[4].mxu0 %vm593_vm2, %v527_v12  ;;  %1916 = vmatmul.mubr.msk.bf16.vlgmr.msra.gmra.mrb[4].mxu1 %vm593_vm2, %v527_v12  ;;  %v566_v50 = vsel %vm565_vm9, %v559_v49, 0 }
  0x5d   : > { %1920 = vmatpush3.bf16.msra.mxu0 %v2089_v16  ;;  %1928 = vmatpush3.bf16.msra.mxu1 %v2090_v18 }
  0x5e   : > { %1921 = vmatprep.subr.bf16.mxu0 %v2221_v0  ;;  %1929 = vmatprep.subr.bf16.mxu1 %v2221_v0 }
  0x5f   : > { %1923 = vmatprep.mubr.msk.bf16.mxu0 %vm2222_vm0, %v2221_v0  ;;  %1931 = vmatprep.mubr.msk.bf16.mxu1 %vm2222_vm0, %v2221_v0 }
  0x61   : > { %1922 = vmatpush3.bf16.msra.mxu0 %v2091_v20  ;;  %1930 = vmatpush3.bf16.msra.mxu1 %v2092_v21 }
  0x62   : > { %1935 = vmatprep.subr.bf16.mxu0 %v2221_v0  ;;  %1943 = vmatprep.subr.bf16.mxu1 %v2221_v0 }
  0x64   : > { %1924 = vmatmul.mubr.msk.bf16.vlgmr.msra.gmra.mrb[8].mxu0 %vm593_vm2, %v540_v24  ;;  %1932 = vmatmul.mubr.msk.bf16.vlgmr.msra.gmra.mrb[8].mxu1 %vm593_vm2, %v540_v24 }
  0x65   : > { %1936 = vmatpush3.bf16.msra.mxu0 %v2093_v23  ;;  %1944 = vmatpush3.bf16.msra.mxu1 %v2094_v25 }
  0x66   : > { %1937 = vmatprep.subr.bf16.mxu0 %v2221_v0  ;;  %1945 = vmatprep.subr.bf16.mxu1 %v2221_v0 }
  0x67   : > { %1939 = vmatprep.mubr.msk.bf16.mxu0 %vm2222_vm0, %v2221_v0  ;;  %1947 = vmatprep.mubr.msk.bf16.mxu1 %vm2222_vm0, %v2221_v0 }
  0x69   : > { %1938 = vmatpush3.bf16.msra.mxu0 %v2095_v27  ;;  %1946 = vmatpush3.bf16.msra.mxu1 %v2096_v28 }
  0x6a   : > { %1951 = vmatprep.subr.bf16.mxu0 %v2221_v0  ;;  %1959 = vmatprep.subr.bf16.mxu1 %v2221_v0 }
  0x6c   : > { %1940 = vmatmul.mubr.msk.bf16.vlgmr.msra.gmra.mrb[12].mxu0 %vm593_vm2, %v540_v24  ;;  %1948 = vmatmul.mubr.msk.bf16.vlgmr.msra.gmra.mrb[12].mxu1 %vm593_vm2, %v540_v24 }
  0x6d   : > { %1952 = vmatpush3.bf16.msra.mxu0 %v2097_v30  ;;  %1960 = vmatpush3.bf16.msra.mxu1 %v2098_v31 }
  0x6e   : > { %1953 = vmatprep.subr.bf16.mxu0 %v2221_v0  ;;  %1961 = vmatprep.subr.bf16.mxu1 %v2221_v0 }
  0x6f   : > { %1955 = vmatprep.mubr.msk.bf16.mxu0 %vm2222_vm0, %v2221_v0  ;;  %1963 = vmatprep.mubr.msk.bf16.mxu1 %vm2222_vm0, %v2221_v0 }
  0x71   : > { %1954 = vmatpush3.bf16.msra.mxu0 %v2099_v34  ;;  %1962 = vmatpush3.bf16.msra.mxu1 %v2100_v35 }
  0x72   : > { %1967 = vmatprep.subr.bf16.mxu0 %v2221_v0  ;;  %1975 = vmatprep.subr.bf16.mxu1 %v2221_v0 }
  0x74   : > { %1956 = vmatmul.mubr.msk.bf16.vlgmr.msra.gmra.mrb[16].mxu0 %vm593_vm2, %v553_v37  ;;  %1964 = vmatmul.mubr.msk.bf16.vlgmr.msra.gmra.mrb[16].mxu1 %vm593_vm2, %v553_v37 }
  0x75   : > { %1968 = vmatpush3.bf16.msra.mxu0 %v2101_v38  ;;  %1976 = vmatpush3.bf16.msra.mxu1 %v2102_v39 }
  0x76   : > { %1969 = vmatprep.subr.bf16.mxu0 %v2221_v0  ;;  %1977 = vmatprep.subr.bf16.mxu1 %v2221_v0 }
  0x77   : > { %1971 = vmatprep.mubr.msk.bf16.mxu0 %vm2222_vm0, %v2221_v0  ;;  %1979 = vmatprep.mubr.msk.bf16.mxu1 %vm2222_vm0, %v2221_v0 }
  0x79   : > { %1970 = vmatpush3.bf16.msra.mxu0 %v2103_v41  ;;  %1978 = vmatpush3.bf16.msra.mxu1 %v2104_v42 }
  0x7a   : > { %1983 = vmatprep.subr.bf16.mxu0 %v2221_v0  ;;  %1991 = vmatprep.subr.bf16.mxu1 %v2221_v0 }
  0x7c   : > { %1972 = vmatmul.mubr.msk.bf16.vlgmr.msra.gmra.mrb[20].mxu0 %vm593_vm2, %v553_v37  ;;  %1980 = vmatmul.mubr.msk.bf16.vlgmr.msra.gmra.mrb[20].mxu1 %vm593_vm2, %v553_v37 }
  0x7d   : > { %1984 = vmatpush3.bf16.msra.mxu0 %v2105_v44  ;;  %1992 = vmatpush3.bf16.msra.mxu1 %v2106_v45 }
  0x7e   : > { %1985 = vmatprep.subr.bf16.mxu0 %v2221_v0  ;;  %1993 = vmatprep.subr.bf16.mxu1 %v2221_v0 }
  0x7f   : > { %1987 = vmatprep.mubr.msk.bf16.mxu0 %vm2222_vm0, %v2221_v0  ;;  %1995 = vmatprep.mubr.msk.bf16.mxu1 %vm2222_vm0, %v2221_v0 }
  0x81   : > { %1986 = vmatpush3.bf16.msra.mxu0 %v2107_v47  ;;  %1994 = vmatpush3.bf16.msra.mxu1 %v2108_v48 }
  0x82   : > { %1999 = vmatprep.subr.bf16.mxu0 %v2221_v0  ;;  %2007 = vmatprep.subr.bf16.mxu1 %v2221_v0 }
  0x84   : > { %1988 = vmatmul.mubr.msk.bf16.vlgmr.msra.gmra.mrb[24].mxu0 %vm593_vm2, %v566_v50  ;;  %1996 = vmatmul.mubr.msk.bf16.vlgmr.msra.gmra.mrb[24].mxu1 %vm593_vm2, %v566_v50 }
  0x85   : > { %2000 = vmatpush3.bf16.msra.mxu0 %v2109_v51  ;;  %2008 = vmatpush3.bf16.msra.mxu1 %v2110_v52 }
  0x86   : > { %2001 = vmatprep.subr.bf16.mxu0 %v2221_v0  ;;  %2009 = vmatprep.subr.bf16.mxu1 %v2221_v0 }
  0x87   : > { %2003 = vmatprep.mubr.msk.bf16.mxu0 %vm2222_vm0, %v2221_v0  ;;  %2011 = vmatprep.mubr.msk.bf16.mxu1 %vm2222_vm0, %v2221_v0 }
  0x89   : > { %2002 = vmatpush3.bf16.msra.mxu0 %v2111_v53  ;;  %2010 = vmatpush3.bf16.msra.mxu1 %v2112_v54 }
  0x8c   : > { %2004 = vmatmul.mubr.msk.bf16.vlgmr.msra.gmra.mrb[28].mxu0 %vm593_vm2, %v566_v50  ;;  %2012 = vmatmul.mubr.msk.bf16.vlgmr.msra.gmra.mrb[28].mxu1 %vm593_vm2, %v566_v50 }
 0x127   : > { %v631_v57 = vpop.f32.mrb[0].mxu0  ;;  %v691_v58 = vpop.f32.mrb[0].mxu1 }
 0x128   : > { %v638_v59 = vadd.f32 %v637_v55, %v631_v57  ;;  %v698_v60 = vadd.f32 %v697_v56, %v691_v58  ;;  %v1893_v61 = vpop.f32.mrb[1].mxu0  ;;  %v1901_v62 = vpop.f32.mrb[1].mxu1 }
 0x129   : > { %v634_v63 = vpop.f32.mrb[2].mxu0  ;;  %v694_v1 = vpop.f32.mrb[2].mxu1 }
 0x12a   : > { %639 = vst [vmem:[#allocation2] sm:$0x1] %v638_v59  ;;  %699 = vst [vmem:[#allocation2 + $0x1] sm:$0x1] %v698_v60  ;;  %v1894_v2 = vpop.f32.mrb[3].mxu0  ;;  %v1902_v0 = vpop.f32.mrb[3].mxu1 }
 0x12f   : > { %v751_v5 = vpop.f32.mrb[4].mxu0  ;;  %v811_v6 = vpop.f32.mrb[4].mxu1 }
 0x130   : > { %v758_v7 = vadd.f32 %v757_v3, %v751_v5  ;;  %v818_v8 = vadd.f32 %v817_v4, %v811_v6  ;;  %v1909_v9 = vpop.f32.mrb[5].mxu0  ;;  %v1917_v10 = vpop.f32.mrb[5].mxu1 }
 0x131   : > { %v754_v11 = vpop.f32.mrb[6].mxu0  ;;  %v814_v12 = vpop.f32.mrb[6].mxu1  ;;  %v880_v16 = vld [vmem:[#allocation2] sm:$0x1]  ;;  %v940_v18 = vld [vmem:[#allocation2 + $0x1] sm:$0x1] }
 0x132   : > { %759 = vst [vmem:[#allocation2 + $0x2] sm:$0x1] %v758_v7  ;;  %819 = vst [vmem:[#allocation2 + $0x3] sm:$0x1] %v818_v8  ;;  %v1910_v13 = vpop.f32.mrb[7].mxu0  ;;  %v1918_v14 = vpop.f32.mrb[7].mxu1  ;;  %v567_v11 = vlaneseq }
 0x137   : > { %v874_v15 = vpop.f32.mrb[8].mxu0  ;;  %v934_v17 = vpop.f32.mrb[8].mxu1 }
 0x138   : > { %v881_v19 = vadd.f32 %v880_v16, %v874_v15  ;;  %v941_v20 = vadd.f32 %v940_v18, %v934_v17  ;;  %v1925_v21 = vpop.f32.mrb[9].mxu0  ;;  %v1933_v22 = vpop.f32.mrb[9].mxu1 }
 0x139   : > { %v877_v23 = vpop.f32.mrb[10].mxu0  ;;  %v937_v24 = vpop.f32.mrb[10].mxu1  ;;  %v1000_v28 = vld [vmem:[#allocation2 + $0x2] sm:$0x1]  ;;  %v1060_v30 = vld [vmem:[#allocation2 + $0x3] sm:$0x1] }
 0x13a   : > { %882 = vst [vmem:[#allocation2] sm:$0x1] %v881_v19  ;;  %942 = vst [vmem:[#allocation2 + $0x1] sm:$0x1] %v941_v20  ;;  %v1926_v25 = vpop.f32.mrb[11].mxu0  ;;  %v1934_v26 = vpop.f32.mrb[11].mxu1 }
 0x13b   : > { %v568_v22 = vshrl.u32 %v567_v11, 7  ;;  %v1553_v25 = vstv %s1552_s14 }
 0x13c   : > { %vm1554_vm11 = vcmp.eq.s32.totalorder %v1553_v25, 1 }
 0x13d   : > { %vm1551_vm10 = vcmp.lt.s32.totalorder %v568_v22, 4 }
 0x13e   : > { %vm1555_vm12 = vmand %vm1551_vm10, %vm1554_vm11 }
 0x13f   : > { %v994_v27 = vpop.f32.mrb[12].mxu0  ;;  %v1054_v29 = vpop.f32.mrb[12].mxu1 }
 0x140   : > { %v1001_v31 = vadd.f32 %v1000_v28, %v994_v27  ;;  %v1061_v32 = vadd.f32 %v1060_v30, %v1054_v29  ;;  %v1941_v33 = vpop.f32.mrb[13].mxu0  ;;  %v1949_v34 = vpop.f32.mrb[13].mxu1 }
 0x141   : > { %v997_v35 = vpop.f32.mrb[14].mxu0  ;;  %v1057_v36 = vpop.f32.mrb[14].mxu1  ;;  %v1123_v40 = vld [vmem:[#allocation2] sm:$0x1]  ;;  %v1183_v42 = vld [vmem:[#allocation2 + $0x1] sm:$0x1] }
 0x142   : > { %1002 = vst [vmem:[#allocation2 + $0x2] sm:$0x1] %v1001_v31  ;;  %1062 = vst [vmem:[#allocation2 + $0x3] sm:$0x1] %v1061_v32  ;;  %v1942_v37 = vpop.f32.mrb[15].mxu0  ;;  %v1950_v38 = vpop.f32.mrb[15].mxu1 }
 0x147   : > { %v1117_v39 = vpop.f32.mrb[16].mxu0  ;;  %v1177_v41 = vpop.f32.mrb[16].mxu1 }
 0x148   : > { %v1124_v43 = vadd.f32 %v1123_v40, %v1117_v39  ;;  %v1184_v44 = vadd.f32 %v1183_v42, %v1177_v41  ;;  %v1957_v45 = vpop.f32.mrb[17].mxu0  ;;  %v1965_v46 = vpop.f32.mrb[17].mxu1 }
 0x149   : > { %v1120_v47 = vpop.f32.mrb[18].mxu0  ;;  %v1180_v48 = vpop.f32.mrb[18].mxu1  ;;  %v1243_v52 = vld [vmem:[#allocation2 + $0x2] sm:$0x1]  ;;  %v1303_v54 = vld [vmem:[#allocation2 + $0x3] sm:$0x1] }
 0x14a   : > { %1125 = vst [vmem:[#allocation2] sm:$0x1] %v1124_v43  ;;  %1185 = vst [vmem:[#allocation2 + $0x1] sm:$0x1] %v1184_v44  ;;  %v1958_v49 = vpop.f32.mrb[19].mxu0  ;;  %v1966_v50 = vpop.f32.mrb[19].mxu1 }
 0x14f   : > { %v1237_v51 = vpop.f32.mrb[20].mxu0  ;;  %v1297_v53 = vpop.f32.mrb[20].mxu1 }
 0x150   : > { %v1244_v55 = vadd.f32 %v1243_v52, %v1237_v51  ;;  %v1304_v56 = vadd.f32 %v1303_v54, %v1297_v53  ;;  %v1973_v57 = vpop.f32.mrb[21].mxu0  ;;  %v1981_v58 = vpop.f32.mrb[21].mxu1 }
 0x151   : > { %v1240_v59 = vpop.f32.mrb[22].mxu0  ;;  %v1300_v60 = vpop.f32.mrb[22].mxu1  ;;  %v1366_v1 = vld [vmem:[#allocation2] sm:$0x1]  ;;  %v1426_v0 = vld [vmem:[#allocation2 + $0x1] sm:$0x1] }
 0x152   : > { %1245 = vst [vmem:[#allocation2 + $0x2] sm:$0x1] %v1244_v55  ;;  %1305 = vst [vmem:[#allocation2 + $0x3] sm:$0x1] %v1304_v56  ;;  %v1974_v61 = vpop.f32.mrb[23].mxu0  ;;  %v1982_v62 = vpop.f32.mrb[23].mxu1 }
 0x157   : > { %v1360_v63 = vpop.f32.mrb[24].mxu0  ;;  %v1420_v2 = vpop.f32.mrb[24].mxu1 }
 0x158   : > { %v1367_v3 = vadd.f32 %v1366_v1, %v1360_v63  ;;  %v1427_v4 = vadd.f32 %v1426_v0, %v1420_v2  ;;  %v1989_v5 = vpop.f32.mrb[25].mxu0  ;;  %v1997_v6 = vpop.f32.mrb[25].mxu1 }
 0x159   : > { %v1363_v7 = vpop.f32.mrb[26].mxu0  ;;  %v1423_v8 = vpop.f32.mrb[26].mxu1  ;;  %v1486_v13 = vld [vmem:[#allocation2 + $0x2] sm:$0x1]  ;;  %v1546_v15 = vld [vmem:[#allocation2 + $0x3] sm:$0x1] }
 0x15a   : > { %1368 = vst [vmem:[#allocation2] sm:$0x1] %v1367_v3  ;;  %1428 = vst [vmem:[#allocation2 + $0x1] sm:$0x1] %v1427_v4  ;;  %v1990_v9 = vpop.f32.mrb[27].mxu0  ;;  %v1998_v10 = vpop.f32.mrb[27].mxu1 }
 0x15f   : > { %v1480_v12 = vpop.f32.mrb[28].mxu0  ;;  %v1540_v14 = vpop.f32.mrb[28].mxu1 }
 0x160   : > { %v1487_v16 = vadd.f32 %v1486_v13, %v1480_v12  ;;  %v1547_v17 = vadd.f32 %v1546_v15, %v1540_v14  ;;  %v2005_v18 = vpop.f32.mrb[29].mxu0  ;;  %v2013_v19 = vpop.f32.mrb[29].mxu1 }
 0x161   : > { %v1483_v20 = vpop.f32.mrb[30].mxu0  ;;  %v1543_v21 = vpop.f32.mrb[30].mxu1 }
 0x162   : > { %1488 = vst [vmem:[#allocation2 + $0x2] sm:$0x1] %v1487_v16  ;;  %1548 = vst [vmem:[#allocation2 + $0x3] sm:$0x1] %v1547_v17  ;;  %v2006_v23 = vpop.f32.mrb[31].mxu0  ;;  %v2014_v24 = vpop.f32.mrb[31].mxu1 }
 0x169   : > { %v1549_v26 = vld [vmem:[#allocation2] sm:$0xf] }
 0x16a   : > { %v1550_v27 = vmax.f32 %v1549_v26, 0.0 }
 0x16c   : > { %v1558_v28 = vsel %vm1555_vm12, %v1550_v27, 0.0 }
 0x16d   : > { %v1559_v29 = vpack.c.bf16 %v1558_v28, %v1558_v28 }
 0x16f   : > { %1561 = vst.msk [vmem:[%s512_s19] sm:$0x3] %vm1560_vm13, %v1559_v29 }
 0x170 PF: > { %s18_s25 = sadd.s32 1, %s2215_s25   ;;  %s2557_s21 = smov %s2207_s23 }
 0x171   : > { %p15_p9 = scmp.ge.s32.totalorder %s18_s25, 10   ;;  %s2558_s22 = smov %s2211_s24 }
 0x172   : > { %s2559_s23 = smov %s2562_s27  ;;  %s2560_s24 = smov %s2566_s28 }
 0x173   :  { %17 = sbr.rel (!%p15_p9) target bundleno = 4 (0x4), region = 107 }
 0x17a   :  { %1589 = vsyncpa [#allocation4], 1 }
 0x17b   :  { %1591 = vsyncpa [#allocation4 + $0x1], 1 }
 0x17c   :  { %1592 = vsyncpa [#allocation6], 1 }

// kernel: generator_forward.7
= control target key start
LH: loop header
LB: loop body
LE: loop exit
PB: predicated region body
PF: predicated region fallthrough
CT: control target
= control target key end

     0   :  { %s1560_s15 = smov 0   ;;  %s1562_s16 = smov 0   ;;  %s1811_s0 = inlined_call_operand.vmem [shape: bf16[2,20,22,16], index: 0, kind: input, shape index: {}, may-alias: {0,1}]   ;;  %s1812_s1 = inlined_call_operand.vmem [shape: bf16[2,20,22,16], index: 1, kind: input, shape index: {}, may-alias: {0,1}]   ;;  %s1813_s2 = inlined_call_operand.vmem [shape: bf16[9,16,128], index: 2, kind: input, shape index: {}]   ;;  %s1814_s3 = inlined_call_operand.vmem [shape: f32[1,128], index: 3, kind: input, shape index: {}]   ;;  %s1815_s4 = inlined_call_operand.vmem [shape: f32[2,40,23,6], index: 4, kind: output, shape index: {}]  }
   0x1   :  { %s1564_s17 = smov 0   ;;  %s1566_s18 = smov 0  }
   0x2   :  { %s1568_s19 = smov 0  }
   0x3 LB: > { %s23_s20 = sadd.s32 1, %s1524_s17  ;;  %s26_s21 = sadd.s32 1, %s1528_s18  ;;  %s1532_s19 = sphi %s1568_s19, %s14_s19   ;;  %s1528_s18 = sphi %s1566_s18, %s1825_s18   ;;  %s1524_s17 = sphi %s1564_s17, %s1824_s17   ;;  %s1520_s16 = sphi %s1562_s16, %s1823_s16   ;;  %s1516_s15 = sphi %s1560_s15, %s1822_s15  }
   0x4   : > { %p24_p0 = scmp.ge.s32.totalorder %s23_s20, 20  ;;  %p1270_p1 = scmp.ge.s32.totalorder %s1532_s19, 1 }
   0x5   : > { %p234_p2 = scmp.lt.s32.totalorder %s1532_s19, 41 }
   0x6   : > { %s1827_s20 = smov (%p24_p0, %s23_s20), 0  ;;  %s1829_s21 = smov (!%p24_p0, %s26_s21), %s1528_s18 }
   0x7   : > { %p235_p3 = pnand %p1270_p1, %p234_p2  ;;  %p28_p4 = scmp.ge.s32.totalorder %s1829_s21, 2 }
   0x8   : > { %v1485_v0 = vld [vmem:[%s1813_s2] sm:$0xff] (!%p235_p3)   ;;  %p287_p5 = scmp.gt.s32.totalorder (!%p235_p3), %s1516_s15, 0  ;;  %p1271_p6 = scmp.lt.s32.totalorder (!%p235_p3), %s1516_s15, 18  ;;  %v1486_v1 = vld [vmem:[%s1813_s2 + $0x10] sm:$0xff] (!%p235_p3)   ;;  %vm394_vm1 = vcmask (!%p235_p3), 130048   ;;  %v1489_v14 = vld [vmem:[%s1813_s2 + $0x8] sm:$0xff] (!%p235_p3)  }
   0x9   : > { %s1831_s21 = smov (%p28_p4, %s1829_s21), 0  ;;  %238 = sbr.rel (%p235_p3) target bundleno = 479 (0x1df), region = 36 }
   0xa   : > { %p291_p7 = scmp.lt.s32.totalorder (!%p235_p3), %s1520_s16, 1  ;;  %1385 = vmatprep.subr.bf16.mxu0 (!%p235_p3), %v1485_v0  ;;  %v1487_v2 = vld [vmem:[%s1813_s2 + $0x30] sm:$0xff] (!%p235_p3)   ;;  %1391 = vmatprep.subr.bf16.mxu1 (!%p235_p3), %v1486_v1  ;;  %v1488_v3 = vld [vmem:[%s1813_s2 + $0x40] sm:$0xff] (!%p235_p3)   ;;  %p336_p8 = scmp.ge.s32.totalorder (!%p235_p3), %s1516_s15, 0  ;;  %v1490_v15 = vld [vmem:[%s1813_s2 + $0x38] sm:$0xff] (!%p235_p3)   ;;  %vm694_vm6 = vcmask (!%p235_p3), 22528  }
   0xb   : > { %1386 = vmatpush3.bf16.msra.mxu0 (!%p235_p3), %v1485_v0  ;;  %1392 = vmatpush3.bf16.msra.mxu1 (!%p235_p3), %v1486_v1  ;;  %p337_p10 = scmp.lt.s32.totalorder (!%p235_p3), %s1516_s15, 19  ;;  %s1277_s6 = sadd.s32 (!%p235_p3), 4294967295, %s1516_s15  ;;  %v1616_v4 = vld [vmem:[%s1814_s3] ss:$0 sm:$0xff] (!%p235_p3)  ;;  %v1491_v25 = vld [vmem:[%s1813_s2 + $0x18] sm:$0xff] (!%p235_p3)   ;;  %v1492_v26 = vld [vmem:[%s1813_s2 + $0x28] sm:$0xff] (!%p235_p3)  }
   0xc   : > { %1397 = vmatprep.subr.bf16.mxu0 (!%p235_p3), %v1487_v2  ;;  %1403 = vmatprep.subr.bf16.mxu1 (!%p235_p3), %v1488_v3  ;;  %p305_p12 = scmp.gt.s32.totalorder (!%p235_p3), %s1277_s6, 0  ;;  %377 = vst [vmem:[#allocation2 + $0x10] sm:$0x7f] (!%p235_p3), %v1616_v4  ;;  %p350_p13 = scmp.ge.s32.totalorder (!%p235_p3), %s1277_s6, 0  ;;  %v1493_v27 = vld [vmem:[%s1813_s2 + $0x20] sm:$0xff] (!%p235_p3)   ;;  %vm691_vm7 = vcmask (!%p235_p3), 23552  }
   0xd   : > { %p338_p11 = pnand (!%p235_p3), %p337_p10, %p336_p8  ;;  %p351_p0 = scmp.lt.s32.totalorder (!%p235_p3), %s1277_s6, 19  ;;  %vm861_vm13 = vcmask (!%p235_p3), 48152   ;;  %vm864_vm14 = vcmask (!%p235_p3), 47128  }
   0xe   : > { %p1278_p1 = scmp.lt.s32.totalorder (!%p235_p3), %s1277_s6, 18  ;;  %s1534_s25 = smov (!%p235_p3), 3  }
   0xf   : > { %p1624_p2 = pnand (!%p235_p3), %p351_p0, %p350_p13 }
  0x10   : > { %s288_s26 = scalar_select %p287_p5, %s1516_s15, 0 }
  0x11   : > { %s1833_s16 = smov (!%p291_p7, %s1520_s16), 1  ;;  %s1839_s6 = smov (!%p305_p12, %s1277_s6), 0 }
  0x12   : > { %s1835_s26 = smov (!%p1271_p6, %s288_s26), 18  ;;  %s1440_s5 = smul.u32 60, %s1833_s16 }
  0x13   : > { %p293_p9 = scmp.lt.s32.totalorder %s1835_s26, 19  ;;  %s1841_s6 = smov (!%p1278_p1, %s1839_s6), 18  ;;  %v451_v28 = vld [vmem:[#allocation2 + $0x10] sm:$0x3f] }
  0x14   : > { %s1286_s10 = scalar_select %p338_p11, 0, 1 }
  0x15   : > { %s1837_s26 = smov (!%p293_p9, %s1835_s26), 19  ;;  %p311_p3 = scmp.lt.s32.totalorder %s1841_s6, 19 }
  0x16   : > { %s1439_s7 = smul.u32 3, %s1837_s26  ;;  %v344_v5 = vstv %s1286_s10 }
  0x17   : > { %vm345_vm0 = vcmp.eq.s32.totalorder %v344_v5, 1  ;;  %s1288_s28 = scalar_select %p1624_p2, 0, 1 }
  0x18   : > { %s297_s11 = sadd.s32 %s1440_s5, %s1439_s7  ;;  %s1843_s6 = smov (!%p311_p3, %s1841_s6), 19 }
  0x19   : > { %s1276_s12 = sshll.u32 %s297_s11, 2  ;;  %s1441_s29 = smul.u32 3, %s1843_s6  ;;  %v358_v16 = vstv %s1288_s28 }
  0x1a   : > { %s299_s22 = scalar_lea.vmem %s1811_s0, %s1276_s12  ;;  %vm359_vm2 = vcmp.eq.s32.totalorder %v358_v16, 1  ;;  %s1443_s27 = smul.u32 120, %s1833_s16 }
  0x1b   : > { %v340_v6 = vld [vmem:[%s299_s22] sm:$0xf]  ;;  %v341_v7 = vld [vmem:[%s299_s22 + $0x4] sm:$0xf]  ;;  %v342_v8 = vld [vmem:[%s299_s22 + $0x8] sm:$0x7]  ;;  %s315_s30 = sadd.s32 %s1441_s29, %s1440_s5 }
  0x1c   : > { %v346_v9 = vsel %vm345_vm0, %v340_v6, 0  ;;  %v347_v10 = vsel %vm345_vm0, %v341_v7, 0  ;;  %v348_v11 = vsel %vm345_vm0, %v342_v8, 0  ;;  %s1283_s7 = sshll.u32 %s315_s30, 2  ;;  %s1672_s22 = sshll.u32 %s1516_s15, 1 }
  0x1d   : > { %v1291_v12 = vcombine.low %v346_v9, %v347_v10  ;;  %v1292_v13 = vcombine.low %v348_v11, %v348_v11  ;;  %s317_s10 = scalar_lea.vmem %s1812_s1, %s1283_s7  ;;  %p326_p4 = scmp.lt.s32.totalorder %s1672_s22, 39  ;;  %v363_v9 = vlaneseq }
  0x1e   : > { %v354_v17 = vld [vmem:[%s317_s10] sm:$0xf]  ;;  %v355_v18 = vld [vmem:[%s317_s10 + $0x4] sm:$0xf]  ;;  %v356_v19 = vld [vmem:[%s317_s10 + $0x8] sm:$0x7] }
  0x1f   : > { %1387 = vmatprep.mubr.msk.bf16.mxu0 %vm394_vm1, %v1291_v12  ;;  %1393 = vmatprep.mubr.msk.bf16.mxu1 %vm394_vm1, %v1291_v12  ;;  %v360_v20 = vsel %vm359_vm2, %v354_v17, 0  ;;  %v361_v21 = vsel %vm359_vm2, %v355_v18, 0  ;;  %v362_v22 = vsel %vm359_vm2, %v356_v19, 0  ;;  %s676_s15 = scalar_select %p326_p4, 1, 0 }
  0x20   : > { %1388 = vmatmul.mubr.msk.bf16.vlgmr.msra.gmra.mrb[0].mxu0 %vm394_vm1, %v1292_v13  ;;  %1394 = vmatmul.mubr.msk.bf16.vlgmr.msra.gmra.mrb[0].mxu1 %vm394_vm1, %v1292_v13  ;;  %v1303_v23 = vcombine.low %v360_v20, %v361_v21  ;;  %v1304_v24 = vcombine.low %v362_v22, %v362_v22  ;;  %s1685_s23 = scalar_select %p326_p4, %s1672_s22, 39 }
  0x21   : > { %1398 = vmatpush3.bf16.msra.mxu0 %v1487_v2  ;;  %1404 = vmatpush3.bf16.msra.mxu1 %v1488_v3  ;;  %v677_v61 = vstv %s676_s15  ;;  %s866_s24 = sadd.s32 1, %s1672_s22 }
  0x22   : > { %1409 = vmatprep.subr.bf16.mxu0 %v1489_v14  ;;  %1415 = vmatprep.subr.bf16.mxu1 %v1490_v15  ;;  %vm1688_vm3 = vcmp.eq.s32.totalorder %v677_v61, 1  ;;  %s1442_s26 = smul.u32 3, %s1685_s23  ;;  %p1704_p5 = scmp.lt.s32.totalorder %s866_s24, 39 }
  0x23   : > { %1399 = vmatprep.mubr.msk.bf16.mxu0 %vm394_vm1, %v1303_v23  ;;  %1405 = vmatprep.mubr.msk.bf16.mxu1 %vm394_vm1, %v1303_v23 }
  0x24   : > { %s330_s16 = sadd.s32 %s1443_s27, %s1442_s26 }
  0x25   : > { %s1006_s29 = scalar_select %p1704_p5, 1, 0 }
  0x26   : > { %s1285_s30 = sshll.u32 %s330_s16, 3 }
  0x27   : > { %s1733_s9 = scalar_lea.vmem %s1815_s4, %s1285_s30 }
  0x28   : > { %1400 = vmatmul.mubr.msk.bf16.vlgmr.msra.gmra.mrb[4].mxu0 %vm394_vm1, %v1304_v24  ;;  %1406 = vmatmul.mubr.msk.bf16.vlgmr.msra.gmra.mrb[4].mxu1 %vm394_vm1, %v1304_v24 }
  0x29   : > { %1410 = vmatpush3.bf16.msra.mxu0 %v1489_v14  ;;  %1411 = vmatprep.mubr.msk.bf16.mxu0 %vm394_vm1, %v1291_v12  ;;  %v364_v14 = vshrl.u32 %v363_v9, 7 }
  0x2a   : > { %1416 = vmatpush3.bf16.msra.mxu1 %v1490_v15  ;;  %1417 = vmatprep.mubr.msk.bf16.mxu1 %vm394_vm1, %v1303_v23 }
  0x2b   : > { %1421 = vmatprep.subr.bf16.mxu0 %v1491_v25  ;;  %1427 = vmatprep.subr.bf16.mxu1 %v1492_v26 }
  0x30   : > { %1412 = vmatmul.mubr.msk.bf16.vlgmr.msra.gmra.mrb[8].mxu0 %vm394_vm1, %v1292_v13  ;;  %1418 = vmatmul.mubr.msk.bf16.vlgmr.msra.gmra.mrb[8].mxu1 %vm394_vm1, %v1304_v24 }
  0x31   : > { %1422 = vmatpush3.bf16.msra.mxu0 %v1491_v25  ;;  %1423 = vmatprep.mubr.msk.bf16.mxu0 %vm394_vm1, %v1291_v12 }
  0x32   : > { %1428 = vmatpush3.bf16.msra.mxu1 %v1492_v26  ;;  %1429 = vmatprep.mubr.msk.bf16.mxu1 %vm394_vm1, %v1291_v12 }
  0x33   : > { %1433 = vmatprep.subr.bf16.mxu0 %v1493_v27 }
  0x38   : > { %1424 = vmatmul.mubr.msk.bf16.vlgmr.msra.gmra.mrb[12].mxu0 %vm394_vm1, %v1292_v13  ;;  %1430 = vmatmul.mubr.msk.bf16.vlgmr.msra.gmra.mrb[12].mxu1 %vm394_vm1, %v1292_v13 }
  0x39   : > { %1434 = vmatpush3.bf16.msra.mxu0 %v1493_v27  ;;  %1435 = vmatprep.mubr.msk.bf16.mxu0 %vm394_vm1, %v1291_v12 }
  0x40   : > { %1436 = vmatmul.mubr.msk.bf16.vlgmr.msra.gmra.mrb[16].mxu0 %vm394_vm1, %v1292_v13 }
  0xf3   : > { %v1389_v29 = vpop.f32.mrb[0].mxu0  ;;  %v1395_v30 = vpop.f32.mrb[0].mxu1 }
  0xf4   : > { %v454_v31 = vadd.f32 %v1389_v29, %v451_v28  ;;  %v435_v32 = vpop.f32.mrb[1].mxu0  ;;  %v501_v33 = vpop.f32.mrb[1].mxu1  ;;  %v1711_v29 = vadd.s32 16, %v364_v14 }
  0xf5   : > { %v452_v34 = vadd.f32 %v1616_v4, %v435_v32  ;;  %v1390_v35 = vpop.f32.mrb[2].mxu0  ;;  %v1396_v36 = vpop.f32.mrb[2].mxu1  ;;  %v1718_v32 = vstv %s1006_s29 }
  0xf6   : > { %457 = vst [vmem:[#allocation2 + $0x10] sm:$0x3f] %v454_v31  ;;  %v438_v37 = vpop.f32.mrb[3].mxu0  ;;  %v504_v38 = vpop.f32.mrb[3].mxu1  ;;  %vm675_vm4 = vcmp.lt.s32.totalorder %v1711_v29, 20  ;;  %vm1008_vm8 = vcmp.eq.s32.totalorder %v1718_v32, 1 }
  0xf7   : > { %455 = vst [vmem:[#allocation2] sm:$0xff] %v452_v34  ;;  %v453_v39 = vadd.f32 %v1616_v4, %v438_v37  ;;  %vm1726_vm5 = vmand %vm675_vm4, %vm1688_vm3  ;;  %vm836_vm9 = vcmp.lt.s32.totalorder %v1711_v29, 19 }
  0xf8   : > { %vm839_vm10 = vmand %vm836_vm9, %vm1688_vm3 }
  0xf9   : > { %456 = vst [vmem:[#allocation2 + $0x8] sm:$0xff] %v453_v39  ;;  %vm1011_vm11 = vmand %vm675_vm4, %vm1008_vm8 }
  0xfa   : > { %vm1099_vm12 = vmand %vm836_vm9, %vm1008_vm8 }
  0xfb   : > { %v1401_v46 = vpop.f32.mrb[4].mxu0  ;;  %v1407_v47 = vpop.f32.mrb[4].mxu1 }
  0xfc   : > { %v581_v48 = vpop.f32.mrb[5].mxu0  ;;  %v647_v49 = vpop.f32.mrb[5].mxu1 }
  0xfd   : > { %v517_v40 = vld [vmem:[#allocation2 + $0x11] sm:$0x3f]  ;;  %v1402_v50 = vpop.f32.mrb[6].mxu0  ;;  %v1408_v51 = vpop.f32.mrb[6].mxu1 }
  0xfe   : > { %v520_v41 = vadd.f32 %v1395_v30, %v517_v40  ;;  %v584_v52 = vpop.f32.mrb[7].mxu0  ;;  %v650_v53 = vpop.f32.mrb[7].mxu1 }
 0x100   : > { %523 = vst [vmem:[#allocation2 + $0x11] sm:$0x3f] %v520_v41  ;;  %v515_v42 = vld [vmem:[#allocation2 + $0x1] sm:$0xff]  ;;  %v516_v43 = vld [vmem:[#allocation2 + $0x9] sm:$0xff] }
 0x101   : > { %v518_v44 = vadd.f32 %v515_v42, %v501_v33  ;;  %v519_v45 = vadd.f32 %v516_v43, %v504_v38 }
 0x103   : > { %521 = vst [vmem:[#allocation2 + $0x1] sm:$0xff] %v518_v44  ;;  %522 = vst [vmem:[#allocation2 + $0x9] sm:$0xff] %v519_v45  ;;  %v1677_v54 = vpop.f32.mrb[8].mxu0  ;;  %v1679_v55 = vpop.f32.mrb[8].mxu1 }
 0x104   : > { %v742_v59 = vpop.f32.mrb[9].mxu0  ;;  %v808_v60 = vpop.f32.mrb[9].mxu1 }
 0x105   : > { %v759_v1 = vadd.f32 %v1616_v4, %v742_v59  ;;  %v1414_v2 = vpop.f32.mrb[10].mxu0  ;;  %v1420_v3 = vpop.f32.mrb[10].mxu1 }
 0x106   : > { %v745_v5 = vpop.f32.mrb[11].mxu0  ;;  %v811_v6 = vpop.f32.mrb[11].mxu1 }
 0x107   : > { %v760_v7 = vadd.f32 %v1616_v4, %v745_v5  ;;  %v825_v8 = vadd.f32 %v808_v60, %v759_v1 }
 0x109   : > { %v826_v11 = vadd.f32 %v811_v6, %v760_v7  ;;  %v846_v12 = vsel %vm1688_vm3, %v825_v8, 0.0 }
 0x10a   : > { %v597_v56 = vld [vmem:[#allocation2 + $0x10] sm:$0x3f]  ;;  %v595_v57 = vld [vmem:[#allocation2] sm:$0xff]  ;;  %v596_v58 = vld [vmem:[#allocation2 + $0x8] sm:$0xff]  ;;  %852 = vrot.lane.b32.xlu0 %v846_v12, %s1534_s25 }
 0x10b   : > { %v600_v62 = vadd.f32 %v1401_v46, %v597_v56  ;;  %v598_v63 = vadd.f32 %v595_v57, %v581_v48  ;;  %v599_v0 = vadd.f32 %v596_v58, %v584_v52  ;;  %v1696_v13 = vpop.f32.mrb[12].mxu0  ;;  %v847_v15 = vsel %vm1688_vm3, %v826_v11, 0.0  ;;  %v1701_v16 = vpop.f32.mrb[12].mxu1 }
 0x10c   : > { %v914_v17 = vpop.f32.mrb[13].mxu0  ;;  %v980_v18 = vpop.f32.mrb[13].mxu1 }
 0x10d   : > { %603 = vst [vmem:[#allocation2 + $0x10] sm:$0x3f] %v600_v62  ;;  %601 = vst [vmem:[#allocation2] sm:$0xff] %v598_v63  ;;  %v1426_v19 = vpop.f32.mrb[14].mxu0  ;;  %v1432_v20 = vpop.f32.mrb[14].mxu1  ;;  %v931_v33 = vadd.f32 %v1616_v4, %v914_v17 }
 0x10e   : > { %602 = vst [vmem:[#allocation2 + $0x8] sm:$0xff] %v599_v0  ;;  %v917_v24 = vpop.f32.mrb[15].mxu0  ;;  %854 = vrot.lane.b32.xlu0 %v847_v15, %s1534_s25  ;;  %v1709_v25 = vpop.f32.mrb[15].mxu1 }
 0x10f   : > { %v932_v34 = vadd.f32 %v1616_v4, %v917_v24 }
 0x113   : > { %v1716_v30 = vpop.f32.mrb[16].mxu0 }
 0x114   : > { %v663_v21 = vld [vmem:[#allocation2 + $0x11] sm:$0x3f]  ;;  %v1071_v31 = vpop.f32.mrb[17].mxu0 }
 0x115   : > { %v661_v22 = vld [vmem:[#allocation2 + $0x1] sm:$0xff]  ;;  %v662_v23 = vld [vmem:[#allocation2 + $0x9] sm:$0xff]  ;;  %v666_v26 = vadd.f32 %v1407_v47, %v663_v21  ;;  %v1438_v35 = vpop.f32.mrb[18].mxu0  ;;  %v1088_v50 = vadd.f32 %v1616_v4, %v1071_v31 }
 0x116   : > { %v664_v27 = vadd.f32 %v661_v22, %v647_v49  ;;  %v665_v28 = vadd.f32 %v662_v23, %v650_v53  ;;  %v1074_v37 = vpop.f32.mrb[19].mxu0 }
 0x117   : > { %669 = vst [vmem:[#allocation2 + $0x11] sm:$0x3f] %v666_v26  ;;  %v1089_v38 = vadd.f32 %v1616_v4, %v1074_v37 }
 0x118   : > { %667 = vst [vmem:[#allocation2 + $0x1] sm:$0xff] %v664_v27  ;;  %668 = vst [vmem:[#allocation2 + $0x9] sm:$0xff] %v665_v28 }
 0x119   : > { %v1107_v43 = vsel %vm1008_vm8, %v1089_v38, 0.0 }
 0x11a   : > { %1114 = vrot.lane.b32.xlu0 %v1107_v43, %s1534_s25 }
 0x11f   : > { %v672_v39 = vld [vmem:[#allocation2 + $0x10] sm:$0x7f]  ;;  %v670_v40 = vld [vmem:[#allocation2] sm:$0xff]  ;;  %v671_v41 = vld [vmem:[#allocation2 + $0x8] sm:$0xff] }
 0x120   : > { %698 = vst [vmem:[#allocation2 + $0x10] sm:$0x7f] %v1616_v4  ;;  %v690_v42 = vsel %vm1726_vm5, %v672_v39, 0.0  ;;  %934 = vst [vmem:[#allocation2] sm:$0xff] %v931_v33  ;;  %v688_v44 = vsel %vm1688_vm3, %v670_v40, 0.0  ;;  %v689_v45 = vsel %vm1688_vm3, %v671_v41, 0.0 }
 0x121   : > { %935 = vst [vmem:[#allocation2 + $0x8] sm:$0xff] %v932_v34  ;;  %695 = vst.msk [vmem:[%s1733_s9 + $0x10] sm:$0x7f] %vm694_vm6, %v690_v42 }
 0x122   : > { %692 = vst.msk [vmem:[%s1733_s9] sm:$0xff] %vm691_vm7, %v688_v44  ;;  %693 = vst.msk [vmem:[%s1733_s9 + $0x8] sm:$0xff] %vm691_vm7, %v689_v45 }
 0x127   : > { %v758_v46 = vld [vmem:[#allocation2 + $0x10] sm:$0x3f] }
 0x128   : > { %v994_v47 = vld [vmem:[#allocation2 + $0x1] sm:$0xff]  ;;  %v761_v48 = vadd.f32 %v1677_v54, %v758_v46 }
 0x129   : > { %v997_v49 = vadd.f32 %v994_v47, %v980_v18 }
 0x12a   : > { %764 = vst [vmem:[#allocation2 + $0x10] sm:$0x3f] %v761_v48 }
 0x12b   : > { %1000 = vst [vmem:[#allocation2 + $0x1] sm:$0xff] %v997_v49 }
 0x131   : > { %v824_v51 = vld [vmem:[#allocation2 + $0x10] sm:$0x3f] }
 0x132   : > { %v1003_v52 = vld [vmem:[#allocation2] sm:$0xff]  ;;  %v827_v53 = vadd.f32 %v1679_v55, %v824_v51  ;;  %v1106_v55 = vsel %vm1008_vm8, %v1088_v50, 0.0 }
 0x133   : > { %1091 = vst [vmem:[#allocation2] sm:$0xff] %v1088_v50  ;;  %v1018_v56 = vsel %vm1008_vm8, %v1003_v52, 0.0 }
 0x134   : > { %1333 = vst.msk [vmem:[%s1733_s9 + $0x18] sm:$0xff] %vm691_vm7, %v1018_v56  ;;  %830 = vst [vmem:[#allocation2 + $0x10] sm:$0x3f] %v827_v53 }
 0x13b   : > { %v833_v54 = vld [vmem:[#allocation2 + $0x10] sm:$0x7f] }
 0x13c   : > { %870 = vst [vmem:[#allocation2 + $0x10] sm:$0x7f] %v1616_v4  ;;  %v848_v57 = vsel %vm839_vm10, %v833_v54, 0.0 }
 0x13d   : > { %856 = vrot.lane.b32.xlu1 %v848_v57, %s1534_s25 }
 0x141   : > { %1112 = vrot.lane.b32.xlu1 %v1106_v55, %s1534_s25 }
 0x143   : > { %v930_v58 = vld [vmem:[#allocation2 + $0x10] sm:$0x3f] }
 0x144   : > { %v933_v59 = vadd.f32 %v1696_v13, %v930_v58 }
 0x146   : > { %936 = vst [vmem:[#allocation2 + $0x10] sm:$0x3f] %v933_v59 }
 0x14d   : > { %v996_v60 = vld [vmem:[#allocation2 + $0x11] sm:$0x3f]  ;;  %v995_v61 = vld [vmem:[#allocation2 + $0x9] sm:$0xff] }
 0x14e   : > { %v999_v62 = vadd.f32 %v1701_v16, %v996_v60  ;;  %v998_v63 = vadd.f32 %v995_v61, %v1709_v25 }
 0x150   : > { %1002 = vst [vmem:[#allocation2 + $0x11] sm:$0x3f] %v999_v62  ;;  %1001 = vst [vmem:[#allocation2 + $0x9] sm:$0xff] %v998_v63 }
 0x157   : > { %v1005_v0 = vld [vmem:[#allocation2 + $0x10] sm:$0x7f]  ;;  %v1004_v1 = vld [vmem:[#allocation2 + $0x8] sm:$0xff] }
 0x158   : > { %1027 = vst [vmem:[#allocation2 + $0x10] sm:$0x7f] %v1616_v4  ;;  %1092 = vst [vmem:[#allocation2 + $0x8] sm:$0xff] %v1089_v38  ;;  %v1019_v2 = vsel %vm1008_vm8, %v1004_v1, 0.0  ;;  %v1020_v3 = vsel %vm1011_vm11, %v1005_v0, 0.0 }
 0x159   : > { %1334 = vst.msk [vmem:[%s1733_s9 + $0x20] sm:$0xff] %vm691_vm7, %v1019_v2 }
 0x15a   : > { %1335 = vst.msk [vmem:[%s1733_s9 + $0x28] sm:$0x7f] %vm694_vm6, %v1020_v3 }
 0x15f   : > { %v1087_v5 = vld [vmem:[#allocation2 + $0x10] sm:$0x3f] }
 0x160   : > { %v1090_v6 = vadd.f32 %v1716_v30, %v1087_v5 }
 0x162   : > { %1093 = vst [vmem:[#allocation2 + $0x10] sm:$0x3f] %v1090_v6 }
 0x169   : > { %v1096_v4 = vld [vmem:[#allocation2 + $0x10] sm:$0x7f] }
 0x16a   : > { %v1108_v7 = vsel %vm1099_vm12, %v1096_v4, 0.0 }
 0x16b   : > { %1116 = vrot.lane.b32.xlu1 %v1108_v7, %s1534_s25 }
 0x17c   : > { %v853_v8 = vpop.permute.xlu0 %852 }
 0x17d   : > { %862 = vst.msk [vmem:[%s1733_s9] sm:$0xff] %vm861_vm13, %v853_v8 }
 0x180   : > { %v855_v9 = vpop.permute.xlu0 %854 }
 0x181   : > { %863 = vst.msk [vmem:[%s1733_s9 + $0x8] sm:$0xff] %vm861_vm13, %v855_v9 }
 0x18c   : > { %v1115_v10 = vpop.permute.xlu0 %1114 }
 0x18d   : > { %1342 = vst.msk [vmem:[%s1733_s9 + $0x20] sm:$0xff] %vm861_vm13, %v1115_v10 }
 0x1af   : > { %v857_v11 = vpop.permute.xlu1 %856 }
 0x1b0   : > { %865 = vst.msk [vmem:[%s1733_s9 + $0x10] sm:$0x7f] %vm864_vm14, %v857_v11 }
 0x1b3   : > { %v1113_v12 = vpop.permute.xlu1 %1112 }
 0x1b4   : > { %1341 = vst.msk [vmem:[%s1733_s9 + $0x18] sm:$0xff] %vm861_vm13, %v1113_v12 }
 0x1dd   : > { %v1117_v13 = vpop.permute.xlu1 %1116 }
 0x1de   : > { %1343 = vst.msk [vmem:[%s1733_s9 + $0x28] sm:$0x7f] %vm864_vm14, %v1117_v13 }
 0x1df PF: > { %s14_s19 = sadd.s32 1, %s1532_s19   ;;  %s1822_s15 = smov %s1524_s17 }
 0x1e0   : > { %p11_p6 = scmp.ge.s32.totalorder %s14_s19, 42   ;;  %s1823_s16 = smov %s1528_s18 }
 0x1e1   : > { %s1824_s17 = smov %s1827_s20  ;;  %s1825_s18 = smov %s1831_s21 }
 0x1e2   :  { %13 = sbr.rel (!%p11_p6) target bundleno = 3 (0x3), region = 78 }

</bundles_post_ra>
